<compile_context>
chip_gen: v6e
topology: v6e:2x2x1
jax: 0.10.0
libtpu: 0.0.40
codegen_flags: <defaults>
</compile_context>

<pallas_src>
import numpy as np
import jax
import jax.numpy as jnp
from jax import lax
from jax.experimental import pallas as pl
from jax.experimental.pallas import tpu as pltpu


# ----------------------------------------------------------------------------
# Fused kernel: stacked bidirectional LSTM + seq-sum + fc1 + fc2
# ----------------------------------------------------------------------------
def _make_lstm_net_kernel(T, B, H, n_layers):
    def kernel(*refs):
        # ---- unpack refs: inputs..., output, scratch... ---------------------
        x_ref = refs[0]                                  # (T, B, E)
        pos = 1
        layers = []
        for _ in range(n_layers):
            layers.append(refs[pos:pos + 4])             # Wf, bf, Wb, bb
            pos += 4
        w1_ref, b1_ref, w2_ref, b2_ref = refs[pos:pos + 4]
        pos += 4
        out_ref = refs[pos]
        pos += 1
        act_bufs = refs[pos:]                            # (T, B, H) VMEM buffers

        def run_direction(read_x, w_ref, b_ref, reverse, write_buf, accumulate):
            # hoisted out of the time loop (weights/bias loaded & broadcast once)
            w = w_ref[...]                               # (in_dim + H, 4H)
            bias = jnp.broadcast_to(b_ref[...], (B, 4 * H))

            def step(i, carry):
                h, c, ssum = carry
                t = (T - 1 - i) if reverse else i        # reversal = loop order
                xh = jnp.concatenate(read_x(t) + [h], axis=-1)   # (B, in_dim+H)
                gates = jnp.dot(xh, w, preferred_element_type=jnp.float32) + bias
                # PyTorch gate order: i, f, g, o
                ig = jax.nn.sigmoid(gates[:, 0 * H:1 * H])
                fg = jax.nn.sigmoid(gates[:, 1 * H:2 * H])
                gg = jnp.tanh(gates[:, 2 * H:3 * H])
                og = jax.nn.sigmoid(gates[:, 3 * H:4 * H])
                c_new = fg * c + ig * gg
                h_new = og * jnp.tanh(c_new)
                if write_buf is not None:
                    write_buf[t] = h_new                 # full (B, H) inner block
                if accumulate:
                    ssum = ssum + h_new                  # fused seq-sum
                return (h_new, c_new, ssum)

            zeros = jnp.zeros((B, H), jnp.float32)
            _, _, ssum = lax.fori_loop(0, T, step, (zeros, zeros, zeros),
                                       unroll=True)
            return ssum

        # ---- stacked bidirectional LSTM (inter-layer activations in VMEM) ---
        read_x = lambda t: [x_ref[t]]                    # layer-0 input (B, E)
        final_sum = None
        for li in range(n_layers):
            wf_ref, bf_ref, wb_ref, bb_ref = layers[li]
            last = li == n_layers - 1
            if last:
                s_f = run_direction(read_x, wf_ref, bf_ref, False, None, True)
                s_b = run_direction(read_x, wb_ref, bb_ref, True, None, True)
                final_sum = jnp.concatenate([s_f, s_b], axis=-1)   # (B, 2H)
            else:
                buf_f = act_bufs[2 * (li % 2) + 0]
                buf_b = act_bufs[2 * (li % 2) + 1]
                run_direction(read_x, wf_ref, bf_ref, False, buf_f, False)
                run_direction(read_x, wb_ref, bb_ref, True, buf_b, False)
                read_x = (lambda bf, bb: (lambda t: [bf[t], bb[t]]))(buf_f, buf_b)

        # ---- head: fc1 -> fc2 ------------------------------------------------
        y = jnp.dot(final_sum, w1_ref[...],
                    preferred_element_type=jnp.float32) + b1_ref[...]
        y = jnp.dot(y, w2_ref[...],
                    preferred_element_type=jnp.float32) + b2_ref[...]
        out_ref[...] = y

    return kernel


# ----------------------------------------------------------------------------
# Forward pass: JAX glue (embedding gather, weight fusion) + one pallas_call
# ----------------------------------------------------------------------------
def lstm_net_forward(text, params):
    T, B = text.shape
    emb = params["embedding"]
    H = params["fc1_w"].shape[1]
    n_out = params["fc2_w"].shape[1]
    n_layers = len(params["lstm"])

    # Embedding lookup (data-dependent gather) stays in plain JAX glue.
    x = jnp.take(emb, text, axis=0)                       # (T, B, E)

    # TODO(synk): inter-layer LSTM dropout not modeled (inference semantics).
    args = [x]
    for layer in params["lstm"]:
        for d in ("fwd", "bwd"):
            w_ih, w_hh, b = layer[d]
            w_fused = jnp.concatenate([w_ih, w_hh], axis=0)   # (in_dim + H, 4H)
            args += [w_fused, b]
    args += [params["fc1_w"], params["fc1_b"], params["fc2_w"], params["fc2_b"]]

    # ping-pong VMEM buffers for inter-layer activations (one pair if 2 layers)
    n_pairs = min(n_layers - 1, 2)
    scratch = [pltpu.VMEM((T, B, H), jnp.float32) for _ in range(2 * n_pairs)]

    kernel = _make_lstm_net_kernel(T, B, H, n_layers)
    return pl.pallas_call(
        kernel,
        out_shape=jax.ShapeDtypeStruct((B, n_out), jnp.float32),
        scratch_shapes=scratch,
    )(*args)


# ----------------------------------------------------------------------------
# Deterministic parameter init (shapes follow the PyTorch module)
# ----------------------------------------------------------------------------
def init_params(key, vocab_size, E, H, n_layers, pad_idx):
    def u(key, shape, scale=0.1):
        return jax.random.uniform(key, shape, jnp.float32, -scale, scale)

    keys = iter(jax.random.split(key, 4 + 8 * n_layers + 8))
    emb = u(next(keys), (vocab_size, E))
    emb = emb.at[pad_idx].set(0.0)                 # padding_idx row is zero

    lstm = []
    in_dim = E
    for _ in range(n_layers):
        layer = {}
        for direction in ("fwd", "bwd"):
            w_ih = u(next(keys), (in_dim, 4 * H))  # transposed vs. torch (4H, D)
            w_hh = u(next(keys), (H, 4 * H))
            b_ih = u(next(keys), (1, 4 * H))
            b_hh = u(next(keys), (1, 4 * H))
            layer[direction] = (w_ih, w_hh, b_ih + b_hh)
        lstm.append(layer)
        in_dim = 2 * H                              # bidirectional feeds next layer

    return {
        "embedding": emb,
        "lstm": lstm,
        "fc1_w": u(next(keys), (2 * H, H)),
        "fc1_b": u(next(keys), (1, H)),
        "fc2_w": u(next(keys), (H, 6)),
        "fc2_b": u(next(keys), (1, 6)),
    }


# ----------------------------------------------------------------------------
# Pure-numpy reference (same math) for a correctness check
# ----------------------------------------------------------------------------
def reference_forward(text, params):
    def cell_seq(x, w_ih, w_hh, b):
        T, B, _ = x.shape
        H = w_hh.shape[0]
        h = np.zeros((B, H), np.float32)
        c = np.zeros((B, H), np.float32)
        outs = []
        sig = lambda z: 1.0 / (1.0 + np.exp(-z))
        for t in range(T):
            g = x[t] @ np.asarray(w_ih) + h @ np.asarray(w_hh) + np.asarray(b)[0]
            i, f, gg, o = (sig(g[:, :H]), sig(g[:, H:2*H]),
                           np.tanh(g[:, 2*H:3*H]), sig(g[:, 3*H:]))
            c = f * c + i * gg
            h = o * np.tanh(c)
            outs.append(h)
        return np.stack(outs)

    x = np.asarray(params["embedding"])[np.asarray(text)]
    for layer in params["lstm"]:
        fwd = cell_seq(x, *layer["fwd"])
        bwd = cell_seq(x[::-1], *layer["bwd"])[::-1]
        x = np.concatenate([fwd, bwd], axis=-1)
    final = x.sum(axis=0)
    y = final @ np.asarray(params["fc1_w"]) + np.asarray(params["fc1_b"])[0]
    return y @ np.asarray(params["fc2_w"]) + np.asarray(params["fc2_b"])[0]


if __name__ == "__main__":
    VOCAB, E, H, N_LAYERS, PAD_IDX = 50, 32, 32, 2, 0
    T, B = 8, 4

    key = jax.random.PRNGKey(0)
    k_param, k_text = jax.random.split(key)
    params = init_params(k_param, VOCAB, E, H, N_LAYERS, PAD_IDX)
    text = jax.random.randint(k_text, (T, B), 0, VOCAB, dtype=jnp.int32)

    fwd_fn = jax.jit(lstm_net_forward)
    out = jax.block_until_ready(fwd_fn(text, params))
    assert out.shape == (B, 6) and out.dtype == jnp.float32

    ref = reference_forward(text, params)
    if not np.allclose(np.asarray(out), ref, rtol=1e-4, atol=1e-4):
        raise AssertionError("Pallas output mismatch vs reference")

    print("KERNEL_OK")
</pallas_src>

<mosaic_0001>
module attributes {stable_mosaic.version = 11 : i64} {
  func.func @kernel(%arg0: memref<8x4x32xf32, #tpu.memory_space<vmem>>, %arg1: memref<64x128xf32, #tpu.memory_space<vmem>>, %arg2: memref<1x128xf32, #tpu.memory_space<vmem>>, %arg3: memref<64x128xf32, #tpu.memory_space<vmem>>, %arg4: memref<1x128xf32, #tpu.memory_space<vmem>>, %arg5: memref<96x128xf32, #tpu.memory_space<vmem>>, %arg6: memref<1x128xf32, #tpu.memory_space<vmem>>, %arg7: memref<96x128xf32, #tpu.memory_space<vmem>>, %arg8: memref<1x128xf32, #tpu.memory_space<vmem>>, %arg9: memref<64x32xf32, #tpu.memory_space<vmem>>, %arg10: memref<1x32xf32, #tpu.memory_space<vmem>>, %arg11: memref<32x6xf32, #tpu.memory_space<vmem>>, %arg12: memref<1x6xf32, #tpu.memory_space<vmem>>, %arg13: memref<4x6xf32, #tpu.memory_space<vmem>>, %arg14: memref<8x4x32xf32, #tpu.memory_space<vmem>>, %arg15: memref<8x4x32xf32, #tpu.memory_space<vmem>>) attributes {dimension_semantics = [], scalar_prefetch = 0 : i64, scratch_operands = 2 : i64, tpu.core_type = #tpu.core_type<tc>} {
    %c0 = arith.constant 0 : index
    %c0_0 = arith.constant 0 : index
    %0 = vector.load %arg1[%c0, %c0_0] : memref<64x128xf32, #tpu.memory_space<vmem>>, vector<64x128xf32>
    %c0_1 = arith.constant 0 : index
    %c0_2 = arith.constant 0 : index
    %1 = vector.load %arg2[%c0_1, %c0_2] : memref<1x128xf32, #tpu.memory_space<vmem>>, vector<1x128xf32>
    %2 = vector.shape_cast %1 : vector<1x128xf32> to vector<1x128xf32>
    %3 = vector.broadcast %2 : vector<1x128xf32> to vector<4x128xf32>
    %cst = arith.constant 0.000000e+00 : f32
    %4 = vector.broadcast %cst : f32 to vector<4x32xf32>
    %c0_i32 = arith.constant 0 : i32
    %5 = arith.index_cast %c0_i32 : i32 to index
    %c0_3 = arith.constant 0 : index
    %c0_4 = arith.constant 0 : index
    %6 = vector.load %arg0[%5, %c0_3, %c0_4] : memref<8x4x32xf32, #tpu.memory_space<vmem>>, vector<1x4x32xf32>
    %7 = vector.shape_cast %6 : vector<1x4x32xf32> to vector<4x32xf32>
    %8 = tpu.concatenate %7, %4 in 1 : vector<4x32xf32>, vector<4x32xf32> -> vector<4x64xf32>
    %cst_5 = arith.constant dense<0.000000e+00> : vector<4x128xf32>
    %9 = tpu.matmul %8, %0, %cst_5 {dimension_numbers = #tpu.dot_dimension_numbers<[1], [0], [0], [1], [0, 0, 1, 1], [], []>} : vector<4x64xf32>, vector<64x128xf32>, vector<4x128xf32> -> vector<4x128xf32>
    %10 = arith.addf %9, %3 : vector<4x128xf32>
    %11 = vector.extract_strided_slice %10 {offsets = [0, 0], sizes = [4, 32], strides = [1, 1]} : vector<4x128xf32> to vector<4x32xf32>
    %12 = arith.negf %11 : vector<4x32xf32>
    %13 = math.exp %12 : vector<4x32xf32>
    %cst_6 = arith.constant 1.000000e+00 : f32
    %14 = vector.broadcast %cst_6 : f32 to vector<4x32xf32>
    %15 = arith.addf %14, %13 : vector<4x32xf32>
    %16 = arith.divf %14, %15 : vector<4x32xf32>
    %17 = vector.extract_strided_slice %10 {offsets = [0, 32], sizes = [4, 32], strides = [1, 1]} : vector<4x128xf32> to vector<4x32xf32>
    %18 = arith.negf %17 : vector<4x32xf32>
    %19 = math.exp %18 : vector<4x32xf32>
    %cst_7 = arith.constant 1.000000e+00 : f32
    %20 = vector.broadcast %cst_7 : f32 to vector<4x32xf32>
    %21 = arith.addf %20, %19 : vector<4x32xf32>
    %22 = arith.divf %20, %21 : vector<4x32xf32>
    %23 = vector.extract_strided_slice %10 {offsets = [0, 64], sizes = [4, 32], strides = [1, 1]} : vector<4x128xf32> to vector<4x32xf32>
    %24 = math.tanh %23 : vector<4x32xf32>
    %25 = vector.extract_strided_slice %10 {offsets = [0, 96], sizes = [4, 32], strides = [1, 1]} : vector<4x128xf32> to vector<4x32xf32>
    %26 = arith.negf %25 : vector<4x32xf32>
    %27 = math.exp %26 : vector<4x32xf32>
    %cst_8 = arith.constant 1.000000e+00 : f32
    %28 = vector.broadcast %cst_8 : f32 to vector<4x32xf32>
    %29 = arith.addf %28, %27 : vector<4x32xf32>
    %30 = arith.divf %28, %29 : vector<4x32xf32>
    %31 = arith.mulf %22, %4 : vector<4x32xf32>
    %32 = arith.mulf %16, %24 : vector<4x32xf32>
    %33 = arith.addf %31, %32 : vector<4x32xf32>
    %34 = math.tanh %33 : vector<4x32xf32>
    %35 = arith.mulf %30, %34 : vector<4x32xf32>
    %36 = arith.index_cast %c0_i32 : i32 to index
    %c0_9 = arith.constant 0 : index
    %c0_10 = arith.constant 0 : index
    %37 = vector.load %arg14[%36, %c0_9, %c0_10] : memref<8x4x32xf32, #tpu.memory_space<vmem>>, vector<1x4x32xf32>
    %38 = vector.shape_cast %37 : vector<1x4x32xf32> to vector<4x32xf32>
    %39 = vector.shape_cast %35 : vector<4x32xf32> to vector<1x4x32xf32>
    tpu.vector_store %arg14[%36, %c0_9, %c0_10], %39 {strides = array<i32>} : memref<8x4x32xf32, #tpu.memory_space<vmem>>, vector<1x4x32xf32>,
    %c1_i32 = arith.constant 1 : i32
    %40 = arith.index_cast %c1_i32 : i32 to index
    %c0_11 = arith.constant 0 : index
    %c0_12 = arith.constant 0 : index
    %41 = vector.load %arg0[%40, %c0_11, %c0_12] : memref<8x4x32xf32, #tpu.memory_space<vmem>>, vector<1x4x32xf32>
    %42 = vector.shape_cast %41 : vector<1x4x32xf32> to vector<4x32xf32>
    %43 = tpu.concatenate %42, %35 in 1 : vector<4x32xf32>, vector<4x32xf32> -> vector<4x64xf32>
    %cst_13 = arith.constant dense<0.000000e+00> : vector<4x128xf32>
    %44 = tpu.matmul %43, %0, %cst_13 {dimension_numbers = #tpu.dot_dimension_numbers<[1], [0], [0], [1], [0, 0, 1, 1], [], []>} : vector<4x64xf32>, vector<64x128xf32>, vector<4x128xf32> -> vector<4x128xf32>
    %45 = arith.addf %44, %3 : vector<4x128xf32>
    %46 = vector.extract_strided_slice %45 {offsets = [0, 0], sizes = [4, 32], strides = [1, 1]} : vector<4x128xf32> to vector<4x32xf32>
    %47 = arith.negf %46 : vector<4x32xf32>
    %48 = math.exp %47 : vector<4x32xf32>
    %cst_14 = arith.constant 1.000000e+00 : f32
    %49 = vector.broadcast %cst_14 : f32 to vector<4x32xf32>
    %50 = arith.addf %49, %48 : vector<4x32xf32>
    %51 = arith.divf %49, %50 : vector<4x32xf32>
    %52 = vector.extract_strided_slice %45 {offsets = [0, 32], sizes = [4, 32], strides = [1, 1]} : vector<4x128xf32> to vector<4x32xf32>
    %53 = arith.negf %52 : vector<4x32xf32>
    %54 = math.exp %53 : vector<4x32xf32>
    %cst_15 = arith.constant 1.000000e+00 : f32
    %55 = vector.broadcast %cst_15 : f32 to vector<4x32xf32>
    %56 = arith.addf %55, %54 : vector<4x32xf32>
    %57 = arith.divf %55, %56 : vector<4x32xf32>
    %58 = vector.extract_strided_slice %45 {offsets = [0, 64], sizes = [4, 32], strides = [1, 1]} : vector<4x128xf32> to vector<4x32xf32>
    %59 = math.tanh %58 : vector<4x32xf32>
    %60 = vector.extract_strided_slice %45 {offsets = [0, 96], sizes = [4, 32], strides = [1, 1]} : vector<4x128xf32> to vector<4x32xf32>
    %61 = arith.negf %60 : vector<4x32xf32>
    %62 = math.exp %61 : vector<4x32xf32>
    %cst_16 = arith.constant 1.000000e+00 : f32
    %63 = vector.broadcast %cst_16 : f32 to vector<4x32xf32>
    %64 = arith.addf %63, %62 : vector<4x32xf32>
    %65 = arith.divf %63, %64 : vector<4x32xf32>
    %66 = arith.mulf %57, %33 : vector<4x32xf32>
    %67 = arith.mulf %51, %59 : vector<4x32xf32>
    %68 = arith.addf %66, %67 : vector<4x32xf32>
    %69 = math.tanh %68 : vector<4x32xf32>
    %70 = arith.mulf %65, %69 : vector<4x32xf32>
    %71 = arith.index_cast %c1_i32 : i32 to index
    %c0_17 = arith.constant 0 : index
    %c0_18 = arith.constant 0 : index
    %72 = vector.load %arg14[%71, %c0_17, %c0_18] : memref<8x4x32xf32, #tpu.memory_space<vmem>>, vector<1x4x32xf32>
    %73 = vector.shape_cast %72 : vector<1x4x32xf32> to vector<4x32xf32>
    %74 = vector.shape_cast %70 : vector<4x32xf32> to vector<1x4x32xf32>
    tpu.vector_store %arg14[%71, %c0_17, %c0_18], %74 {strides = array<i32>} : memref<8x4x32xf32, #tpu.memory_space<vmem>>, vector<1x4x32xf32>,
    %c2_i32 = arith.constant 2 : i32
    %75 = arith.index_cast %c2_i32 : i32 to index
    %c0_19 = arith.constant 0 : index
    %c0_20 = arith.constant 0 : index
    %76 = vector.load %arg0[%75, %c0_19, %c0_20] : memref<8x4x32xf32, #tpu.memory_space<vmem>>, vector<1x4x32xf32>
    %77 = vector.shape_cast %76 : vector<1x4x32xf32> to vector<4x32xf32>
    %78 = tpu.concatenate %77, %70 in 1 : vector<4x32xf32>, vector<4x32xf32> -> vector<4x64xf32>
    %cst_21 = arith.constant dense<0.000000e+00> : vector<4x128xf32>
    %79 = tpu.matmul %78, %0, %cst_21 {dimension_numbers = #tpu.dot_dimension_numbers<[1], [0], [0], [1], [0, 0, 1, 1], [], []>} : vector<4x64xf32>, vector<64x128xf32>, vector<4x128xf32> -> vector<4x128xf32>
    %80 = arith.addf %79, %3 : vector<4x128xf32>
    %81 = vector.extract_strided_slice %80 {offsets = [0, 0], sizes = [4, 32], strides = [1, 1]} : vector<4x128xf32> to vector<4x32xf32>
    %82 = arith.negf %81 : vector<4x32xf32>
    %83 = math.exp %82 : vector<4x32xf32>
    %cst_22 = arith.constant 1.000000e+00 : f32
    %84 = vector.broadcast %cst_22 : f32 to vector<4x32xf32>
    %85 = arith.addf %84, %83 : vector<4x32xf32>
    %86 = arith.divf %84, %85 : vector<4x32xf32>
    %87 = vector.extract_strided_slice %80 {offsets = [0, 32], sizes = [4, 32], strides = [1, 1]} : vector<4x128xf32> to vector<4x32xf32>
    %88 = arith.negf %87 : vector<4x32xf32>
    %89 = math.exp %88 : vector<4x32xf32>
    %cst_23 = arith.constant 1.000000e+00 : f32
    %90 = vector.broadcast %cst_23 : f32 to vector<4x32xf32>
    %91 = arith.addf %90, %89 : vector<4x32xf32>
    %92 = arith.divf %90, %91 : vector<4x32xf32>
    %93 = vector.extract_strided_slice %80 {offsets = [0, 64], sizes = [4, 32], strides = [1, 1]} : vector<4x128xf32> to vector<4x32xf32>
    %94 = math.tanh %93 : vector<4x32xf32>
    %95 = vector.extract_strided_slice %80 {offsets = [0, 96], sizes = [4, 32], strides = [1, 1]} : vector<4x128xf32> to vector<4x32xf32>
    %96 = arith.negf %95 : vector<4x32xf32>
    %97 = math.exp %96 : vector<4x32xf32>
    %cst_24 = arith.constant 1.000000e+00 : f32
    %98 = vector.broadcast %cst_24 : f32 to vector<4x32xf32>
    %99 = arith.addf %98, %97 : vector<4x32xf32>
    %100 = arith.divf %98, %99 : vector<4x32xf32>
    %101 = arith.mulf %92, %68 : vector<4x32xf32>
    %102 = arith.mulf %86, %94 : vector<4x32xf32>
    %103 = arith.addf %101, %102 : vector<4x32xf32>
    %104 = math.tanh %103 : vector<4x32xf32>
    %105 = arith.mulf %100, %104 : vector<4x32xf32>
    %106 = arith.index_cast %c2_i32 : i32 to index
    %c0_25 = arith.constant 0 : index
    %c0_26 = arith.constant 0 : index
    %107 = vector.load %arg14[%106, %c0_25, %c0_26] : memref<8x4x32xf32, #tpu.memory_space<vmem>>, vector<1x4x32xf32>
    %108 = vector.shape_cast %107 : vector<1x4x32xf32> to vector<4x32xf32>
    %109 = vector.shape_cast %105 : vector<4x32xf32> to vector<1x4x32xf32>
    tpu.vector_store %arg14[%106, %c0_25, %c0_26], %109 {strides = array<i32>} : memref<8x4x32xf32, #tpu.memory_space<vmem>>, vector<1x4x32xf32>,
    %c3_i32 = arith.constant 3 : i32
    %110 = arith.index_cast %c3_i32 : i32 to index
    %c0_27 = arith.constant 0 : index
    %c0_28 = arith.constant 0 : index
    %111 = vector.load %arg0[%110, %c0_27, %c0_28] : memref<8x4x32xf32, #tpu.memory_space<vmem>>, vector<1x4x32xf32>
    %112 = vector.shape_cast %111 : vector<1x4x32xf32> to vector<4x32xf32>
    %113 = tpu.concatenate %112, %105 in 1 : vector<4x32xf32>, vector<4x32xf32> -> vector<4x64xf32>
    %cst_29 = arith.constant dense<0.000000e+00> : vector<4x128xf32>
    %114 = tpu.matmul %113, %0, %cst_29 {dimension_numbers = #tpu.dot_dimension_numbers<[1], [0], [0], [1], [0, 0, 1, 1], [], []>} : vector<4x64xf32>, vector<64x128xf32>, vector<4x128xf32> -> vector<4x128xf32>
    %115 = arith.addf %114, %3 : vector<4x128xf32>
    %116 = vector.extract_strided_slice %115 {offsets = [0, 0], sizes = [4, 32], strides = [1, 1]} : vector<4x128xf32> to vector<4x32xf32>
    %117 = arith.negf %116 : vector<4x32xf32>
    %118 = math.exp %117 : vector<4x32xf32>
    %cst_30 = arith.constant 1.000000e+00 : f32
    %119 = vector.broadcast %cst_30 : f32 to vector<4x32xf32>
    %120 = arith.addf %119, %118 : vector<4x32xf32>
    %121 = arith.divf %119, %120 : vector<4x32xf32>
    %122 = vector.extract_strided_slice %115 {offsets = [0, 32], sizes = [4, 32], strides = [1, 1]} : vector<4x128xf32> to vector<4x32xf32>
    %123 = arith.negf %122 : vector<4x32xf32>
    %124 = math.exp %123 : vector<4x32xf32>
    %cst_31 = arith.constant 1.000000e+00 : f32
    %125 = vector.broadcast %cst_31 : f32 to vector<4x32xf32>
    %126 = arith.addf %125, %124 : vector<4x32xf32>
    %127 = arith.divf %125, %126 : vector<4x32xf32>
    %128 = vector.extract_strided_slice %115 {offsets = [0, 64], sizes = [4, 32], strides = [1, 1]} : vector<4x128xf32> to vector<4x32xf32>
    %129 = math.tanh %128 : vector<4x32xf32>
    %130 = vector.extract_strided_slice %115 {offsets = [0, 96], sizes = [4, 32], strides = [1, 1]} : vector<4x128xf32> to vector<4x32xf32>
    %131 = arith.negf %130 : vector<4x32xf32>
    %132 = math.exp %131 : vector<4x32xf32>
    %cst_32 = arith.constant 1.000000e+00 : f32
    %133 = vector.broadcast %cst_32 : f32 to vector<4x32xf32>
    %134 = arith.addf %133, %132 : vector<4x32xf32>
    %135 = arith.divf %133, %134 : vector<4x32xf32>
    %136 = arith.mulf %127, %103 : vector<4x32xf32>
    %137 = arith.mulf %121, %129 : vector<4x32xf32>
    %138 = arith.addf %136, %137 : vector<4x32xf32>
    %139 = math.tanh %138 : vector<4x32xf32>
    %140 = arith.mulf %135, %139 : vector<4x32xf32>
    %141 = arith.index_cast %c3_i32 : i32 to index
    %c0_33 = arith.constant 0 : index
    %c0_34 = arith.constant 0 : index
    %142 = vector.load %arg14[%141, %c0_33, %c0_34] : memref<8x4x32xf32, #tpu.memory_space<vmem>>, vector<1x4x32xf32>
    %143 = vector.shape_cast %142 : vector<1x4x32xf32> to vector<4x32xf32>
    %144 = vector.shape_cast %140 : vector<4x32xf32> to vector<1x4x32xf32>
    tpu.vector_store %arg14[%141, %c0_33, %c0_34], %144 {strides = array<i32>} : memref<8x4x32xf32, #tpu.memory_space<vmem>>, vector<1x4x32xf32>,
    %c4_i32 = arith.constant 4 : i32
    %145 = arith.index_cast %c4_i32 : i32 to index
    %c0_35 = arith.constant 0 : index
    %c0_36 = arith.constant 0 : index
    %146 = vector.load %arg0[%145, %c0_35, %c0_36] : memref<8x4x32xf32, #tpu.memory_space<vmem>>, vector<1x4x32xf32>
    %147 = vector.shape_cast %146 : vector<1x4x32xf32> to vector<4x32xf32>
    %148 = tpu.concatenate %147, %140 in 1 : vector<4x32xf32>, vector<4x32xf32> -> vector<4x64xf32>
    %cst_37 = arith.constant dense<0.000000e+00> : vector<4x128xf32>
    %149 = tpu.matmul %148, %0, %cst_37 {dimension_numbers = #tpu.dot_dimension_numbers<[1], [0], [0], [1], [0, 0, 1, 1], [], []>} : vector<4x64xf32>, vector<64x128xf32>, vector<4x128xf32> -> vector<4x128xf32>
    %150 = arith.addf %149, %3 : vector<4x128xf32>
    %151 = vector.extract_strided_slice %150 {offsets = [0, 0], sizes = [4, 32], strides = [1, 1]} : vector<4x128xf32> to vector<4x32xf32>
    %152 = arith.negf %151 : vector<4x32xf32>
    %153 = math.exp %152 : vector<4x32xf32>
    %cst_38 = arith.constant 1.000000e+00 : f32
    %154 = vector.broadcast %cst_38 : f32 to vector<4x32xf32>
    %155 = arith.addf %154, %153 : vector<4x32xf32>
    %156 = arith.divf %154, %155 : vector<4x32xf32>
    %157 = vector.extract_strided_slice %150 {offsets = [0, 32], sizes = [4, 32], strides = [1, 1]} : vector<4x128xf32> to vector<4x32xf32>
    %158 = arith.negf %157 : vector<4x32xf32>
    %159 = math.exp %158 : vector<4x32xf32>
    %cst_39 = arith.constant 1.000000e+00 : f32
    %160 = vector.broadcast %cst_39 : f32 to vector<4x32xf32>
    %161 = arith.addf %160, %159 : vector<4x32xf32>
    %162 = arith.divf %160, %161 : vector<4x32xf32>
    %163 = vector.extract_strided_slice %150 {offsets = [0, 64], sizes = [4, 32], strides = [1, 1]} : vector<4x128xf32> to vector<4x32xf32>
    %164 = math.tanh %163 : vector<4x32xf32>
    %165 = vector.extract_strided_slice %150 {offsets = [0, 96], sizes = [4, 32], strides = [1, 1]} : vector<4x128xf32> to vector<4x32xf32>
    %166 = arith.negf %165 : vector<4x32xf32>
    %167 = math.exp %166 : vector<4x32xf32>
    %cst_40 = arith.constant 1.000000e+00 : f32
    %168 = vector.broadcast %cst_40 : f32 to vector<4x32xf32>
    %169 = arith.addf %168, %167 : vector<4x32xf32>
    %170 = arith.divf %168, %169 : vector<4x32xf32>
    %171 = arith.mulf %162, %138 : vector<4x32xf32>
    %172 = arith.mulf %156, %164 : vector<4x32xf32>
    %173 = arith.addf %171, %172 : vector<4x32xf32>
    %174 = math.tanh %173 : vector<4x32xf32>
    %175 = arith.mulf %170, %174 : vector<4x32xf32>
    %176 = arith.index_cast %c4_i32 : i32 to index
    %c0_41 = arith.constant 0 : index
    %c0_42 = arith.constant 0 : index
    %177 = vector.load %arg14[%176, %c0_41, %c0_42] : memref<8x4x32xf32, #tpu.memory_space<vmem>>, vector<1x4x32xf32>
    %178 = vector.shape_cast %177 : vector<1x4x32xf32> to vector<4x32xf32>
    %179 = vector.shape_cast %175 : vector<4x32xf32> to vector<1x4x32xf32>
    tpu.vector_store %arg14[%176, %c0_41, %c0_42], %179 {strides = array<i32>} : memref<8x4x32xf32, #tpu.memory_space<vmem>>, vector<1x4x32xf32>,
    %c5_i32 = arith.constant 5 : i32
    %180 = arith.index_cast %c5_i32 : i32 to index
    %c0_43 = arith.constant 0 : index
    %c0_44 = arith.constant 0 : index
    %181 = vector.load %arg0[%180, %c0_43, %c0_44] : memref<8x4x32xf32, #tpu.memory_space<vmem>>, vector<1x4x32xf32>
    %182 = vector.shape_cast %181 : vector<1x4x32xf32> to vector<4x32xf32>
    %183 = tpu.concatenate %182, %175 in 1 : vector<4x32xf32>, vector<4x32xf32> -> vector<4x64xf32>
    %cst_45 = arith.constant dense<0.000000e+00> : vector<4x128xf32>
    %184 = tpu.matmul %183, %0, %cst_45 {dimension_numbers = #tpu.dot_dimension_numbers<[1], [0], [0], [1], [0, 0, 1, 1], [], []>} : vector<4x64xf32>, vector<64x128xf32>, vector<4x128xf32> -> vector<4x128xf32>
    %185 = arith.addf %184, %3 : vector<4x128xf32>
    %186 = vector.extract_strided_slice %185 {offsets = [0, 0], sizes = [4, 32], strides = [1, 1]} : vector<4x128xf32> to vector<4x32xf32>
    %187 = arith.negf %186 : vector<4x32xf32>
    %188 = math.exp %187 : vector<4x32xf32>
    %cst_46 = arith.constant 1.000000e+00 : f32
    %189 = vector.broadcast %cst_46 : f32 to vector<4x32xf32>
    %190 = arith.addf %189, %188 : vector<4x32xf32>
    %191 = arith.divf %189, %190 : vector<4x32xf32>
    %192 = vector.extract_strided_slice %185 {offsets = [0, 32], sizes = [4, 32], strides = [1, 1]} : vector<4x128xf32> to vector<4x32xf32>
    %193 = arith.negf %192 : vector<4x32xf32>
    %194 = math.exp %193 : vector<4x32xf32>
    %cst_47 = arith.constant 1.000000e+00 : f32
    %195 = vector.broadcast %cst_47 : f32 to vector<4x32xf32>
    %196 = arith.addf %195, %194 : vector<4x32xf32>
    %197 = arith.divf %195, %196 : vector<4x32xf32>
    %198 = vector.extract_strided_slice %185 {offsets = [0, 64], sizes = [4, 32], strides = [1, 1]} : vector<4x128xf32> to vector<4x32xf32>
    %199 = math.tanh %198 : vector<4x32xf32>
    %200 = vector.extract_strided_slice %185 {offsets = [0, 96], sizes = [4, 32], strides = [1, 1]} : vector<4x128xf32> to vector<4x32xf32>
    %201 = arith.negf %200 : vector<4x32xf32>
    %202 = math.exp %201 : vector<4x32xf32>
    %cst_48 = arith.constant 1.000000e+00 : f32
    %203 = vector.broadcast %cst_48 : f32 to vector<4x32xf32>
    %204 = arith.addf %203, %202 : vector<4x32xf32>
    %205 = arith.divf %203, %204 : vector<4x32xf32>
    %206 = arith.mulf %197, %173 : vector<4x32xf32>
    %207 = arith.mulf %191, %199 : vector<4x32xf32>
    %208 = arith.addf %206, %207 : vector<4x32xf32>
    %209 = math.tanh %208 : vector<4x32xf32>
    %210 = arith.mulf %205, %209 : vector<4x32xf32>
    %211 = arith.index_cast %c5_i32 : i32 to index
    %c0_49 = arith.constant 0 : index
    %c0_50 = arith.constant 0 : index
    %212 = vector.load %arg14[%211, %c0_49, %c0_50] : memref<8x4x32xf32, #tpu.memory_space<vmem>>, vector<1x4x32xf32>
    %213 = vector.shape_cast %212 : vector<1x4x32xf32> to vector<4x32xf32>
    %214 = vector.shape_cast %210 : vector<4x32xf32> to vector<1x4x32xf32>
    tpu.vector_store %arg14[%211, %c0_49, %c0_50], %214 {strides = array<i32>} : memref<8x4x32xf32, #tpu.memory_space<vmem>>, vector<1x4x32xf32>,
    %c6_i32 = arith.constant 6 : i32
    %215 = arith.index_cast %c6_i32 : i32 to index
    %c0_51 = arith.constant 0 : index
    %c0_52 = arith.constant 0 : index
    %216 = vector.load %arg0[%215, %c0_51, %c0_52] : memref<8x4x32xf32, #tpu.memory_space<vmem>>, vector<1x4x32xf32>
    %217 = vector.shape_cast %216 : vector<1x4x32xf32> to vector<4x32xf32>
    %218 = tpu.concatenate %217, %210 in 1 : vector<4x32xf32>, vector<4x32xf32> -> vector<4x64xf32>
    %cst_53 = arith.constant dense<0.000000e+00> : vector<4x128xf32>
    %219 = tpu.matmul %218, %0, %cst_53 {dimension_numbers = #tpu.dot_dimension_numbers<[1], [0], [0], [1], [0, 0, 1, 1], [], []>} : vector<4x64xf32>, vector<64x128xf32>, vector<4x128xf32> -> vector<4x128xf32>
    %220 = arith.addf %219, %3 : vector<4x128xf32>
    %221 = vector.extract_strided_slice %220 {offsets = [0, 0], sizes = [4, 32], strides = [1, 1]} : vector<4x128xf32> to vector<4x32xf32>
    %222 = arith.negf %221 : vector<4x32xf32>
    %223 = math.exp %222 : vector<4x32xf32>
    %cst_54 = arith.constant 1.000000e+00 : f32
    %224 = vector.broadcast %cst_54 : f32 to vector<4x32xf32>
    %225 = arith.addf %224, %223 : vector<4x32xf32>
    %226 = arith.divf %224, %225 : vector<4x32xf32>
    %227 = vector.extract_strided_slice %220 {offsets = [0, 32], sizes = [4, 32], strides = [1, 1]} : vector<4x128xf32> to vector<4x32xf32>
    %228 = arith.negf %227 : vector<4x32xf32>
    %229 = math.exp %228 : vector<4x32xf32>
    %cst_55 = arith.constant 1.000000e+00 : f32
    %230 = vector.broadcast %cst_55 : f32 to vector<4x32xf32>
    %231 = arith.addf %230, %229 : vector<4x32xf32>
    %232 = arith.divf %230, %231 : vector<4x32xf32>
    %233 = vector.extract_strided_slice %220 {offsets = [0, 64], sizes = [4, 32], strides = [1, 1]} : vector<4x128xf32> to vector<4x32xf32>
    %234 = math.tanh %233 : vector<4x32xf32>
    %235 = vector.extract_strided_slice %220 {offsets = [0, 96], sizes = [4, 32], strides = [1, 1]} : vector<4x128xf32> to vector<4x32xf32>
    %236 = arith.negf %235 : vector<4x32xf32>
    %237 = math.exp %236 : vector<4x32xf32>
    %cst_56 = arith.constant 1.000000e+00 : f32
    %238 = vector.broadcast %cst_56 : f32 to vector<4x32xf32>
    %239 = arith.addf %238, %237 : vector<4x32xf32>
    %240 = arith.divf %238, %239 : vector<4x32xf32>
    %241 = arith.mulf %232, %208 : vector<4x32xf32>
    %242 = arith.mulf %226, %234 : vector<4x32xf32>
    %243 = arith.addf %241, %242 : vector<4x32xf32>
    %244 = math.tanh %243 : vector<4x32xf32>
    %245 = arith.mulf %240, %244 : vector<4x32xf32>
    %246 = arith.index_cast %c6_i32 : i32 to index
    %c0_57 = arith.constant 0 : index
    %c0_58 = arith.constant 0 : index
    %247 = vector.load %arg14[%246, %c0_57, %c0_58] : memref<8x4x32xf32, #tpu.memory_space<vmem>>, vector<1x4x32xf32>
    %248 = vector.shape_cast %247 : vector<1x4x32xf32> to vector<4x32xf32>
    %249 = vector.shape_cast %245 : vector<4x32xf32> to vector<1x4x32xf32>
    tpu.vector_store %arg14[%246, %c0_57, %c0_58], %249 {strides = array<i32>} : memref<8x4x32xf32, #tpu.memory_space<vmem>>, vector<1x4x32xf32>,
    %c7_i32 = arith.constant 7 : i32
    %250 = arith.index_cast %c7_i32 : i32 to index
    %c0_59 = arith.constant 0 : index
    %c0_60 = arith.constant 0 : index
    %251 = vector.load %arg0[%250, %c0_59, %c0_60] : memref<8x4x32xf32, #tpu.memory_space<vmem>>, vector<1x4x32xf32>
    %252 = vector.shape_cast %251 : vector<1x4x32xf32> to vector<4x32xf32>
    %253 = tpu.concatenate %252, %245 in 1 : vector<4x32xf32>, vector<4x32xf32> -> vector<4x64xf32>
    %cst_61 = arith.constant dense<0.000000e+00> : vector<4x128xf32>
    %254 = tpu.matmul %253, %0, %cst_61 {dimension_numbers = #tpu.dot_dimension_numbers<[1], [0], [0], [1], [0, 0, 1, 1], [], []>} : vector<4x64xf32>, vector<64x128xf32>, vector<4x128xf32> -> vector<4x128xf32>
    %255 = arith.addf %254, %3 : vector<4x128xf32>
    %256 = vector.extract_strided_slice %255 {offsets = [0, 0], sizes = [4, 32], strides = [1, 1]} : vector<4x128xf32> to vector<4x32xf32>
    %257 = arith.negf %256 : vector<4x32xf32>
    %258 = math.exp %257 : vector<4x32xf32>
    %cst_62 = arith.constant 1.000000e+00 : f32
    %259 = vector.broadcast %cst_62 : f32 to vector<4x32xf32>
    %260 = arith.addf %259, %258 : vector<4x32xf32>
    %261 = arith.divf %259, %260 : vector<4x32xf32>
    %262 = vector.extract_strided_slice %255 {offsets = [0, 32], sizes = [4, 32], strides = [1, 1]} : vector<4x128xf32> to vector<4x32xf32>
    %263 = arith.negf %262 : vector<4x32xf32>
    %264 = math.exp %263 : vector<4x32xf32>
    %cst_63 = arith.constant 1.000000e+00 : f32
    %265 = vector.broadcast %cst_63 : f32 to vector<4x32xf32>
    %266 = arith.addf %265, %264 : vector<4x32xf32>
    %267 = arith.divf %265, %266 : vector<4x32xf32>
    %268 = vector.extract_strided_slice %255 {offsets = [0, 64], sizes = [4, 32], strides = [1, 1]} : vector<4x128xf32> to vector<4x32xf32>
    %269 = math.tanh %268 : vector<4x32xf32>
    %270 = vector.extract_strided_slice %255 {offsets = [0, 96], sizes = [4, 32], strides = [1, 1]} : vector<4x128xf32> to vector<4x32xf32>
    %271 = arith.negf %270 : vector<4x32xf32>
    %272 = math.exp %271 : vector<4x32xf32>
    %cst_64 = arith.constant 1.000000e+00 : f32
    %273 = vector.broadcast %cst_64 : f32 to vector<4x32xf32>
    %274 = arith.addf %273, %272 : vector<4x32xf32>
    %275 = arith.divf %273, %274 : vector<4x32xf32>
    %276 = arith.mulf %267, %243 : vector<4x32xf32>
    %277 = arith.mulf %261, %269 : vector<4x32xf32>
    %278 = arith.addf %276, %277 : vector<4x32xf32>
    %279 = math.tanh %278 : vector<4x32xf32>
    %280 = arith.mulf %275, %279 : vector<4x32xf32>
    %281 = arith.index_cast %c7_i32 : i32 to index
    %c0_65 = arith.constant 0 : index
    %c0_66 = arith.constant 0 : index
    %282 = vector.load %arg14[%281, %c0_65, %c0_66] : memref<8x4x32xf32, #tpu.memory_space<vmem>>, vector<1x4x32xf32>
    %283 = vector.shape_cast %282 : vector<1x4x32xf32> to vector<4x32xf32>
    %284 = vector.shape_cast %280 : vector<4x32xf32> to vector<1x4x32xf32>
    tpu.vector_store %arg14[%281, %c0_65, %c0_66], %284 {strides = array<i32>} : memref<8x4x32xf32, #tpu.memory_space<vmem>>, vector<1x4x32xf32>,
    %c8_i32 = arith.constant 8 : i32
    %c0_67 = arith.constant 0 : index
    %c0_68 = arith.constant 0 : index
    %285 = vector.load %arg3[%c0_67, %c0_68] : memref<64x128xf32, #tpu.memory_space<vmem>>, vector<64x128xf32>
    %c0_69 = arith.constant 0 : index
    %c0_70 = arith.constant 0 : index
    %286 = vector.load %arg4[%c0_69, %c0_70] : memref<1x128xf32, #tpu.memory_space<vmem>>, vector<1x128xf32>
    %287 = vector.shape_cast %286 : vector<1x128xf32> to vector<1x128xf32>
    %288 = vector.broadcast %287 : vector<1x128xf32> to vector<4x128xf32>
    %cst_71 = arith.constant 0.000000e+00 : f32
    %289 = vector.broadcast %cst_71 : f32 to vector<4x32xf32>
    %c0_i32_72 = arith.constant 0 : i32
    %c7_i32_73 = arith.constant 7 : i32
    %290 = arith.subi %c7_i32_73, %c0_i32_72 : i32
    %291 = arith.index_cast %290 : i32 to index
    %c0_74 = arith.constant 0 : index
    %c0_75 = arith.constant 0 : index
    %292 = vector.load %arg0[%291, %c0_74, %c0_75] : memref<8x4x32xf32, #tpu.memory_space<vmem>>, vector<1x4x32xf32>
    %293 = vector.shape_cast %292 : vector<1x4x32xf32> to vector<4x32xf32>
    %294 = tpu.concatenate %293, %289 in 1 : vector<4x32xf32>, vector<4x32xf32> -> vector<4x64xf32>
    %cst_76 = arith.constant dense<0.000000e+00> : vector<4x128xf32>
    %295 = tpu.matmul %294, %285, %cst_76 {dimension_numbers = #tpu.dot_dimension_numbers<[1], [0], [0], [1], [0, 0, 1, 1], [], []>} : vector<4x64xf32>, vector<64x128xf32>, vector<4x128xf32> -> vector<4x128xf32>
    %296 = arith.addf %295, %288 : vector<4x128xf32>
    %297 = vector.extract_strided_slice %296 {offsets = [0, 0], sizes = [4, 32], strides = [1, 1]} : vector<4x128xf32> to vector<4x32xf32>
    %298 = arith.negf %297 : vector<4x32xf32>
    %299 = math.exp %298 : vector<4x32xf32>
    %cst_77 = arith.constant 1.000000e+00 : f32
    %300 = vector.broadcast %cst_77 : f32 to vector<4x32xf32>
    %301 = arith.addf %300, %299 : vector<4x32xf32>
    %302 = arith.divf %300, %301 : vector<4x32xf32>
    %303 = vector.extract_strided_slice %296 {offsets = [0, 32], sizes = [4, 32], strides = [1, 1]} : vector<4x128xf32> to vector<4x32xf32>
    %304 = arith.negf %303 : vector<4x32xf32>
    %305 = math.exp %304 : vector<4x32xf32>
    %cst_78 = arith.constant 1.000000e+00 : f32
    %306 = vector.broadcast %cst_78 : f32 to vector<4x32xf32>
    %307 = arith.addf %306, %305 : vector<4x32xf32>
    %308 = arith.divf %306, %307 : vector<4x32xf32>
    %309 = vector.extract_strided_slice %296 {offsets = [0, 64], sizes = [4, 32], strides = [1, 1]} : vector<4x128xf32> to vector<4x32xf32>
    %310 = math.tanh %309 : vector<4x32xf32>
    %311 = vector.extract_strided_slice %296 {offsets = [0, 96], sizes = [4, 32], strides = [1, 1]} : vector<4x128xf32> to vector<4x32xf32>
    %312 = arith.negf %311 : vector<4x32xf32>
    %313 = math.exp %312 : vector<4x32xf32>
    %cst_79 = arith.constant 1.000000e+00 : f32
    %314 = vector.broadcast %cst_79 : f32 to vector<4x32xf32>
    %315 = arith.addf %314, %313 : vector<4x32xf32>
    %316 = arith.divf %314, %315 : vector<4x32xf32>
    %317 = arith.mulf %308, %289 : vector<4x32xf32>
    %318 = arith.mulf %302, %310 : vector<4x32xf32>
    %319 = arith.addf %317, %318 : vector<4x32xf32>
    %320 = math.tanh %319 : vector<4x32xf32>
    %321 = arith.mulf %316, %320 : vector<4x32xf32>
    %322 = arith.index_cast %290 : i32 to index
    %c0_80 = arith.constant 0 : index
    %c0_81 = arith.constant 0 : index
    %323 = vector.load %arg15[%322, %c0_80, %c0_81] : memref<8x4x32xf32, #tpu.memory_space<vmem>>, vector<1x4x32xf32>
    %324 = vector.shape_cast %323 : vector<1x4x32xf32> to vector<4x32xf32>
    %325 = vector.shape_cast %321 : vector<4x32xf32> to vector<1x4x32xf32>
    tpu.vector_store %arg15[%322, %c0_80, %c0_81], %325 {strides = array<i32>} : memref<8x4x32xf32, #tpu.memory_space<vmem>>, vector<1x4x32xf32>,
    %c1_i32_82 = arith.constant 1 : i32
    %c7_i32_83 = arith.constant 7 : i32
    %326 = arith.subi %c7_i32_83, %c1_i32_82 : i32
    %327 = arith.index_cast %326 : i32 to index
    %c0_84 = arith.constant 0 : index
    %c0_85 = arith.constant 0 : index
    %328 = vector.load %arg0[%327, %c0_84, %c0_85] : memref<8x4x32xf32, #tpu.memory_space<vmem>>, vector<1x4x32xf32>
    %329 = vector.shape_cast %328 : vector<1x4x32xf32> to vector<4x32xf32>
    %330 = tpu.concatenate %329, %321 in 1 : vector<4x32xf32>, vector<4x32xf32> -> vector<4x64xf32>
    %cst_86 = arith.constant dense<0.000000e+00> : vector<4x128xf32>
    %331 = tpu.matmul %330, %285, %cst_86 {dimension_numbers = #tpu.dot_dimension_numbers<[1], [0], [0], [1], [0, 0, 1, 1], [], []>} : vector<4x64xf32>, vector<64x128xf32>, vector<4x128xf32> -> vector<4x128xf32>
    %332 = arith.addf %331, %288 : vector<4x128xf32>
    %333 = vector.extract_strided_slice %332 {offsets = [0, 0], sizes = [4, 32], strides = [1, 1]} : vector<4x128xf32> to vector<4x32xf32>
    %334 = arith.negf %333 : vector<4x32xf32>
    %335 = math.exp %334 : vector<4x32xf32>
    %cst_87 = arith.constant 1.000000e+00 : f32
    %336 = vector.broadcast %cst_87 : f32 to vector<4x32xf32>
    %337 = arith.addf %336, %335 : vector<4x32xf32>
    %338 = arith.divf %336, %337 : vector<4x32xf32>
    %339 = vector.extract_strided_slice %332 {offsets = [0, 32], sizes = [4, 32], strides = [1, 1]} : vector<4x128xf32> to vector<4x32xf32>
    %340 = arith.negf %339 : vector<4x32xf32>
    %341 = math.exp %340 : vector<4x32xf32>
    %cst_88 = arith.constant 1.000000e+00 : f32
    %342 = vector.broadcast %cst_88 : f32 to vector<4x32xf32>
    %343 = arith.addf %342, %341 : vector<4x32xf32>
    %344 = arith.divf %342, %343 : vector<4x32xf32>
    %345 = vector.extract_strided_slice %332 {offsets = [0, 64], sizes = [4, 32], strides = [1, 1]} : vector<4x128xf32> to vector<4x32xf32>
    %346 = math.tanh %345 : vector<4x32xf32>
    %347 = vector.extract_strided_slice %332 {offsets = [0, 96], sizes = [4, 32], strides = [1, 1]} : vector<4x128xf32> to vector<4x32xf32>
    %348 = arith.negf %347 : vector<4x32xf32>
    %349 = math.exp %348 : vector<4x32xf32>
    %cst_89 = arith.constant 1.000000e+00 : f32
    %350 = vector.broadcast %cst_89 : f32 to vector<4x32xf32>
    %351 = arith.addf %350, %349 : vector<4x32xf32>
    %352 = arith.divf %350, %351 : vector<4x32xf32>
    %353 = arith.mulf %344, %319 : vector<4x32xf32>
    %354 = arith.mulf %338, %346 : vector<4x32xf32>
    %355 = arith.addf %353, %354 : vector<4x32xf32>
    %356 = math.tanh %355 : vector<4x32xf32>
    %357 = arith.mulf %352, %356 : vector<4x32xf32>
    %358 = arith.index_cast %326 : i32 to index
    %c0_90 = arith.constant 0 : index
    %c0_91 = arith.constant 0 : index
    %359 = vector.load %arg15[%358, %c0_90, %c0_91] : memref<8x4x32xf32, #tpu.memory_space<vmem>>, vector<1x4x32xf32>
    %360 = vector.shape_cast %359 : vector<1x4x32xf32> to vector<4x32xf32>
    %361 = vector.shape_cast %357 : vector<4x32xf32> to vector<1x4x32xf32>
    tpu.vector_store %arg15[%358, %c0_90, %c0_91], %361 {strides = array<i32>} : memref<8x4x32xf32, #tpu.memory_space<vmem>>, vector<1x4x32xf32>,
    %c2_i32_92 = arith.constant 2 : i32
    %c7_i32_93 = arith.constant 7 : i32
    %362 = arith.subi %c7_i32_93, %c2_i32_92 : i32
    %363 = arith.index_cast %362 : i32 to index
    %c0_94 = arith.constant 0 : index
    %c0_95 = arith.constant 0 : index
    %364 = vector.load %arg0[%363, %c0_94, %c0_95] : memref<8x4x32xf32, #tpu.memory_space<vmem>>, vector<1x4x32xf32>
    %365 = vector.shape_cast %364 : vector<1x4x32xf32> to vector<4x32xf32>
    %366 = tpu.concatenate %365, %357 in 1 : vector<4x32xf32>, vector<4x32xf32> -> vector<4x64xf32>
    %cst_96 = arith.constant dense<0.000000e+00> : vector<4x128xf32>
    %367 = tpu.matmul %366, %285, %cst_96 {dimension_numbers = #tpu.dot_dimension_numbers<[1], [0], [0], [1], [0, 0, 1, 1], [], []>} : vector<4x64xf32>, vector<64x128xf32>, vector<4x128xf32> -> vector<4x128xf32>
    %368 = arith.addf %367, %288 : vector<4x128xf32>
    %369 = vector.extract_strided_slice %368 {offsets = [0, 0], sizes = [4, 32], strides = [1, 1]} : vector<4x128xf32> to vector<4x32xf32>
    %370 = arith.negf %369 : vector<4x32xf32>
    %371 = math.exp %370 : vector<4x32xf32>
    %cst_97 = arith.constant 1.000000e+00 : f32
    %372 = vector.broadcast %cst_97 : f32 to vector<4x32xf32>
    %373 = arith.addf %372, %371 : vector<4x32xf32>
    %374 = arith.divf %372, %373 : vector<4x32xf32>
    %375 = vector.extract_strided_slice %368 {offsets = [0, 32], sizes = [4, 32], strides = [1, 1]} : vector<4x128xf32> to vector<4x32xf32>
    %376 = arith.negf %375 : vector<4x32xf32>
    %377 = math.exp %376 : vector<4x32xf32>
    %cst_98 = arith.constant 1.000000e+00 : f32
    %378 = vector.broadcast %cst_98 : f32 to vector<4x32xf32>
    %379 = arith.addf %378, %377 : vector<4x32xf32>
    %380 = arith.divf %378, %379 : vector<4x32xf32>
    %381 = vector.extract_strided_slice %368 {offsets = [0, 64], sizes = [4, 32], strides = [1, 1]} : vector<4x128xf32> to vector<4x32xf32>
    %382 = math.tanh %381 : vector<4x32xf32>
    %383 = vector.extract_strided_slice %368 {offsets = [0, 96], sizes = [4, 32], strides = [1, 1]} : vector<4x128xf32> to vector<4x32xf32>
    %384 = arith.negf %383 : vector<4x32xf32>
    %385 = math.exp %384 : vector<4x32xf32>
    %cst_99 = arith.constant 1.000000e+00 : f32
    %386 = vector.broadcast %cst_99 : f32 to vector<4x32xf32>
    %387 = arith.addf %386, %385 : vector<4x32xf32>
    %388 = arith.divf %386, %387 : vector<4x32xf32>
    %389 = arith.mulf %380, %355 : vector<4x32xf32>
    %390 = arith.mulf %374, %382 : vector<4x32xf32>
    %391 = arith.addf %389, %390 : vector<4x32xf32>
    %392 = math.tanh %391 : vector<4x32xf32>
    %393 = arith.mulf %388, %392 : vector<4x32xf32>
    %394 = arith.index_cast %362 : i32 to index
    %c0_100 = arith.constant 0 : index
    %c0_101 = arith.constant 0 : index
    %395 = vector.load %arg15[%394, %c0_100, %c0_101] : memref<8x4x32xf32, #tpu.memory_space<vmem>>, vector<1x4x32xf32>
    %396 = vector.shape_cast %395 : vector<1x4x32xf32> to vector<4x32xf32>
    %397 = vector.shape_cast %393 : vector<4x32xf32> to vector<1x4x32xf32>
    tpu.vector_store %arg15[%394, %c0_100, %c0_101], %397 {strides = array<i32>} : memref<8x4x32xf32, #tpu.memory_space<vmem>>, vector<1x4x32xf32>,
    %c3_i32_102 = arith.constant 3 : i32
    %c7_i32_103 = arith.constant 7 : i32
    %398 = arith.subi %c7_i32_103, %c3_i32_102 : i32
    %399 = arith.index_cast %398 : i32 to index
    %c0_104 = arith.constant 0 : index
    %c0_105 = arith.constant 0 : index
    %400 = vector.load %arg0[%399, %c0_104, %c0_105] : memref<8x4x32xf32, #tpu.memory_space<vmem>>, vector<1x4x32xf32>
    %401 = vector.shape_cast %400 : vector<1x4x32xf32> to vector<4x32xf32>
    %402 = tpu.concatenate %401, %393 in 1 : vector<4x32xf32>, vector<4x32xf32> -> vector<4x64xf32>
    %cst_106 = arith.constant dense<0.000000e+00> : vector<4x128xf32>
    %403 = tpu.matmul %402, %285, %cst_106 {dimension_numbers = #tpu.dot_dimension_numbers<[1], [0], [0], [1], [0, 0, 1, 1], [], []>} : vector<4x64xf32>, vector<64x128xf32>, vector<4x128xf32> -> vector<4x128xf32>
    %404 = arith.addf %403, %288 : vector<4x128xf32>
    %405 = vector.extract_strided_slice %404 {offsets = [0, 0], sizes = [4, 32], strides = [1, 1]} : vector<4x128xf32> to vector<4x32xf32>
    %406 = arith.negf %405 : vector<4x32xf32>
    %407 = math.exp %406 : vector<4x32xf32>
    %cst_107 = arith.constant 1.000000e+00 : f32
    %408 = vector.broadcast %cst_107 : f32 to vector<4x32xf32>
    %409 = arith.addf %408, %407 : vector<4x32xf32>
    %410 = arith.divf %408, %409 : vector<4x32xf32>
    %411 = vector.extract_strided_slice %404 {offsets = [0, 32], sizes = [4, 32], strides = [1, 1]} : vector<4x128xf32> to vector<4x32xf32>
    %412 = arith.negf %411 : vector<4x32xf32>
    %413 = math.exp %412 : vector<4x32xf32>
    %cst_108 = arith.constant 1.000000e+00 : f32
    %414 = vector.broadcast %cst_108 : f32 to vector<4x32xf32>
    %415 = arith.addf %414, %413 : vector<4x32xf32>
    %416 = arith.divf %414, %415 : vector<4x32xf32>
    %417 = vector.extract_strided_slice %404 {offsets = [0, 64], sizes = [4, 32], strides = [1, 1]} : vector<4x128xf32> to vector<4x32xf32>
    %418 = math.tanh %417 : vector<4x32xf32>
    %419 = vector.extract_strided_slice %404 {offsets = [0, 96], sizes = [4, 32], strides = [1, 1]} : vector<4x128xf32> to vector<4x32xf32>
    %420 = arith.negf %419 : vector<4x32xf32>
    %421 = math.exp %420 : vector<4x32xf32>
    %cst_109 = arith.constant 1.000000e+00 : f32
    %422 = vector.broadcast %cst_109 : f32 to vector<4x32xf32>
    %423 = arith.addf %422, %421 : vector<4x32xf32>
    %424 = arith.divf %422, %423 : vector<4x32xf32>
    %425 = arith.mulf %416, %391 : vector<4x32xf32>
    %426 = arith.mulf %410, %418 : vector<4x32xf32>
    %427 = arith.addf %425, %426 : vector<4x32xf32>
    %428 = math.tanh %427 : vector<4x32xf32>
    %429 = arith.mulf %424, %428 : vector<4x32xf32>
    %430 = arith.index_cast %398 : i32 to index
    %c0_110 = arith.constant 0 : index
    %c0_111 = arith.constant 0 : index
    %431 = vector.load %arg15[%430, %c0_110, %c0_111] : memref<8x4x32xf32, #tpu.memory_space<vmem>>, vector<1x4x32xf32>
    %432 = vector.shape_cast %431 : vector<1x4x32xf32> to vector<4x32xf32>
    %433 = vector.shape_cast %429 : vector<4x32xf32> to vector<1x4x32xf32>
    tpu.vector_store %arg15[%430, %c0_110, %c0_111], %433 {strides = array<i32>} : memref<8x4x32xf32, #tpu.memory_space<vmem>>, vector<1x4x32xf32>,
    %c4_i32_112 = arith.constant 4 : i32
    %c7_i32_113 = arith.constant 7 : i32
    %434 = arith.subi %c7_i32_113, %c4_i32_112 : i32
    %435 = arith.index_cast %434 : i32 to index
    %c0_114 = arith.constant 0 : index
    %c0_115 = arith.constant 0 : index
    %436 = vector.load %arg0[%435, %c0_114, %c0_115] : memref<8x4x32xf32, #tpu.memory_space<vmem>>, vector<1x4x32xf32>
    %437 = vector.shape_cast %436 : vector<1x4x32xf32> to vector<4x32xf32>
    %438 = tpu.concatenate %437, %429 in 1 : vector<4x32xf32>, vector<4x32xf32> -> vector<4x64xf32>
    %cst_116 = arith.constant dense<0.000000e+00> : vector<4x128xf32>
    %439 = tpu.matmul %438, %285, %cst_116 {dimension_numbers = #tpu.dot_dimension_numbers<[1], [0], [0], [1], [0, 0, 1, 1], [], []>} : vector<4x64xf32>, vector<64x128xf32>, vector<4x128xf32> -> vector<4x128xf32>
    %440 = arith.addf %439, %288 : vector<4x128xf32>
    %441 = vector.extract_strided_slice %440 {offsets = [0, 0], sizes = [4, 32], strides = [1, 1]} : vector<4x128xf32> to vector<4x32xf32>
    %442 = arith.negf %441 : vector<4x32xf32>
    %443 = math.exp %442 : vector<4x32xf32>
    %cst_117 = arith.constant 1.000000e+00 : f32
    %444 = vector.broadcast %cst_117 : f32 to vector<4x32xf32>
    %445 = arith.addf %444, %443 : vector<4x32xf32>
    %446 = arith.divf %444, %445 : vector<4x32xf32>
    %447 = vector.extract_strided_slice %440 {offsets = [0, 32], sizes = [4, 32], strides = [1, 1]} : vector<4x128xf32> to vector<4x32xf32>
    %448 = arith.negf %447 : vector<4x32xf32>
    %449 = math.exp %448 : vector<4x32xf32>
    %cst_118 = arith.constant 1.000000e+00 : f32
    %450 = vector.broadcast %cst_118 : f32 to vector<4x32xf32>
    %451 = arith.addf %450, %449 : vector<4x32xf32>
    %452 = arith.divf %450, %451 : vector<4x32xf32>
    %453 = vector.extract_strided_slice %440 {offsets = [0, 64], sizes = [4, 32], strides = [1, 1]} : vector<4x128xf32> to vector<4x32xf32>
    %454 = math.tanh %453 : vector<4x32xf32>
    %455 = vector.extract_strided_slice %440 {offsets = [0, 96], sizes = [4, 32], strides = [1, 1]} : vector<4x128xf32> to vector<4x32xf32>
    %456 = arith.negf %455 : vector<4x32xf32>
    %457 = math.exp %456 : vector<4x32xf32>
    %cst_119 = arith.constant 1.000000e+00 : f32
    %458 = vector.broadcast %cst_119 : f32 to vector<4x32xf32>
    %459 = arith.addf %458, %457 : vector<4x32xf32>
    %460 = arith.divf %458, %459 : vector<4x32xf32>
    %461 = arith.mulf %452, %427 : vector<4x32xf32>
    %462 = arith.mulf %446, %454 : vector<4x32xf32>
    %463 = arith.addf %461, %462 : vector<4x32xf32>
    %464 = math.tanh %463 : vector<4x32xf32>
    %465 = arith.mulf %460, %464 : vector<4x32xf32>
    %466 = arith.index_cast %434 : i32 to index
    %c0_120 = arith.constant 0 : index
    %c0_121 = arith.constant 0 : index
    %467 = vector.load %arg15[%466, %c0_120, %c0_121] : memref<8x4x32xf32, #tpu.memory_space<vmem>>, vector<1x4x32xf32>
    %468 = vector.shape_cast %467 : vector<1x4x32xf32> to vector<4x32xf32>
    %469 = vector.shape_cast %465 : vector<4x32xf32> to vector<1x4x32xf32>
    tpu.vector_store %arg15[%466, %c0_120, %c0_121], %469 {strides = array<i32>} : memref<8x4x32xf32, #tpu.memory_space<vmem>>, vector<1x4x32xf32>,
    %c5_i32_122 = arith.constant 5 : i32
    %c7_i32_123 = arith.constant 7 : i32
    %470 = arith.subi %c7_i32_123, %c5_i32_122 : i32
    %471 = arith.index_cast %470 : i32 to index
    %c0_124 = arith.constant 0 : index
    %c0_125 = arith.constant 0 : index
    %472 = vector.load %arg0[%471, %c0_124, %c0_125] : memref<8x4x32xf32, #tpu.memory_space<vmem>>, vector<1x4x32xf32>
    %473 = vector.shape_cast %472 : vector<1x4x32xf32> to vector<4x32xf32>
    %474 = tpu.concatenate %473, %465 in 1 : vector<4x32xf32>, vector<4x32xf32> -> vector<4x64xf32>
    %cst_126 = arith.constant dense<0.000000e+00> : vector<4x128xf32>
    %475 = tpu.matmul %474, %285, %cst_126 {dimension_numbers = #tpu.dot_dimension_numbers<[1], [0], [0], [1], [0, 0, 1, 1], [], []>} : vector<4x64xf32>, vector<64x128xf32>, vector<4x128xf32> -> vector<4x128xf32>
    %476 = arith.addf %475, %288 : vector<4x128xf32>
    %477 = vector.extract_strided_slice %476 {offsets = [0, 0], sizes = [4, 32], strides = [1, 1]} : vector<4x128xf32> to vector<4x32xf32>
    %478 = arith.negf %477 : vector<4x32xf32>
    %479 = math.exp %478 : vector<4x32xf32>
    %cst_127 = arith.constant 1.000000e+00 : f32
    %480 = vector.broadcast %cst_127 : f32 to vector<4x32xf32>
    %481 = arith.addf %480, %479 : vector<4x32xf32>
    %482 = arith.divf %480, %481 : vector<4x32xf32>
    %483 = vector.extract_strided_slice %476 {offsets = [0, 32], sizes = [4, 32], strides = [1, 1]} : vector<4x128xf32> to vector<4x32xf32>
    %484 = arith.negf %483 : vector<4x32xf32>
    %485 = math.exp %484 : vector<4x32xf32>
    %cst_128 = arith.constant 1.000000e+00 : f32
    %486 = vector.broadcast %cst_128 : f32 to vector<4x32xf32>
    %487 = arith.addf %486, %485 : vector<4x32xf32>
    %488 = arith.divf %486, %487 : vector<4x32xf32>
    %489 = vector.extract_strided_slice %476 {offsets = [0, 64], sizes = [4, 32], strides = [1, 1]} : vector<4x128xf32> to vector<4x32xf32>
    %490 = math.tanh %489 : vector<4x32xf32>
    %491 = vector.extract_strided_slice %476 {offsets = [0, 96], sizes = [4, 32], strides = [1, 1]} : vector<4x128xf32> to vector<4x32xf32>
    %492 = arith.negf %491 : vector<4x32xf32>
    %493 = math.exp %492 : vector<4x32xf32>
    %cst_129 = arith.constant 1.000000e+00 : f32
    %494 = vector.broadcast %cst_129 : f32 to vector<4x32xf32>
    %495 = arith.addf %494, %493 : vector<4x32xf32>
    %496 = arith.divf %494, %495 : vector<4x32xf32>
    %497 = arith.mulf %488, %463 : vector<4x32xf32>
    %498 = arith.mulf %482, %490 : vector<4x32xf32>
    %499 = arith.addf %497, %498 : vector<4x32xf32>
    %500 = math.tanh %499 : vector<4x32xf32>
    %501 = arith.mulf %496, %500 : vector<4x32xf32>
    %502 = arith.index_cast %470 : i32 to index
    %c0_130 = arith.constant 0 : index
    %c0_131 = arith.constant 0 : index
    %503 = vector.load %arg15[%502, %c0_130, %c0_131] : memref<8x4x32xf32, #tpu.memory_space<vmem>>, vector<1x4x32xf32>
    %504 = vector.shape_cast %503 : vector<1x4x32xf32> to vector<4x32xf32>
    %505 = vector.shape_cast %501 : vector<4x32xf32> to vector<1x4x32xf32>
    tpu.vector_store %arg15[%502, %c0_130, %c0_131], %505 {strides = array<i32>} : memref<8x4x32xf32, #tpu.memory_space<vmem>>, vector<1x4x32xf32>,
    %c6_i32_132 = arith.constant 6 : i32
    %c7_i32_133 = arith.constant 7 : i32
    %506 = arith.subi %c7_i32_133, %c6_i32_132 : i32
    %507 = arith.index_cast %506 : i32 to index
    %c0_134 = arith.constant 0 : index
    %c0_135 = arith.constant 0 : index
    %508 = vector.load %arg0[%507, %c0_134, %c0_135] : memref<8x4x32xf32, #tpu.memory_space<vmem>>, vector<1x4x32xf32>
    %509 = vector.shape_cast %508 : vector<1x4x32xf32> to vector<4x32xf32>
    %510 = tpu.concatenate %509, %501 in 1 : vector<4x32xf32>, vector<4x32xf32> -> vector<4x64xf32>
    %cst_136 = arith.constant dense<0.000000e+00> : vector<4x128xf32>
    %511 = tpu.matmul %510, %285, %cst_136 {dimension_numbers = #tpu.dot_dimension_numbers<[1], [0], [0], [1], [0, 0, 1, 1], [], []>} : vector<4x64xf32>, vector<64x128xf32>, vector<4x128xf32> -> vector<4x128xf32>
    %512 = arith.addf %511, %288 : vector<4x128xf32>
    %513 = vector.extract_strided_slice %512 {offsets = [0, 0], sizes = [4, 32], strides = [1, 1]} : vector<4x128xf32> to vector<4x32xf32>
    %514 = arith.negf %513 : vector<4x32xf32>
    %515 = math.exp %514 : vector<4x32xf32>
    %cst_137 = arith.constant 1.000000e+00 : f32
    %516 = vector.broadcast %cst_137 : f32 to vector<4x32xf32>
    %517 = arith.addf %516, %515 : vector<4x32xf32>
    %518 = arith.divf %516, %517 : vector<4x32xf32>
    %519 = vector.extract_strided_slice %512 {offsets = [0, 32], sizes = [4, 32], strides = [1, 1]} : vector<4x128xf32> to vector<4x32xf32>
    %520 = arith.negf %519 : vector<4x32xf32>
    %521 = math.exp %520 : vector<4x32xf32>
    %cst_138 = arith.constant 1.000000e+00 : f32
    %522 = vector.broadcast %cst_138 : f32 to vector<4x32xf32>
    %523 = arith.addf %522, %521 : vector<4x32xf32>
    %524 = arith.divf %522, %523 : vector<4x32xf32>
    %525 = vector.extract_strided_slice %512 {offsets = [0, 64], sizes = [4, 32], strides = [1, 1]} : vector<4x128xf32> to vector<4x32xf32>
    %526 = math.tanh %525 : vector<4x32xf32>
    %527 = vector.extract_strided_slice %512 {offsets = [0, 96], sizes = [4, 32], strides = [1, 1]} : vector<4x128xf32> to vector<4x32xf32>
    %528 = arith.negf %527 : vector<4x32xf32>
    %529 = math.exp %528 : vector<4x32xf32>
    %cst_139 = arith.constant 1.000000e+00 : f32
    %530 = vector.broadcast %cst_139 : f32 to vector<4x32xf32>
    %531 = arith.addf %530, %529 : vector<4x32xf32>
    %532 = arith.divf %530, %531 : vector<4x32xf32>
    %533 = arith.mulf %524, %499 : vector<4x32xf32>
    %534 = arith.mulf %518, %526 : vector<4x32xf32>
    %535 = arith.addf %533, %534 : vector<4x32xf32>
    %536 = math.tanh %535 : vector<4x32xf32>
    %537 = arith.mulf %532, %536 : vector<4x32xf32>
    %538 = arith.index_cast %506 : i32 to index
    %c0_140 = arith.constant 0 : index
    %c0_141 = arith.constant 0 : index
    %539 = vector.load %arg15[%538, %c0_140, %c0_141] : memref<8x4x32xf32, #tpu.memory_space<vmem>>, vector<1x4x32xf32>
    %540 = vector.shape_cast %539 : vector<1x4x32xf32> to vector<4x32xf32>
    %541 = vector.shape_cast %537 : vector<4x32xf32> to vector<1x4x32xf32>
    tpu.vector_store %arg15[%538, %c0_140, %c0_141], %541 {strides = array<i32>} : memref<8x4x32xf32, #tpu.memory_space<vmem>>, vector<1x4x32xf32>,
    %c7_i32_142 = arith.constant 7 : i32
    %c7_i32_143 = arith.constant 7 : i32
    %542 = arith.subi %c7_i32_143, %c7_i32_142 : i32
    %543 = arith.index_cast %542 : i32 to index
    %c0_144 = arith.constant 0 : index
    %c0_145 = arith.constant 0 : index
    %544 = vector.load %arg0[%543, %c0_144, %c0_145] : memref<8x4x32xf32, #tpu.memory_space<vmem>>, vector<1x4x32xf32>
    %545 = vector.shape_cast %544 : vector<1x4x32xf32> to vector<4x32xf32>
    %546 = tpu.concatenate %545, %537 in 1 : vector<4x32xf32>, vector<4x32xf32> -> vector<4x64xf32>
    %cst_146 = arith.constant dense<0.000000e+00> : vector<4x128xf32>
    %547 = tpu.matmul %546, %285, %cst_146 {dimension_numbers = #tpu.dot_dimension_numbers<[1], [0], [0], [1], [0, 0, 1, 1], [], []>} : vector<4x64xf32>, vector<64x128xf32>, vector<4x128xf32> -> vector<4x128xf32>
    %548 = arith.addf %547, %288 : vector<4x128xf32>
    %549 = vector.extract_strided_slice %548 {offsets = [0, 0], sizes = [4, 32], strides = [1, 1]} : vector<4x128xf32> to vector<4x32xf32>
    %550 = arith.negf %549 : vector<4x32xf32>
    %551 = math.exp %550 : vector<4x32xf32>
    %cst_147 = arith.constant 1.000000e+00 : f32
    %552 = vector.broadcast %cst_147 : f32 to vector<4x32xf32>
    %553 = arith.addf %552, %551 : vector<4x32xf32>
    %554 = arith.divf %552, %553 : vector<4x32xf32>
    %555 = vector.extract_strided_slice %548 {offsets = [0, 32], sizes = [4, 32], strides = [1, 1]} : vector<4x128xf32> to vector<4x32xf32>
    %556 = arith.negf %555 : vector<4x32xf32>
    %557 = math.exp %556 : vector<4x32xf32>
    %cst_148 = arith.constant 1.000000e+00 : f32
    %558 = vector.broadcast %cst_148 : f32 to vector<4x32xf32>
    %559 = arith.addf %558, %557 : vector<4x32xf32>
    %560 = arith.divf %558, %559 : vector<4x32xf32>
    %561 = vector.extract_strided_slice %548 {offsets = [0, 64], sizes = [4, 32], strides = [1, 1]} : vector<4x128xf32> to vector<4x32xf32>
    %562 = math.tanh %561 : vector<4x32xf32>
    %563 = vector.extract_strided_slice %548 {offsets = [0, 96], sizes = [4, 32], strides = [1, 1]} : vector<4x128xf32> to vector<4x32xf32>
    %564 = arith.negf %563 : vector<4x32xf32>
    %565 = math.exp %564 : vector<4x32xf32>
    %cst_149 = arith.constant 1.000000e+00 : f32
    %566 = vector.broadcast %cst_149 : f32 to vector<4x32xf32>
    %567 = arith.addf %566, %565 : vector<4x32xf32>
    %568 = arith.divf %566, %567 : vector<4x32xf32>
    %569 = arith.mulf %560, %535 : vector<4x32xf32>
    %570 = arith.mulf %554, %562 : vector<4x32xf32>
    %571 = arith.addf %569, %570 : vector<4x32xf32>
    %572 = math.tanh %571 : vector<4x32xf32>
    %573 = arith.mulf %568, %572 : vector<4x32xf32>
    %574 = arith.index_cast %542 : i32 to index
    %c0_150 = arith.constant 0 : index
    %c0_151 = arith.constant 0 : index
    %575 = vector.load %arg15[%574, %c0_150, %c0_151] : memref<8x4x32xf32, #tpu.memory_space<vmem>>, vector<1x4x32xf32>
    %576 = vector.shape_cast %575 : vector<1x4x32xf32> to vector<4x32xf32>
    %577 = vector.shape_cast %573 : vector<4x32xf32> to vector<1x4x32xf32>
    tpu.vector_store %arg15[%574, %c0_150, %c0_151], %577 {strides = array<i32>} : memref<8x4x32xf32, #tpu.memory_space<vmem>>, vector<1x4x32xf32>,
    %c8_i32_152 = arith.constant 8 : i32
    %c0_153 = arith.constant 0 : index
    %c0_154 = arith.constant 0 : index
    %578 = vector.load %arg5[%c0_153, %c0_154] : memref<96x128xf32, #tpu.memory_space<vmem>>, vector<96x128xf32>
    %c0_155 = arith.constant 0 : index
    %c0_156 = arith.constant 0 : index
    %579 = vector.load %arg6[%c0_155, %c0_156] : memref<1x128xf32, #tpu.memory_space<vmem>>, vector<1x128xf32>
    %580 = vector.shape_cast %579 : vector<1x128xf32> to vector<1x128xf32>
    %581 = vector.broadcast %580 : vector<1x128xf32> to vector<4x128xf32>
    %cst_157 = arith.constant 0.000000e+00 : f32
    %582 = vector.broadcast %cst_157 : f32 to vector<4x32xf32>
    %c0_i32_158 = arith.constant 0 : i32
    %583 = arith.index_cast %c0_i32_158 : i32 to index
    %c0_159 = arith.constant 0 : index
    %c0_160 = arith.constant 0 : index
    %584 = vector.load %arg14[%583, %c0_159, %c0_160] : memref<8x4x32xf32, #tpu.memory_space<vmem>>, vector<1x4x32xf32>
    %585 = vector.shape_cast %584 : vector<1x4x32xf32> to vector<4x32xf32>
    %586 = arith.index_cast %c0_i32_158 : i32 to index
    %c0_161 = arith.constant 0 : index
    %c0_162 = arith.constant 0 : index
    %587 = vector.load %arg15[%586, %c0_161, %c0_162] : memref<8x4x32xf32, #tpu.memory_space<vmem>>, vector<1x4x32xf32>
    %588 = vector.shape_cast %587 : vector<1x4x32xf32> to vector<4x32xf32>
    %589 = tpu.concatenate %585, %588, %582 in 1 : vector<4x32xf32>, vector<4x32xf32>, vector<4x32xf32> -> vector<4x96xf32>
    %cst_163 = arith.constant dense<0.000000e+00> : vector<4x128xf32>
    %590 = tpu.matmul %589, %578, %cst_163 {dimension_numbers = #tpu.dot_dimension_numbers<[1], [0], [0], [1], [0, 0, 1, 1], [], []>} : vector<4x96xf32>, vector<96x128xf32>, vector<4x128xf32> -> vector<4x128xf32>
    %591 = arith.addf %590, %581 : vector<4x128xf32>
    %592 = vector.extract_strided_slice %591 {offsets = [0, 0], sizes = [4, 32], strides = [1, 1]} : vector<4x128xf32> to vector<4x32xf32>
    %593 = arith.negf %592 : vector<4x32xf32>
    %594 = math.exp %593 : vector<4x32xf32>
    %cst_164 = arith.constant 1.000000e+00 : f32
    %595 = vector.broadcast %cst_164 : f32 to vector<4x32xf32>
    %596 = arith.addf %595, %594 : vector<4x32xf32>
    %597 = arith.divf %595, %596 : vector<4x32xf32>
    %598 = vector.extract_strided_slice %591 {offsets = [0, 32], sizes = [4, 32], strides = [1, 1]} : vector<4x128xf32> to vector<4x32xf32>
    %599 = arith.negf %598 : vector<4x32xf32>
    %600 = math.exp %599 : vector<4x32xf32>
    %cst_165 = arith.constant 1.000000e+00 : f32
    %601 = vector.broadcast %cst_165 : f32 to vector<4x32xf32>
    %602 = arith.addf %601, %600 : vector<4x32xf32>
    %603 = arith.divf %601, %602 : vector<4x32xf32>
    %604 = vector.extract_strided_slice %591 {offsets = [0, 64], sizes = [4, 32], strides = [1, 1]} : vector<4x128xf32> to vector<4x32xf32>
    %605 = math.tanh %604 : vector<4x32xf32>
    %606 = vector.extract_strided_slice %591 {offsets = [0, 96], sizes = [4, 32], strides = [1, 1]} : vector<4x128xf32> to vector<4x32xf32>
    %607 = arith.negf %606 : vector<4x32xf32>
    %608 = math.exp %607 : vector<4x32xf32>
    %cst_166 = arith.constant 1.000000e+00 : f32
    %609 = vector.broadcast %cst_166 : f32 to vector<4x32xf32>
    %610 = arith.addf %609, %608 : vector<4x32xf32>
    %611 = arith.divf %609, %610 : vector<4x32xf32>
    %612 = arith.mulf %603, %582 : vector<4x32xf32>
    %613 = arith.mulf %597, %605 : vector<4x32xf32>
    %614 = arith.addf %612, %613 : vector<4x32xf32>
    %615 = math.tanh %614 : vector<4x32xf32>
    %616 = arith.mulf %611, %615 : vector<4x32xf32>
    %617 = arith.addf %582, %616 : vector<4x32xf32>
    %c1_i32_167 = arith.constant 1 : i32
    %618 = arith.index_cast %c1_i32_167 : i32 to index
    %c0_168 = arith.constant 0 : index
    %c0_169 = arith.constant 0 : index
    %619 = vector.load %arg14[%618, %c0_168, %c0_169] : memref<8x4x32xf32, #tpu.memory_space<vmem>>, vector<1x4x32xf32>
    %620 = vector.shape_cast %619 : vector<1x4x32xf32> to vector<4x32xf32>
    %621 = arith.index_cast %c1_i32_167 : i32 to index
    %c0_170 = arith.constant 0 : index
    %c0_171 = arith.constant 0 : index
    %622 = vector.load %arg15[%621, %c0_170, %c0_171] : memref<8x4x32xf32, #tpu.memory_space<vmem>>, vector<1x4x32xf32>
    %623 = vector.shape_cast %622 : vector<1x4x32xf32> to vector<4x32xf32>
    %624 = tpu.concatenate %620, %623, %616 in 1 : vector<4x32xf32>, vector<4x32xf32>, vector<4x32xf32> -> vector<4x96xf32>
    %cst_172 = arith.constant dense<0.000000e+00> : vector<4x128xf32>
    %625 = tpu.matmul %624, %578, %cst_172 {dimension_numbers = #tpu.dot_dimension_numbers<[1], [0], [0], [1], [0, 0, 1, 1], [], []>} : vector<4x96xf32>, vector<96x128xf32>, vector<4x128xf32> -> vector<4x128xf32>
    %626 = arith.addf %625, %581 : vector<4x128xf32>
    %627 = vector.extract_strided_slice %626 {offsets = [0, 0], sizes = [4, 32], strides = [1, 1]} : vector<4x128xf32> to vector<4x32xf32>
    %628 = arith.negf %627 : vector<4x32xf32>
    %629 = math.exp %628 : vector<4x32xf32>
    %cst_173 = arith.constant 1.000000e+00 : f32
    %630 = vector.broadcast %cst_173 : f32 to vector<4x32xf32>
    %631 = arith.addf %630, %629 : vector<4x32xf32>
    %632 = arith.divf %630, %631 : vector<4x32xf32>
    %633 = vector.extract_strided_slice %626 {offsets = [0, 32], sizes = [4, 32], strides = [1, 1]} : vector<4x128xf32> to vector<4x32xf32>
    %634 = arith.negf %633 : vector<4x32xf32>
    %635 = math.exp %634 : vector<4x32xf32>
    %cst_174 = arith.constant 1.000000e+00 : f32
    %636 = vector.broadcast %cst_174 : f32 to vector<4x32xf32>
    %637 = arith.addf %636, %635 : vector<4x32xf32>
    %638 = arith.divf %636, %637 : vector<4x32xf32>
    %639 = vector.extract_strided_slice %626 {offsets = [0, 64], sizes = [4, 32], strides = [1, 1]} : vector<4x128xf32> to vector<4x32xf32>
    %640 = math.tanh %639 : vector<4x32xf32>
    %641 = vector.extract_strided_slice %626 {offsets = [0, 96], sizes = [4, 32], strides = [1, 1]} : vector<4x128xf32> to vector<4x32xf32>
    %642 = arith.negf %641 : vector<4x32xf32>
    %643 = math.exp %642 : vector<4x32xf32>
    %cst_175 = arith.constant 1.000000e+00 : f32
    %644 = vector.broadcast %cst_175 : f32 to vector<4x32xf32>
    %645 = arith.addf %644, %643 : vector<4x32xf32>
    %646 = arith.divf %644, %645 : vector<4x32xf32>
    %647 = arith.mulf %638, %614 : vector<4x32xf32>
    %648 = arith.mulf %632, %640 : vector<4x32xf32>
    %649 = arith.addf %647, %648 : vector<4x32xf32>
    %650 = math.tanh %649 : vector<4x32xf32>
    %651 = arith.mulf %646, %650 : vector<4x32xf32>
    %652 = arith.addf %617, %651 : vector<4x32xf32>
    %c2_i32_176 = arith.constant 2 : i32
    %653 = arith.index_cast %c2_i32_176 : i32 to index
    %c0_177 = arith.constant 0 : index
    %c0_178 = arith.constant 0 : index
    %654 = vector.load %arg14[%653, %c0_177, %c0_178] : memref<8x4x32xf32, #tpu.memory_space<vmem>>, vector<1x4x32xf32>
    %655 = vector.shape_cast %654 : vector<1x4x32xf32> to vector<4x32xf32>
    %656 = arith.index_cast %c2_i32_176 : i32 to index
    %c0_179 = arith.constant 0 : index
    %c0_180 = arith.constant 0 : index
    %657 = vector.load %arg15[%656, %c0_179, %c0_180] : memref<8x4x32xf32, #tpu.memory_space<vmem>>, vector<1x4x32xf32>
    %658 = vector.shape_cast %657 : vector<1x4x32xf32> to vector<4x32xf32>
    %659 = tpu.concatenate %655, %658, %651 in 1 : vector<4x32xf32>, vector<4x32xf32>, vector<4x32xf32> -> vector<4x96xf32>
    %cst_181 = arith.constant dense<0.000000e+00> : vector<4x128xf32>
    %660 = tpu.matmul %659, %578, %cst_181 {dimension_numbers = #tpu.dot_dimension_numbers<[1], [0], [0], [1], [0, 0, 1, 1], [], []>} : vector<4x96xf32>, vector<96x128xf32>, vector<4x128xf32> -> vector<4x128xf32>
    %661 = arith.addf %660, %581 : vector<4x128xf32>
    %662 = vector.extract_strided_slice %661 {offsets = [0, 0], sizes = [4, 32], strides = [1, 1]} : vector<4x128xf32> to vector<4x32xf32>
    %663 = arith.negf %662 : vector<4x32xf32>
    %664 = math.exp %663 : vector<4x32xf32>
    %cst_182 = arith.constant 1.000000e+00 : f32
    %665 = vector.broadcast %cst_182 : f32 to vector<4x32xf32>
    %666 = arith.addf %665, %664 : vector<4x32xf32>
    %667 = arith.divf %665, %666 : vector<4x32xf32>
    %668 = vector.extract_strided_slice %661 {offsets = [0, 32], sizes = [4, 32], strides = [1, 1]} : vector<4x128xf32> to vector<4x32xf32>
    %669 = arith.negf %668 : vector<4x32xf32>
    %670 = math.exp %669 : vector<4x32xf32>
    %cst_183 = arith.constant 1.000000e+00 : f32
    %671 = vector.broadcast %cst_183 : f32 to vector<4x32xf32>
    %672 = arith.addf %671, %670 : vector<4x32xf32>
    %673 = arith.divf %671, %672 : vector<4x32xf32>
    %674 = vector.extract_strided_slice %661 {offsets = [0, 64], sizes = [4, 32], strides = [1, 1]} : vector<4x128xf32> to vector<4x32xf32>
    %675 = math.tanh %674 : vector<4x32xf32>
    %676 = vector.extract_strided_slice %661 {offsets = [0, 96], sizes = [4, 32], strides = [1, 1]} : vector<4x128xf32> to vector<4x32xf32>
    %677 = arith.negf %676 : vector<4x32xf32>
    %678 = math.exp %677 : vector<4x32xf32>
    %cst_184 = arith.constant 1.000000e+00 : f32
    %679 = vector.broadcast %cst_184 : f32 to vector<4x32xf32>
    %680 = arith.addf %679, %678 : vector<4x32xf32>
    %681 = arith.divf %679, %680 : vector<4x32xf32>
    %682 = arith.mulf %673, %649 : vector<4x32xf32>
    %683 = arith.mulf %667, %675 : vector<4x32xf32>
    %684 = arith.addf %682, %683 : vector<4x32xf32>
    %685 = math.tanh %684 : vector<4x32xf32>
    %686 = arith.mulf %681, %685 : vector<4x32xf32>
    %687 = arith.addf %652, %686 : vector<4x32xf32>
    %c3_i32_185 = arith.constant 3 : i32
    %688 = arith.index_cast %c3_i32_185 : i32 to index
    %c0_186 = arith.constant 0 : index
    %c0_187 = arith.constant 0 : index
    %689 = vector.load %arg14[%688, %c0_186, %c0_187] : memref<8x4x32xf32, #tpu.memory_space<vmem>>, vector<1x4x32xf32>
    %690 = vector.shape_cast %689 : vector<1x4x32xf32> to vector<4x32xf32>
    %691 = arith.index_cast %c3_i32_185 : i32 to index
    %c0_188 = arith.constant 0 : index
    %c0_189 = arith.constant 0 : index
    %692 = vector.load %arg15[%691, %c0_188, %c0_189] : memref<8x4x32xf32, #tpu.memory_space<vmem>>, vector<1x4x32xf32>
    %693 = vector.shape_cast %692 : vector<1x4x32xf32> to vector<4x32xf32>
    %694 = tpu.concatenate %690, %693, %686 in 1 : vector<4x32xf32>, vector<4x32xf32>, vector<4x32xf32> -> vector<4x96xf32>
    %cst_190 = arith.constant dense<0.000000e+00> : vector<4x128xf32>
    %695 = tpu.matmul %694, %578, %cst_190 {dimension_numbers = #tpu.dot_dimension_numbers<[1], [0], [0], [1], [0, 0, 1, 1], [], []>} : vector<4x96xf32>, vector<96x128xf32>, vector<4x128xf32> -> vector<4x128xf32>
    %696 = arith.addf %695, %581 : vector<4x128xf32>
    %697 = vector.extract_strided_slice %696 {offsets = [0, 0], sizes = [4, 32], strides = [1, 1]} : vector<4x128xf32> to vector<4x32xf32>
    %698 = arith.negf %697 : vector<4x32xf32>
    %699 = math.exp %698 : vector<4x32xf32>
    %cst_191 = arith.constant 1.000000e+00 : f32
    %700 = vector.broadcast %cst_191 : f32 to vector<4x32xf32>
    %701 = arith.addf %700, %699 : vector<4x32xf32>
    %702 = arith.divf %700, %701 : vector<4x32xf32>
    %703 = vector.extract_strided_slice %696 {offsets = [0, 32], sizes = [4, 32], strides = [1, 1]} : vector<4x128xf32> to vector<4x32xf32>
    %704 = arith.negf %703 : vector<4x32xf32>
    %705 = math.exp %704 : vector<4x32xf32>
    %cst_192 = arith.constant 1.000000e+00 : f32
    %706 = vector.broadcast %cst_192 : f32 to vector<4x32xf32>
    %707 = arith.addf %706, %705 : vector<4x32xf32>
    %708 = arith.divf %706, %707 : vector<4x32xf32>
    %709 = vector.extract_strided_slice %696 {offsets = [0, 64], sizes = [4, 32], strides = [1, 1]} : vector<4x128xf32> to vector<4x32xf32>
    %710 = math.tanh %709 : vector<4x32xf32>
    %711 = vector.extract_strided_slice %696 {offsets = [0, 96], sizes = [4, 32], strides = [1, 1]} : vector<4x128xf32> to vector<4x32xf32>
    %712 = arith.negf %711 : vector<4x32xf32>
    %713 = math.exp %712 : vector<4x32xf32>
    %cst_193 = arith.constant 1.000000e+00 : f32
    %714 = vector.broadcast %cst_193 : f32 to vector<4x32xf32>
    %715 = arith.addf %714, %713 : vector<4x32xf32>
    %716 = arith.divf %714, %715 : vector<4x32xf32>
    %717 = arith.mulf %708, %684 : vector<4x32xf32>
    %718 = arith.mulf %702, %710 : vector<4x32xf32>
    %719 = arith.addf %717, %718 : vector<4x32xf32>
    %720 = math.tanh %719 : vector<4x32xf32>
    %721 = arith.mulf %716, %720 : vector<4x32xf32>
    %722 = arith.addf %687, %721 : vector<4x32xf32>
    %c4_i32_194 = arith.constant 4 : i32
    %723 = arith.index_cast %c4_i32_194 : i32 to index
    %c0_195 = arith.constant 0 : index
    %c0_196 = arith.constant 0 : index
    %724 = vector.load %arg14[%723, %c0_195, %c0_196] : memref<8x4x32xf32, #tpu.memory_space<vmem>>, vector<1x4x32xf32>
    %725 = vector.shape_cast %724 : vector<1x4x32xf32> to vector<4x32xf32>
    %726 = arith.index_cast %c4_i32_194 : i32 to index
    %c0_197 = arith.constant 0 : index
    %c0_198 = arith.constant 0 : index
    %727 = vector.load %arg15[%726, %c0_197, %c0_198] : memref<8x4x32xf32, #tpu.memory_space<vmem>>, vector<1x4x32xf32>
    %728 = vector.shape_cast %727 : vector<1x4x32xf32> to vector<4x32xf32>
    %729 = tpu.concatenate %725, %728, %721 in 1 : vector<4x32xf32>, vector<4x32xf32>, vector<4x32xf32> -> vector<4x96xf32>
    %cst_199 = arith.constant dense<0.000000e+00> : vector<4x128xf32>
    %730 = tpu.matmul %729, %578, %cst_199 {dimension_numbers = #tpu.dot_dimension_numbers<[1], [0], [0], [1], [0, 0, 1, 1], [], []>} : vector<4x96xf32>, vector<96x128xf32>, vector<4x128xf32> -> vector<4x128xf32>
    %731 = arith.addf %730, %581 : vector<4x128xf32>
    %732 = vector.extract_strided_slice %731 {offsets = [0, 0], sizes = [4, 32], strides = [1, 1]} : vector<4x128xf32> to vector<4x32xf32>
    %733 = arith.negf %732 : vector<4x32xf32>
    %734 = math.exp %733 : vector<4x32xf32>
    %cst_200 = arith.constant 1.000000e+00 : f32
    %735 = vector.broadcast %cst_200 : f32 to vector<4x32xf32>
    %736 = arith.addf %735, %734 : vector<4x32xf32>
    %737 = arith.divf %735, %736 : vector<4x32xf32>
    %738 = vector.extract_strided_slice %731 {offsets = [0, 32], sizes = [4, 32], strides = [1, 1]} : vector<4x128xf32> to vector<4x32xf32>
    %739 = arith.negf %738 : vector<4x32xf32>
    %740 = math.exp %739 : vector<4x32xf32>
    %cst_201 = arith.constant 1.000000e+00 : f32
    %741 = vector.broadcast %cst_201 : f32 to vector<4x32xf32>
    %742 = arith.addf %741, %740 : vector<4x32xf32>
    %743 = arith.divf %741, %742 : vector<4x32xf32>
    %744 = vector.extract_strided_slice %731 {offsets = [0, 64], sizes = [4, 32], strides = [1, 1]} : vector<4x128xf32> to vector<4x32xf32>
    %745 = math.tanh %744 : vector<4x32xf32>
    %746 = vector.extract_strided_slice %731 {offsets = [0, 96], sizes = [4, 32], strides = [1, 1]} : vector<4x128xf32> to vector<4x32xf32>
    %747 = arith.negf %746 : vector<4x32xf32>
    %748 = math.exp %747 : vector<4x32xf32>
    %cst_202 = arith.constant 1.000000e+00 : f32
    %749 = vector.broadcast %cst_202 : f32 to vector<4x32xf32>
    %750 = arith.addf %749, %748 : vector<4x32xf32>
    %751 = arith.divf %749, %750 : vector<4x32xf32>
    %752 = arith.mulf %743, %719 : vector<4x32xf32>
    %753 = arith.mulf %737, %745 : vector<4x32xf32>
    %754 = arith.addf %752, %753 : vector<4x32xf32>
    %755 = math.tanh %754 : vector<4x32xf32>
    %756 = arith.mulf %751, %755 : vector<4x32xf32>
    %757 = arith.addf %722, %756 : vector<4x32xf32>
    %c5_i32_203 = arith.constant 5 : i32
    %758 = arith.index_cast %c5_i32_203 : i32 to index
    %c0_204 = arith.constant 0 : index
    %c0_205 = arith.constant 0 : index
    %759 = vector.load %arg14[%758, %c0_204, %c0_205] : memref<8x4x32xf32, #tpu.memory_space<vmem>>, vector<1x4x32xf32>
    %760 = vector.shape_cast %759 : vector<1x4x32xf32> to vector<4x32xf32>
    %761 = arith.index_cast %c5_i32_203 : i32 to index
    %c0_206 = arith.constant 0 : index
    %c0_207 = arith.constant 0 : index
    %762 = vector.load %arg15[%761, %c0_206, %c0_207] : memref<8x4x32xf32, #tpu.memory_space<vmem>>, vector<1x4x32xf32>
    %763 = vector.shape_cast %762 : vector<1x4x32xf32> to vector<4x32xf32>
    %764 = tpu.concatenate %760, %763, %756 in 1 : vector<4x32xf32>, vector<4x32xf32>, vector<4x32xf32> -> vector<4x96xf32>
    %cst_208 = arith.constant dense<0.000000e+00> : vector<4x128xf32>
    %765 = tpu.matmul %764, %578, %cst_208 {dimension_numbers = #tpu.dot_dimension_numbers<[1], [0], [0], [1], [0, 0, 1, 1], [], []>} : vector<4x96xf32>, vector<96x128xf32>, vector<4x128xf32> -> vector<4x128xf32>
    %766 = arith.addf %765, %581 : vector<4x128xf32>
    %767 = vector.extract_strided_slice %766 {offsets = [0, 0], sizes = [4, 32], strides = [1, 1]} : vector<4x128xf32> to vector<4x32xf32>
    %768 = arith.negf %767 : vector<4x32xf32>
    %769 = math.exp %768 : vector<4x32xf32>
    %cst_209 = arith.constant 1.000000e+00 : f32
    %770 = vector.broadcast %cst_209 : f32 to vector<4x32xf32>
    %771 = arith.addf %770, %769 : vector<4x32xf32>
    %772 = arith.divf %770, %771 : vector<4x32xf32>
    %773 = vector.extract_strided_slice %766 {offsets = [0, 32], sizes = [4, 32], strides = [1, 1]} : vector<4x128xf32> to vector<4x32xf32>
    %774 = arith.negf %773 : vector<4x32xf32>
    %775 = math.exp %774 : vector<4x32xf32>
    %cst_210 = arith.constant 1.000000e+00 : f32
    %776 = vector.broadcast %cst_210 : f32 to vector<4x32xf32>
    %777 = arith.addf %776, %775 : vector<4x32xf32>
    %778 = arith.divf %776, %777 : vector<4x32xf32>
    %779 = vector.extract_strided_slice %766 {offsets = [0, 64], sizes = [4, 32], strides = [1, 1]} : vector<4x128xf32> to vector<4x32xf32>
    %780 = math.tanh %779 : vector<4x32xf32>
    %781 = vector.extract_strided_slice %766 {offsets = [0, 96], sizes = [4, 32], strides = [1, 1]} : vector<4x128xf32> to vector<4x32xf32>
    %782 = arith.negf %781 : vector<4x32xf32>
    %783 = math.exp %782 : vector<4x32xf32>
    %cst_211 = arith.constant 1.000000e+00 : f32
    %784 = vector.broadcast %cst_211 : f32 to vector<4x32xf32>
    %785 = arith.addf %784, %783 : vector<4x32xf32>
    %786 = arith.divf %784, %785 : vector<4x32xf32>
    %787 = arith.mulf %778, %754 : vector<4x32xf32>
    %788 = arith.mulf %772, %780 : vector<4x32xf32>
    %789 = arith.addf %787, %788 : vector<4x32xf32>
    %790 = math.tanh %789 : vector<4x32xf32>
    %791 = arith.mulf %786, %790 : vector<4x32xf32>
    %792 = arith.addf %757, %791 : vector<4x32xf32>
    %c6_i32_212 = arith.constant 6 : i32
    %793 = arith.index_cast %c6_i32_212 : i32 to index
    %c0_213 = arith.constant 0 : index
    %c0_214 = arith.constant 0 : index
    %794 = vector.load %arg14[%793, %c0_213, %c0_214] : memref<8x4x32xf32, #tpu.memory_space<vmem>>, vector<1x4x32xf32>
    %795 = vector.shape_cast %794 : vector<1x4x32xf32> to vector<4x32xf32>
    %796 = arith.index_cast %c6_i32_212 : i32 to index
    %c0_215 = arith.constant 0 : index
    %c0_216 = arith.constant 0 : index
    %797 = vector.load %arg15[%796, %c0_215, %c0_216] : memref<8x4x32xf32, #tpu.memory_space<vmem>>, vector<1x4x32xf32>
    %798 = vector.shape_cast %797 : vector<1x4x32xf32> to vector<4x32xf32>
    %799 = tpu.concatenate %795, %798, %791 in 1 : vector<4x32xf32>, vector<4x32xf32>, vector<4x32xf32> -> vector<4x96xf32>
    %cst_217 = arith.constant dense<0.000000e+00> : vector<4x128xf32>
    %800 = tpu.matmul %799, %578, %cst_217 {dimension_numbers = #tpu.dot_dimension_numbers<[1], [0], [0], [1], [0, 0, 1, 1], [], []>} : vector<4x96xf32>, vector<96x128xf32>, vector<4x128xf32> -> vector<4x128xf32>
    %801 = arith.addf %800, %581 : vector<4x128xf32>
    %802 = vector.extract_strided_slice %801 {offsets = [0, 0], sizes = [4, 32], strides = [1, 1]} : vector<4x128xf32> to vector<4x32xf32>
    %803 = arith.negf %802 : vector<4x32xf32>
    %804 = math.exp %803 : vector<4x32xf32>
    %cst_218 = arith.constant 1.000000e+00 : f32
    %805 = vector.broadcast %cst_218 : f32 to vector<4x32xf32>
    %806 = arith.addf %805, %804 : vector<4x32xf32>
    %807 = arith.divf %805, %806 : vector<4x32xf32>
    %808 = vector.extract_strided_slice %801 {offsets = [0, 32], sizes = [4, 32], strides = [1, 1]} : vector<4x128xf32> to vector<4x32xf32>
    %809 = arith.negf %808 : vector<4x32xf32>
    %810 = math.exp %809 : vector<4x32xf32>
    %cst_219 = arith.constant 1.000000e+00 : f32
    %811 = vector.broadcast %cst_219 : f32 to vector<4x32xf32>
    %812 = arith.addf %811, %810 : vector<4x32xf32>
    %813 = arith.divf %811, %812 : vector<4x32xf32>
    %814 = vector.extract_strided_slice %801 {offsets = [0, 64], sizes = [4, 32], strides = [1, 1]} : vector<4x128xf32> to vector<4x32xf32>
    %815 = math.tanh %814 : vector<4x32xf32>
    %816 = vector.extract_strided_slice %801 {offsets = [0, 96], sizes = [4, 32], strides = [1, 1]} : vector<4x128xf32> to vector<4x32xf32>
    %817 = arith.negf %816 : vector<4x32xf32>
    %818 = math.exp %817 : vector<4x32xf32>
    %cst_220 = arith.constant 1.000000e+00 : f32
    %819 = vector.broadcast %cst_220 : f32 to vector<4x32xf32>
    %820 = arith.addf %819, %818 : vector<4x32xf32>
    %821 = arith.divf %819, %820 : vector<4x32xf32>
    %822 = arith.mulf %813, %789 : vector<4x32xf32>
    %823 = arith.mulf %807, %815 : vector<4x32xf32>
    %824 = arith.addf %822, %823 : vector<4x32xf32>
    %825 = math.tanh %824 : vector<4x32xf32>
    %826 = arith.mulf %821, %825 : vector<4x32xf32>
    %827 = arith.addf %792, %826 : vector<4x32xf32>
    %c7_i32_221 = arith.constant 7 : i32
    %828 = arith.index_cast %c7_i32_221 : i32 to index
    %c0_222 = arith.constant 0 : index
    %c0_223 = arith.constant 0 : index
    %829 = vector.load %arg14[%828, %c0_222, %c0_223] : memref<8x4x32xf32, #tpu.memory_space<vmem>>, vector<1x4x32xf32>
    %830 = vector.shape_cast %829 : vector<1x4x32xf32> to vector<4x32xf32>
    %831 = arith.index_cast %c7_i32_221 : i32 to index
    %c0_224 = arith.constant 0 : index
    %c0_225 = arith.constant 0 : index
    %832 = vector.load %arg15[%831, %c0_224, %c0_225] : memref<8x4x32xf32, #tpu.memory_space<vmem>>, vector<1x4x32xf32>
    %833 = vector.shape_cast %832 : vector<1x4x32xf32> to vector<4x32xf32>
    %834 = tpu.concatenate %830, %833, %826 in 1 : vector<4x32xf32>, vector<4x32xf32>, vector<4x32xf32> -> vector<4x96xf32>
    %cst_226 = arith.constant dense<0.000000e+00> : vector<4x128xf32>
    %835 = tpu.matmul %834, %578, %cst_226 {dimension_numbers = #tpu.dot_dimension_numbers<[1], [0], [0], [1], [0, 0, 1, 1], [], []>} : vector<4x96xf32>, vector<96x128xf32>, vector<4x128xf32> -> vector<4x128xf32>
    %836 = arith.addf %835, %581 : vector<4x128xf32>
    %837 = vector.extract_strided_slice %836 {offsets = [0, 0], sizes = [4, 32], strides = [1, 1]} : vector<4x128xf32> to vector<4x32xf32>
    %838 = arith.negf %837 : vector<4x32xf32>
    %839 = math.exp %838 : vector<4x32xf32>
    %cst_227 = arith.constant 1.000000e+00 : f32
    %840 = vector.broadcast %cst_227 : f32 to vector<4x32xf32>
    %841 = arith.addf %840, %839 : vector<4x32xf32>
    %842 = arith.divf %840, %841 : vector<4x32xf32>
    %843 = vector.extract_strided_slice %836 {offsets = [0, 32], sizes = [4, 32], strides = [1, 1]} : vector<4x128xf32> to vector<4x32xf32>
    %844 = arith.negf %843 : vector<4x32xf32>
    %845 = math.exp %844 : vector<4x32xf32>
    %cst_228 = arith.constant 1.000000e+00 : f32
    %846 = vector.broadcast %cst_228 : f32 to vector<4x32xf32>
    %847 = arith.addf %846, %845 : vector<4x32xf32>
    %848 = arith.divf %846, %847 : vector<4x32xf32>
    %849 = vector.extract_strided_slice %836 {offsets = [0, 64], sizes = [4, 32], strides = [1, 1]} : vector<4x128xf32> to vector<4x32xf32>
    %850 = math.tanh %849 : vector<4x32xf32>
    %851 = vector.extract_strided_slice %836 {offsets = [0, 96], sizes = [4, 32], strides = [1, 1]} : vector<4x128xf32> to vector<4x32xf32>
    %852 = arith.negf %851 : vector<4x32xf32>
    %853 = math.exp %852 : vector<4x32xf32>
    %cst_229 = arith.constant 1.000000e+00 : f32
    %854 = vector.broadcast %cst_229 : f32 to vector<4x32xf32>
    %855 = arith.addf %854, %853 : vector<4x32xf32>
    %856 = arith.divf %854, %855 : vector<4x32xf32>
    %857 = arith.mulf %848, %824 : vector<4x32xf32>
    %858 = arith.mulf %842, %850 : vector<4x32xf32>
    %859 = arith.addf %857, %858 : vector<4x32xf32>
    %860 = math.tanh %859 : vector<4x32xf32>
    %861 = arith.mulf %856, %860 : vector<4x32xf32>
    %862 = arith.addf %827, %861 : vector<4x32xf32>
    %c8_i32_230 = arith.constant 8 : i32
    %c0_231 = arith.constant 0 : index
    %c0_232 = arith.constant 0 : index
    %863 = vector.load %arg7[%c0_231, %c0_232] : memref<96x128xf32, #tpu.memory_space<vmem>>, vector<96x128xf32>
    %c0_233 = arith.constant 0 : index
    %c0_234 = arith.constant 0 : index
    %864 = vector.load %arg8[%c0_233, %c0_234] : memref<1x128xf32, #tpu.memory_space<vmem>>, vector<1x128xf32>
    %865 = vector.shape_cast %864 : vector<1x128xf32> to vector<1x128xf32>
    %866 = vector.broadcast %865 : vector<1x128xf32> to vector<4x128xf32>
    %cst_235 = arith.constant 0.000000e+00 : f32
    %867 = vector.broadcast %cst_235 : f32 to vector<4x32xf32>
    %c0_i32_236 = arith.constant 0 : i32
    %c7_i32_237 = arith.constant 7 : i32
    %868 = arith.subi %c7_i32_237, %c0_i32_236 : i32
    %869 = arith.index_cast %868 : i32 to index
    %c0_238 = arith.constant 0 : index
    %c0_239 = arith.constant 0 : index
    %870 = vector.load %arg14[%869, %c0_238, %c0_239] : memref<8x4x32xf32, #tpu.memory_space<vmem>>, vector<1x4x32xf32>
    %871 = vector.shape_cast %870 : vector<1x4x32xf32> to vector<4x32xf32>
    %872 = arith.index_cast %868 : i32 to index
    %c0_240 = arith.constant 0 : index
    %c0_241 = arith.constant 0 : index
    %873 = vector.load %arg15[%872, %c0_240, %c0_241] : memref<8x4x32xf32, #tpu.memory_space<vmem>>, vector<1x4x32xf32>
    %874 = vector.shape_cast %873 : vector<1x4x32xf32> to vector<4x32xf32>
    %875 = tpu.concatenate %871, %874, %867 in 1 : vector<4x32xf32>, vector<4x32xf32>, vector<4x32xf32> -> vector<4x96xf32>
    %cst_242 = arith.constant dense<0.000000e+00> : vector<4x128xf32>
    %876 = tpu.matmul %875, %863, %cst_242 {dimension_numbers = #tpu.dot_dimension_numbers<[1], [0], [0], [1], [0, 0, 1, 1], [], []>} : vector<4x96xf32>, vector<96x128xf32>, vector<4x128xf32> -> vector<4x128xf32>
    %877 = arith.addf %876, %866 : vector<4x128xf32>
    %878 = vector.extract_strided_slice %877 {offsets = [0, 0], sizes = [4, 32], strides = [1, 1]} : vector<4x128xf32> to vector<4x32xf32>
    %879 = arith.negf %878 : vector<4x32xf32>
    %880 = math.exp %879 : vector<4x32xf32>
    %cst_243 = arith.constant 1.000000e+00 : f32
    %881 = vector.broadcast %cst_243 : f32 to vector<4x32xf32>
    %882 = arith.addf %881, %880 : vector<4x32xf32>
    %883 = arith.divf %881, %882 : vector<4x32xf32>
    %884 = vector.extract_strided_slice %877 {offsets = [0, 32], sizes = [4, 32], strides = [1, 1]} : vector<4x128xf32> to vector<4x32xf32>
    %885 = arith.negf %884 : vector<4x32xf32>
    %886 = math.exp %885 : vector<4x32xf32>
    %cst_244 = arith.constant 1.000000e+00 : f32
    %887 = vector.broadcast %cst_244 : f32 to vector<4x32xf32>
    %888 = arith.addf %887, %886 : vector<4x32xf32>
    %889 = arith.divf %887, %888 : vector<4x32xf32>
    %890 = vector.extract_strided_slice %877 {offsets = [0, 64], sizes = [4, 32], strides = [1, 1]} : vector<4x128xf32> to vector<4x32xf32>
    %891 = math.tanh %890 : vector<4x32xf32>
    %892 = vector.extract_strided_slice %877 {offsets = [0, 96], sizes = [4, 32], strides = [1, 1]} : vector<4x128xf32> to vector<4x32xf32>
    %893 = arith.negf %892 : vector<4x32xf32>
    %894 = math.exp %893 : vector<4x32xf32>
    %cst_245 = arith.constant 1.000000e+00 : f32
    %895 = vector.broadcast %cst_245 : f32 to vector<4x32xf32>
    %896 = arith.addf %895, %894 : vector<4x32xf32>
    %897 = arith.divf %895, %896 : vector<4x32xf32>
    %898 = arith.mulf %889, %867 : vector<4x32xf32>
    %899 = arith.mulf %883, %891 : vector<4x32xf32>
    %900 = arith.addf %898, %899 : vector<4x32xf32>
    %901 = math.tanh %900 : vector<4x32xf32>
    %902 = arith.mulf %897, %901 : vector<4x32xf32>
    %903 = arith.addf %867, %902 : vector<4x32xf32>
    %c1_i32_246 = arith.constant 1 : i32
    %c7_i32_247 = arith.constant 7 : i32
    %904 = arith.subi %c7_i32_247, %c1_i32_246 : i32
    %905 = arith.index_cast %904 : i32 to index
    %c0_248 = arith.constant 0 : index
    %c0_249 = arith.constant 0 : index
    %906 = vector.load %arg14[%905, %c0_248, %c0_249] : memref<8x4x32xf32, #tpu.memory_space<vmem>>, vector<1x4x32xf32>
    %907 = vector.shape_cast %906 : vector<1x4x32xf32> to vector<4x32xf32>
    %908 = arith.index_cast %904 : i32 to index
    %c0_250 = arith.constant 0 : index
    %c0_251 = arith.constant 0 : index
    %909 = vector.load %arg15[%908, %c0_250, %c0_251] : memref<8x4x32xf32, #tpu.memory_space<vmem>>, vector<1x4x32xf32>
    %910 = vector.shape_cast %909 : vector<1x4x32xf32> to vector<4x32xf32>
    %911 = tpu.concatenate %907, %910, %902 in 1 : vector<4x32xf32>, vector<4x32xf32>, vector<4x32xf32> -> vector<4x96xf32>
    %cst_252 = arith.constant dense<0.000000e+00> : vector<4x128xf32>
    %912 = tpu.matmul %911, %863, %cst_252 {dimension_numbers = #tpu.dot_dimension_numbers<[1], [0], [0], [1], [0, 0, 1, 1], [], []>} : vector<4x96xf32>, vector<96x128xf32>, vector<4x128xf32> -> vector<4x128xf32>
    %913 = arith.addf %912, %866 : vector<4x128xf32>
    %914 = vector.extract_strided_slice %913 {offsets = [0, 0], sizes = [4, 32], strides = [1, 1]} : vector<4x128xf32> to vector<4x32xf32>
    %915 = arith.negf %914 : vector<4x32xf32>
    %916 = math.exp %915 : vector<4x32xf32>
    %cst_253 = arith.constant 1.000000e+00 : f32
    %917 = vector.broadcast %cst_253 : f32 to vector<4x32xf32>
    %918 = arith.addf %917, %916 : vector<4x32xf32>
    %919 = arith.divf %917, %918 : vector<4x32xf32>
    %920 = vector.extract_strided_slice %913 {offsets = [0, 32], sizes = [4, 32], strides = [1, 1]} : vector<4x128xf32> to vector<4x32xf32>
    %921 = arith.negf %920 : vector<4x32xf32>
    %922 = math.exp %921 : vector<4x32xf32>
    %cst_254 = arith.constant 1.000000e+00 : f32
    %923 = vector.broadcast %cst_254 : f32 to vector<4x32xf32>
    %924 = arith.addf %923, %922 : vector<4x32xf32>
    %925 = arith.divf %923, %924 : vector<4x32xf32>
    %926 = vector.extract_strided_slice %913 {offsets = [0, 64], sizes = [4, 32], strides = [1, 1]} : vector<4x128xf32> to vector<4x32xf32>
    %927 = math.tanh %926 : vector<4x32xf32>
    %928 = vector.extract_strided_slice %913 {offsets = [0, 96], sizes = [4, 32], strides = [1, 1]} : vector<4x128xf32> to vector<4x32xf32>
    %929 = arith.negf %928 : vector<4x32xf32>
    %930 = math.exp %929 : vector<4x32xf32>
    %cst_255 = arith.constant 1.000000e+00 : f32
    %931 = vector.broadcast %cst_255 : f32 to vector<4x32xf32>
    %932 = arith.addf %931, %930 : vector<4x32xf32>
    %933 = arith.divf %931, %932 : vector<4x32xf32>
    %934 = arith.mulf %925, %900 : vector<4x32xf32>
    %935 = arith.mulf %919, %927 : vector<4x32xf32>
    %936 = arith.addf %934, %935 : vector<4x32xf32>
    %937 = math.tanh %936 : vector<4x32xf32>
    %938 = arith.mulf %933, %937 : vector<4x32xf32>
    %939 = arith.addf %903, %938 : vector<4x32xf32>
    %c2_i32_256 = arith.constant 2 : i32
    %c7_i32_257 = arith.constant 7 : i32
    %940 = arith.subi %c7_i32_257, %c2_i32_256 : i32
    %941 = arith.index_cast %940 : i32 to index
    %c0_258 = arith.constant 0 : index
    %c0_259 = arith.constant 0 : index
    %942 = vector.load %arg14[%941, %c0_258, %c0_259] : memref<8x4x32xf32, #tpu.memory_space<vmem>>, vector<1x4x32xf32>
    %943 = vector.shape_cast %942 : vector<1x4x32xf32> to vector<4x32xf32>
    %944 = arith.index_cast %940 : i32 to index
    %c0_260 = arith.constant 0 : index
    %c0_261 = arith.constant 0 : index
    %945 = vector.load %arg15[%944, %c0_260, %c0_261] : memref<8x4x32xf32, #tpu.memory_space<vmem>>, vector<1x4x32xf32>
    %946 = vector.shape_cast %945 : vector<1x4x32xf32> to vector<4x32xf32>
    %947 = tpu.concatenate %943, %946, %938 in 1 : vector<4x32xf32>, vector<4x32xf32>, vector<4x32xf32> -> vector<4x96xf32>
    %cst_262 = arith.constant dense<0.000000e+00> : vector<4x128xf32>
    %948 = tpu.matmul %947, %863, %cst_262 {dimension_numbers = #tpu.dot_dimension_numbers<[1], [0], [0], [1], [0, 0, 1, 1], [], []>} : vector<4x96xf32>, vector<96x128xf32>, vector<4x128xf32> -> vector<4x128xf32>
    %949 = arith.addf %948, %866 : vector<4x128xf32>
    %950 = vector.extract_strided_slice %949 {offsets = [0, 0], sizes = [4, 32], strides = [1, 1]} : vector<4x128xf32> to vector<4x32xf32>
    %951 = arith.negf %950 : vector<4x32xf32>
    %952 = math.exp %951 : vector<4x32xf32>
    %cst_263 = arith.constant 1.000000e+00 : f32
    %953 = vector.broadcast %cst_263 : f32 to vector<4x32xf32>
    %954 = arith.addf %953, %952 : vector<4x32xf32>
    %955 = arith.divf %953, %954 : vector<4x32xf32>
    %956 = vector.extract_strided_slice %949 {offsets = [0, 32], sizes = [4, 32], strides = [1, 1]} : vector<4x128xf32> to vector<4x32xf32>
    %957 = arith.negf %956 : vector<4x32xf32>
    %958 = math.exp %957 : vector<4x32xf32>
    %cst_264 = arith.constant 1.000000e+00 : f32
    %959 = vector.broadcast %cst_264 : f32 to vector<4x32xf32>
    %960 = arith.addf %959, %958 : vector<4x32xf32>
    %961 = arith.divf %959, %960 : vector<4x32xf32>
    %962 = vector.extract_strided_slice %949 {offsets = [0, 64], sizes = [4, 32], strides = [1, 1]} : vector<4x128xf32> to vector<4x32xf32>
    %963 = math.tanh %962 : vector<4x32xf32>
    %964 = vector.extract_strided_slice %949 {offsets = [0, 96], sizes = [4, 32], strides = [1, 1]} : vector<4x128xf32> to vector<4x32xf32>
    %965 = arith.negf %964 : vector<4x32xf32>
    %966 = math.exp %965 : vector<4x32xf32>
    %cst_265 = arith.constant 1.000000e+00 : f32
    %967 = vector.broadcast %cst_265 : f32 to vector<4x32xf32>
    %968 = arith.addf %967, %966 : vector<4x32xf32>
    %969 = arith.divf %967, %968 : vector<4x32xf32>
    %970 = arith.mulf %961, %936 : vector<4x32xf32>
    %971 = arith.mulf %955, %963 : vector<4x32xf32>
    %972 = arith.addf %970, %971 : vector<4x32xf32>
    %973 = math.tanh %972 : vector<4x32xf32>
    %974 = arith.mulf %969, %973 : vector<4x32xf32>
    %975 = arith.addf %939, %974 : vector<4x32xf32>
    %c3_i32_266 = arith.constant 3 : i32
    %c7_i32_267 = arith.constant 7 : i32
    %976 = arith.subi %c7_i32_267, %c3_i32_266 : i32
    %977 = arith.index_cast %976 : i32 to index
    %c0_268 = arith.constant 0 : index
    %c0_269 = arith.constant 0 : index
    %978 = vector.load %arg14[%977, %c0_268, %c0_269] : memref<8x4x32xf32, #tpu.memory_space<vmem>>, vector<1x4x32xf32>
    %979 = vector.shape_cast %978 : vector<1x4x32xf32> to vector<4x32xf32>
    %980 = arith.index_cast %976 : i32 to index
    %c0_270 = arith.constant 0 : index
    %c0_271 = arith.constant 0 : index
    %981 = vector.load %arg15[%980, %c0_270, %c0_271] : memref<8x4x32xf32, #tpu.memory_space<vmem>>, vector<1x4x32xf32>
    %982 = vector.shape_cast %981 : vector<1x4x32xf32> to vector<4x32xf32>
    %983 = tpu.concatenate %979, %982, %974 in 1 : vector<4x32xf32>, vector<4x32xf32>, vector<4x32xf32> -> vector<4x96xf32>
    %cst_272 = arith.constant dense<0.000000e+00> : vector<4x128xf32>
    %984 = tpu.matmul %983, %863, %cst_272 {dimension_numbers = #tpu.dot_dimension_numbers<[1], [0], [0], [1], [0, 0, 1, 1], [], []>} : vector<4x96xf32>, vector<96x128xf32>, vector<4x128xf32> -> vector<4x128xf32>
    %985 = arith.addf %984, %866 : vector<4x128xf32>
    %986 = vector.extract_strided_slice %985 {offsets = [0, 0], sizes = [4, 32], strides = [1, 1]} : vector<4x128xf32> to vector<4x32xf32>
    %987 = arith.negf %986 : vector<4x32xf32>
    %988 = math.exp %987 : vector<4x32xf32>
    %cst_273 = arith.constant 1.000000e+00 : f32
    %989 = vector.broadcast %cst_273 : f32 to vector<4x32xf32>
    %990 = arith.addf %989, %988 : vector<4x32xf32>
    %991 = arith.divf %989, %990 : vector<4x32xf32>
    %992 = vector.extract_strided_slice %985 {offsets = [0, 32], sizes = [4, 32], strides = [1, 1]} : vector<4x128xf32> to vector<4x32xf32>
    %993 = arith.negf %992 : vector<4x32xf32>
    %994 = math.exp %993 : vector<4x32xf32>
    %cst_274 = arith.constant 1.000000e+00 : f32
    %995 = vector.broadcast %cst_274 : f32 to vector<4x32xf32>
    %996 = arith.addf %995, %994 : vector<4x32xf32>
    %997 = arith.divf %995, %996 : vector<4x32xf32>
    %998 = vector.extract_strided_slice %985 {offsets = [0, 64], sizes = [4, 32], strides = [1, 1]} : vector<4x128xf32> to vector<4x32xf32>
    %999 = math.tanh %998 : vector<4x32xf32>
    %1000 = vector.extract_strided_slice %985 {offsets = [0, 96], sizes = [4, 32], strides = [1, 1]} : vector<4x128xf32> to vector<4x32xf32>
    %1001 = arith.negf %1000 : vector<4x32xf32>
    %1002 = math.exp %1001 : vector<4x32xf32>
    %cst_275 = arith.constant 1.000000e+00 : f32
    %1003 = vector.broadcast %cst_275 : f32 to vector<4x32xf32>
    %1004 = arith.addf %1003, %1002 : vector<4x32xf32>
    %1005 = arith.divf %1003, %1004 : vector<4x32xf32>
    %1006 = arith.mulf %997, %972 : vector<4x32xf32>
    %1007 = arith.mulf %991, %999 : vector<4x32xf32>
    %1008 = arith.addf %1006, %1007 : vector<4x32xf32>
    %1009 = math.tanh %1008 : vector<4x32xf32>
    %1010 = arith.mulf %1005, %1009 : vector<4x32xf32>
    %1011 = arith.addf %975, %1010 : vector<4x32xf32>
    %c4_i32_276 = arith.constant 4 : i32
    %c7_i32_277 = arith.constant 7 : i32
    %1012 = arith.subi %c7_i32_277, %c4_i32_276 : i32
    %1013 = arith.index_cast %1012 : i32 to index
    %c0_278 = arith.constant 0 : index
    %c0_279 = arith.constant 0 : index
    %1014 = vector.load %arg14[%1013, %c0_278, %c0_279] : memref<8x4x32xf32, #tpu.memory_space<vmem>>, vector<1x4x32xf32>
    %1015 = vector.shape_cast %1014 : vector<1x4x32xf32> to vector<4x32xf32>
    %1016 = arith.index_cast %1012 : i32 to index
    %c0_280 = arith.constant 0 : index
    %c0_281 = arith.constant 0 : index
    %1017 = vector.load %arg15[%1016, %c0_280, %c0_281] : memref<8x4x32xf32, #tpu.memory_space<vmem>>, vector<1x4x32xf32>
    %1018 = vector.shape_cast %1017 : vector<1x4x32xf32> to vector<4x32xf32>
    %1019 = tpu.concatenate %1015, %1018, %1010 in 1 : vector<4x32xf32>, vector<4x32xf32>, vector<4x32xf32> -> vector<4x96xf32>
    %cst_282 = arith.constant dense<0.000000e+00> : vector<4x128xf32>
    %1020 = tpu.matmul %1019, %863, %cst_282 {dimension_numbers = #tpu.dot_dimension_numbers<[1], [0], [0], [1], [0, 0, 1, 1], [], []>} : vector<4x96xf32>, vector<96x128xf32>, vector<4x128xf32> -> vector<4x128xf32>
    %1021 = arith.addf %1020, %866 : vector<4x128xf32>
    %1022 = vector.extract_strided_slice %1021 {offsets = [0, 0], sizes = [4, 32], strides = [1, 1]} : vector<4x128xf32> to vector<4x32xf32>
    %1023 = arith.negf %1022 : vector<4x32xf32>
    %1024 = math.exp %1023 : vector<4x32xf32>
    %cst_283 = arith.constant 1.000000e+00 : f32
    %1025 = vector.broadcast %cst_283 : f32 to vector<4x32xf32>
    %1026 = arith.addf %1025, %1024 : vector<4x32xf32>
    %1027 = arith.divf %1025, %1026 : vector<4x32xf32>
    %1028 = vector.extract_strided_slice %1021 {offsets = [0, 32], sizes = [4, 32], strides = [1, 1]} : vector<4x128xf32> to vector<4x32xf32>
    %1029 = arith.negf %1028 : vector<4x32xf32>
    %1030 = math.exp %1029 : vector<4x32xf32>
    %cst_284 = arith.constant 1.000000e+00 : f32
    %1031 = vector.broadcast %cst_284 : f32 to vector<4x32xf32>
    %1032 = arith.addf %1031, %1030 : vector<4x32xf32>
    %1033 = arith.divf %1031, %1032 : vector<4x32xf32>
    %1034 = vector.extract_strided_slice %1021 {offsets = [0, 64], sizes = [4, 32], strides = [1, 1]} : vector<4x128xf32> to vector<4x32xf32>
    %1035 = math.tanh %1034 : vector<4x32xf32>
    %1036 = vector.extract_strided_slice %1021 {offsets = [0, 96], sizes = [4, 32], strides = [1, 1]} : vector<4x128xf32> to vector<4x32xf32>
    %1037 = arith.negf %1036 : vector<4x32xf32>
    %1038 = math.exp %1037 : vector<4x32xf32>
    %cst_285 = arith.constant 1.000000e+00 : f32
    %1039 = vector.broadcast %cst_285 : f32 to vector<4x32xf32>
    %1040 = arith.addf %1039, %1038 : vector<4x32xf32>
    %1041 = arith.divf %1039, %1040 : vector<4x32xf32>
    %1042 = arith.mulf %1033, %1008 : vector<4x32xf32>
    %1043 = arith.mulf %1027, %1035 : vector<4x32xf32>
    %1044 = arith.addf %1042, %1043 : vector<4x32xf32>
    %1045 = math.tanh %1044 : vector<4x32xf32>
    %1046 = arith.mulf %1041, %1045 : vector<4x32xf32>
    %1047 = arith.addf %1011, %1046 : vector<4x32xf32>
    %c5_i32_286 = arith.constant 5 : i32
    %c7_i32_287 = arith.constant 7 : i32
    %1048 = arith.subi %c7_i32_287, %c5_i32_286 : i32
    %1049 = arith.index_cast %1048 : i32 to index
    %c0_288 = arith.constant 0 : index
    %c0_289 = arith.constant 0 : index
    %1050 = vector.load %arg14[%1049, %c0_288, %c0_289] : memref<8x4x32xf32, #tpu.memory_space<vmem>>, vector<1x4x32xf32>
    %1051 = vector.shape_cast %1050 : vector<1x4x32xf32> to vector<4x32xf32>
    %1052 = arith.index_cast %1048 : i32 to index
    %c0_290 = arith.constant 0 : index
    %c0_291 = arith.constant 0 : index
    %1053 = vector.load %arg15[%1052, %c0_290, %c0_291] : memref<8x4x32xf32, #tpu.memory_space<vmem>>, vector<1x4x32xf32>
    %1054 = vector.shape_cast %1053 : vector<1x4x32xf32> to vector<4x32xf32>
    %1055 = tpu.concatenate %1051, %1054, %1046 in 1 : vector<4x32xf32>, vector<4x32xf32>, vector<4x32xf32> -> vector<4x96xf32>
    %cst_292 = arith.constant dense<0.000000e+00> : vector<4x128xf32>
    %1056 = tpu.matmul %1055, %863, %cst_292 {dimension_numbers = #tpu.dot_dimension_numbers<[1], [0], [0], [1], [0, 0, 1, 1], [], []>} : vector<4x96xf32>, vector<96x128xf32>, vector<4x128xf32> -> vector<4x128xf32>
    %1057 = arith.addf %1056, %866 : vector<4x128xf32>
    %1058 = vector.extract_strided_slice %1057 {offsets = [0, 0], sizes = [4, 32], strides = [1, 1]} : vector<4x128xf32> to vector<4x32xf32>
    %1059 = arith.negf %1058 : vector<4x32xf32>
    %1060 = math.exp %1059 : vector<4x32xf32>
    %cst_293 = arith.constant 1.000000e+00 : f32
    %1061 = vector.broadcast %cst_293 : f32 to vector<4x32xf32>
    %1062 = arith.addf %1061, %1060 : vector<4x32xf32>
    %1063 = arith.divf %1061, %1062 : vector<4x32xf32>
    %1064 = vector.extract_strided_slice %1057 {offsets = [0, 32], sizes = [4, 32], strides = [1, 1]} : vector<4x128xf32> to vector<4x32xf32>
    %1065 = arith.negf %1064 : vector<4x32xf32>
    %1066 = math.exp %1065 : vector<4x32xf32>
    %cst_294 = arith.constant 1.000000e+00 : f32
    %1067 = vector.broadcast %cst_294 : f32 to vector<4x32xf32>
    %1068 = arith.addf %1067, %1066 : vector<4x32xf32>
    %1069 = arith.divf %1067, %1068 : vector<4x32xf32>
    %1070 = vector.extract_strided_slice %1057 {offsets = [0, 64], sizes = [4, 32], strides = [1, 1]} : vector<4x128xf32> to vector<4x32xf32>
    %1071 = math.tanh %1070 : vector<4x32xf32>
    %1072 = vector.extract_strided_slice %1057 {offsets = [0, 96], sizes = [4, 32], strides = [1, 1]} : vector<4x128xf32> to vector<4x32xf32>
    %1073 = arith.negf %1072 : vector<4x32xf32>
    %1074 = math.exp %1073 : vector<4x32xf32>
    %cst_295 = arith.constant 1.000000e+00 : f32
    %1075 = vector.broadcast %cst_295 : f32 to vector<4x32xf32>
    %1076 = arith.addf %1075, %1074 : vector<4x32xf32>
    %1077 = arith.divf %1075, %1076 : vector<4x32xf32>
    %1078 = arith.mulf %1069, %1044 : vector<4x32xf32>
    %1079 = arith.mulf %1063, %1071 : vector<4x32xf32>
    %1080 = arith.addf %1078, %1079 : vector<4x32xf32>
    %1081 = math.tanh %1080 : vector<4x32xf32>
    %1082 = arith.mulf %1077, %1081 : vector<4x32xf32>
    %1083 = arith.addf %1047, %1082 : vector<4x32xf32>
    %c6_i32_296 = arith.constant 6 : i32
    %c7_i32_297 = arith.constant 7 : i32
    %1084 = arith.subi %c7_i32_297, %c6_i32_296 : i32
    %1085 = arith.index_cast %1084 : i32 to index
    %c0_298 = arith.constant 0 : index
    %c0_299 = arith.constant 0 : index
    %1086 = vector.load %arg14[%1085, %c0_298, %c0_299] : memref<8x4x32xf32, #tpu.memory_space<vmem>>, vector<1x4x32xf32>
    %1087 = vector.shape_cast %1086 : vector<1x4x32xf32> to vector<4x32xf32>
    %1088 = arith.index_cast %1084 : i32 to index
    %c0_300 = arith.constant 0 : index
    %c0_301 = arith.constant 0 : index
    %1089 = vector.load %arg15[%1088, %c0_300, %c0_301] : memref<8x4x32xf32, #tpu.memory_space<vmem>>, vector<1x4x32xf32>
    %1090 = vector.shape_cast %1089 : vector<1x4x32xf32> to vector<4x32xf32>
    %1091 = tpu.concatenate %1087, %1090, %1082 in 1 : vector<4x32xf32>, vector<4x32xf32>, vector<4x32xf32> -> vector<4x96xf32>
    %cst_302 = arith.constant dense<0.000000e+00> : vector<4x128xf32>
    %1092 = tpu.matmul %1091, %863, %cst_302 {dimension_numbers = #tpu.dot_dimension_numbers<[1], [0], [0], [1], [0, 0, 1, 1], [], []>} : vector<4x96xf32>, vector<96x128xf32>, vector<4x128xf32> -> vector<4x128xf32>
    %1093 = arith.addf %1092, %866 : vector<4x128xf32>
    %1094 = vector.extract_strided_slice %1093 {offsets = [0, 0], sizes = [4, 32], strides = [1, 1]} : vector<4x128xf32> to vector<4x32xf32>
    %1095 = arith.negf %1094 : vector<4x32xf32>
    %1096 = math.exp %1095 : vector<4x32xf32>
    %cst_303 = arith.constant 1.000000e+00 : f32
    %1097 = vector.broadcast %cst_303 : f32 to vector<4x32xf32>
    %1098 = arith.addf %1097, %1096 : vector<4x32xf32>
    %1099 = arith.divf %1097, %1098 : vector<4x32xf32>
    %1100 = vector.extract_strided_slice %1093 {offsets = [0, 32], sizes = [4, 32], strides = [1, 1]} : vector<4x128xf32> to vector<4x32xf32>
    %1101 = arith.negf %1100 : vector<4x32xf32>
    %1102 = math.exp %1101 : vector<4x32xf32>
    %cst_304 = arith.constant 1.000000e+00 : f32
    %1103 = vector.broadcast %cst_304 : f32 to vector<4x32xf32>
    %1104 = arith.addf %1103, %1102 : vector<4x32xf32>
    %1105 = arith.divf %1103, %1104 : vector<4x32xf32>
    %1106 = vector.extract_strided_slice %1093 {offsets = [0, 64], sizes = [4, 32], strides = [1, 1]} : vector<4x128xf32> to vector<4x32xf32>
    %1107 = math.tanh %1106 : vector<4x32xf32>
    %1108 = vector.extract_strided_slice %1093 {offsets = [0, 96], sizes = [4, 32], strides = [1, 1]} : vector<4x128xf32> to vector<4x32xf32>
    %1109 = arith.negf %1108 : vector<4x32xf32>
    %1110 = math.exp %1109 : vector<4x32xf32>
    %cst_305 = arith.constant 1.000000e+00 : f32
    %1111 = vector.broadcast %cst_305 : f32 to vector<4x32xf32>
    %1112 = arith.addf %1111, %1110 : vector<4x32xf32>
    %1113 = arith.divf %1111, %1112 : vector<4x32xf32>
    %1114 = arith.mulf %1105, %1080 : vector<4x32xf32>
    %1115 = arith.mulf %1099, %1107 : vector<4x32xf32>
    %1116 = arith.addf %1114, %1115 : vector<4x32xf32>
    %1117 = math.tanh %1116 : vector<4x32xf32>
    %1118 = arith.mulf %1113, %1117 : vector<4x32xf32>
    %1119 = arith.addf %1083, %1118 : vector<4x32xf32>
    %c7_i32_306 = arith.constant 7 : i32
    %c7_i32_307 = arith.constant 7 : i32
    %1120 = arith.subi %c7_i32_307, %c7_i32_306 : i32
    %1121 = arith.index_cast %1120 : i32 to index
    %c0_308 = arith.constant 0 : index
    %c0_309 = arith.constant 0 : index
    %1122 = vector.load %arg14[%1121, %c0_308, %c0_309] : memref<8x4x32xf32, #tpu.memory_space<vmem>>, vector<1x4x32xf32>
    %1123 = vector.shape_cast %1122 : vector<1x4x32xf32> to vector<4x32xf32>
    %1124 = arith.index_cast %1120 : i32 to index
    %c0_310 = arith.constant 0 : index
    %c0_311 = arith.constant 0 : index
    %1125 = vector.load %arg15[%1124, %c0_310, %c0_311] : memref<8x4x32xf32, #tpu.memory_space<vmem>>, vector<1x4x32xf32>
    %1126 = vector.shape_cast %1125 : vector<1x4x32xf32> to vector<4x32xf32>
    %1127 = tpu.concatenate %1123, %1126, %1118 in 1 : vector<4x32xf32>, vector<4x32xf32>, vector<4x32xf32> -> vector<4x96xf32>
    %cst_312 = arith.constant dense<0.000000e+00> : vector<4x128xf32>
    %1128 = tpu.matmul %1127, %863, %cst_312 {dimension_numbers = #tpu.dot_dimension_numbers<[1], [0], [0], [1], [0, 0, 1, 1], [], []>} : vector<4x96xf32>, vector<96x128xf32>, vector<4x128xf32> -> vector<4x128xf32>
    %1129 = arith.addf %1128, %866 : vector<4x128xf32>
    %1130 = vector.extract_strided_slice %1129 {offsets = [0, 0], sizes = [4, 32], strides = [1, 1]} : vector<4x128xf32> to vector<4x32xf32>
    %1131 = arith.negf %1130 : vector<4x32xf32>
    %1132 = math.exp %1131 : vector<4x32xf32>
    %cst_313 = arith.constant 1.000000e+00 : f32
    %1133 = vector.broadcast %cst_313 : f32 to vector<4x32xf32>
    %1134 = arith.addf %1133, %1132 : vector<4x32xf32>
    %1135 = arith.divf %1133, %1134 : vector<4x32xf32>
    %1136 = vector.extract_strided_slice %1129 {offsets = [0, 32], sizes = [4, 32], strides = [1, 1]} : vector<4x128xf32> to vector<4x32xf32>
    %1137 = arith.negf %1136 : vector<4x32xf32>
    %1138 = math.exp %1137 : vector<4x32xf32>
    %cst_314 = arith.constant 1.000000e+00 : f32
    %1139 = vector.broadcast %cst_314 : f32 to vector<4x32xf32>
    %1140 = arith.addf %1139, %1138 : vector<4x32xf32>
    %1141 = arith.divf %1139, %1140 : vector<4x32xf32>
    %1142 = vector.extract_strided_slice %1129 {offsets = [0, 64], sizes = [4, 32], strides = [1, 1]} : vector<4x128xf32> to vector<4x32xf32>
    %1143 = math.tanh %1142 : vector<4x32xf32>
    %1144 = vector.extract_strided_slice %1129 {offsets = [0, 96], sizes = [4, 32], strides = [1, 1]} : vector<4x128xf32> to vector<4x32xf32>
    %1145 = arith.negf %1144 : vector<4x32xf32>
    %1146 = math.exp %1145 : vector<4x32xf32>
    %cst_315 = arith.constant 1.000000e+00 : f32
    %1147 = vector.broadcast %cst_315 : f32 to vector<4x32xf32>
    %1148 = arith.addf %1147, %1146 : vector<4x32xf32>
    %1149 = arith.divf %1147, %1148 : vector<4x32xf32>
    %1150 = arith.mulf %1141, %1116 : vector<4x32xf32>
    %1151 = arith.mulf %1135, %1143 : vector<4x32xf32>
    %1152 = arith.addf %1150, %1151 : vector<4x32xf32>
    %1153 = math.tanh %1152 : vector<4x32xf32>
    %1154 = arith.mulf %1149, %1153 : vector<4x32xf32>
    %1155 = arith.addf %1119, %1154 : vector<4x32xf32>
    %c8_i32_316 = arith.constant 8 : i32
    %1156 = tpu.concatenate %862, %1155 in 1 : vector<4x32xf32>, vector<4x32xf32> -> vector<4x64xf32>
    %c0_317 = arith.constant 0 : index
    %c0_318 = arith.constant 0 : index
    %1157 = vector.load %arg9[%c0_317, %c0_318] : memref<64x32xf32, #tpu.memory_space<vmem>>, vector<64x32xf32>
    %cst_319 = arith.constant dense<0.000000e+00> : vector<4x32xf32>
    %1158 = tpu.matmul %1156, %1157, %cst_319 {dimension_numbers = #tpu.dot_dimension_numbers<[1], [0], [0], [1], [0, 0, 1, 1], [], []>} : vector<4x64xf32>, vector<64x32xf32>, vector<4x32xf32> -> vector<4x32xf32>
    %c0_320 = arith.constant 0 : index
    %c0_321 = arith.constant 0 : index
    %1159 = vector.load %arg10[%c0_320, %c0_321] : memref<1x32xf32, #tpu.memory_space<vmem>>, vector<1x32xf32>
    %1160 = vector.broadcast %1159 : vector<1x32xf32> to vector<4x32xf32>
    %1161 = arith.addf %1158, %1160 : vector<4x32xf32>
    %c0_322 = arith.constant 0 : index
    %c0_323 = arith.constant 0 : index
    %1162 = vector.load %arg11[%c0_322, %c0_323] : memref<32x6xf32, #tpu.memory_space<vmem>>, vector<32x6xf32>
    %cst_324 = arith.constant dense<0.000000e+00> : vector<4x6xf32>
    %1163 = tpu.matmul %1161, %1162, %cst_324 {dimension_numbers = #tpu.dot_dimension_numbers<[1], [0], [0], [1], [0, 0, 1, 1], [], []>} : vector<4x32xf32>, vector<32x6xf32>, vector<4x6xf32> -> vector<4x6xf32>
    %c0_325 = arith.constant 0 : index
    %c0_326 = arith.constant 0 : index
    %1164 = vector.load %arg12[%c0_325, %c0_326] : memref<1x6xf32, #tpu.memory_space<vmem>>, vector<1x6xf32>
    %1165 = vector.broadcast %1164 : vector<1x6xf32> to vector<4x6xf32>
    %1166 = arith.addf %1163, %1165 : vector<4x6xf32>
    %c0_327 = arith.constant 0 : index
    %c0_328 = arith.constant 0 : index
    %1167 = vector.load %arg13[%c0_327, %c0_328] : memref<4x6xf32, #tpu.memory_space<vmem>>, vector<4x6xf32>
    tpu.vector_store %arg13[%c0_327, %c0_328], %1166 {strides = array<i32>} : memref<4x6xf32, #tpu.memory_space<vmem>>, vector<4x6xf32>,
    return
  }
}

</mosaic_0001>

<bundles_post_ra>
// kernel: lstm_net_forward.1
= control target key start
LH: loop header
LB: loop body
LE: loop exit
PB: predicated region body
PF: predicated region fallthrough
CT: control target
= control target key end

     0   :  { %v5241_v1 = vmov 0.0   ;;  %vm5242_vm0 = vmmov 0   ;;  %s6788_s0 = inlined_call_operand.vmem [shape: f32[8,4,32], index: 0, kind: input, shape index: {}]   ;;  %s6789_s1 = inlined_call_operand.vmem [shape: f32[64,128], index: 1, kind: input, shape index: {}]   ;;  %s6790_s2 = inlined_call_operand.vmem [shape: f32[1,128], index: 2, kind: input, shape index: {}]   ;;  %s6791_s3 = inlined_call_operand.vmem [shape: f32[64,128], index: 3, kind: input, shape index: {}]   ;;  %s6792_s4 = inlined_call_operand.vmem [shape: f32[1,128], index: 4, kind: input, shape index: {}]   ;;  %s6793_s5 = inlined_call_operand.vmem [shape: f32[96,128], index: 5, kind: input, shape index: {}]   ;;  %s6794_s6 = inlined_call_operand.vmem [shape: f32[1,128], index: 6, kind: input, shape index: {}]   ;;  %s6795_s7 = inlined_call_operand.vmem [shape: f32[96,128], index: 7, kind: input, shape index: {}]   ;;  %s6796_s8 = inlined_call_operand.vmem [shape: f32[1,128], index: 8, kind: input, shape index: {}]   ;;  %s6797_s9 = inlined_call_operand.vmem [shape: f32[64,32], index: 9, kind: input, shape index: {}]   ;;  %s6798_s10 = inlined_call_operand.vmem [shape: f32[1,32], index: 10, kind: input, shape index: {}]   ;;  %s6799_s11 = inlined_call_operand.vmem [shape: f32[32,6], index: 11, kind: input, shape index: {}]   ;;  %s6800_s12 = inlined_call_operand.vmem [shape: f32[1,6], index: 12, kind: input, shape index: {}]   ;;  %s6801_s13 = inlined_call_operand.hbm [shape: f32[4,6], index: 13, kind: output, shape index: {}]  }
   0x1   :  { %v5320_v0 = vld [vmem:[%s6789_s1 + $0x38] sm:$0xff]  ;;  %4189 = vmatprep.subr.mxu0 %v5241_v1  ;;  %v5326_v2 = vld [vmem:[%s6789_s1 + $0x30] sm:$0xff]  ;;  %4205 = vmatprep.mubr.msk.f32.mxu0 %vm5242_vm0, %v5241_v1  ;;  %v5336_v3 = vld [vmem:[%s6789_s1 + $0x28] sm:$0xff] }
   0x2   :  { %4190 = vmatpush3.msra.mxu0 %v5320_v0  ;;  %4208 = vmatprep.subr.mxu1 %v5241_v1 }
   0x3   :  { %4191 = vmatprep.subr.mxu0 %v5241_v1  ;;  %4209 = vmatpush3.msra.mxu1 %v5320_v0 }
   0x4   :  { %18 = vsyncpa [#allocation5], 0  ;;  %4192 = vmatpush3.msra.mxu0 %v5326_v2  ;;  %4210 = vmatprep.subr.mxu1 %v5241_v1  ;;  %v5345_v4 = vld [vmem:[%s6789_s1 + $0x20] sm:$0xff]  ;;  %v5354_v5 = vld [vmem:[%s6789_s1 + $0x18] sm:$0xff]  ;;  %vm61_vm1 = vcmask 261120   ;;  %vm63_vm2 = vcmask 523264  }
   0x5   :  { %4193 = vmatprep.subr.mxu0 %v5241_v1  ;;  %4211 = vmatpush3.msra.mxu1 %v5326_v2  ;;  %v5363_v6 = vld [vmem:[%s6789_s1 + $0x10] sm:$0xff]  ;;  %v5372_v7 = vld [vmem:[%s6789_s1 + $0x8] sm:$0xff]  ;;  %v60_v8 = vld [vmem:[%s6788_s0] sm:$0xf]  ;;  %s5243_s27 = smov 64   ;;  %s5244_s28 = smov 32  }
   0x6   :  { %4194 = vmatpush3.msra.mxu0 %v5336_v3  ;;  %4212 = vmatprep.subr.mxu1 %v5241_v1  ;;  %v5384_v9 = vld [vmem:[%s6789_s1] sm:$0xff]  ;;  %v62_v10 = vsel %vm61_vm1, %v60_v8, 0.0  ;;  %v3743_v47 = vld [vmem:[%s6788_s0 + $0x8] sm:$0xf]  ;;  %vm165_vm3 = vcmask 257024   ;;  %vm1832_vm4 = vcmask 785408  }
   0x7   :  { %4195 = vmatprep.subr.mxu0 %v5241_v1  ;;  %4213 = vmatpush3.msra.mxu1 %v5336_v3  ;;  %v5421_v11 = vld [vmem:[%s6790_s2] ss:$0 sm:$0xff]  ;;  %v3740_v28 = vld [vmem:[%s6788_s0 + $0x4] sm:$0xf]  ;;  %s5245_s30 = smov 96   ;;  %vm3721_vm5 = vcmask 44032  }
   0x8   :  { %4196 = vmatpush3.msra.mxu0 %v5345_v4  ;;  %4214 = vmatprep.subr.mxu1 %v5241_v1 }
   0x9   :  { %4197 = vmatprep.subr.mxu0 %v5241_v1  ;;  %4215 = vmatpush3.msra.mxu1 %v5345_v4 }
   0xa   :  { %4198 = vmatpush3.msra.mxu0 %v5354_v5  ;;  %4216 = vmatprep.subr.mxu1 %v5241_v1 }
   0xb   :  { %4199 = vmatprep.subr.mxu0 %v5241_v1  ;;  %4217 = vmatpush3.msra.mxu1 %v5354_v5 }
   0xc   :  { %4200 = vmatpush3.msra.mxu0 %v5363_v6  ;;  %4218 = vmatprep.subr.mxu1 %v5241_v1 }
   0xd   :  { %4201 = vmatprep.subr.mxu0 %v5241_v1  ;;  %4219 = vmatpush3.msra.mxu1 %v5363_v6 }
   0xe   :  { %4202 = vmatpush3.msra.mxu0 %v5372_v7  ;;  %4220 = vmatprep.subr.mxu1 %v5241_v1 }
   0xf   :  { %4203 = vmatprep.subr.mxu0 %v5241_v1  ;;  %4221 = vmatpush3.msra.mxu1 %v5372_v7 }
  0x10   :  { %4204 = vmatpush3.msra.mxu0 %v5384_v9  ;;  %4222 = vmatprep.subr.mxu1 %v5241_v1 }
  0x11   :  { %4206 = vmatmul.mubr.msk.f32.vlgmr.msra.gmra.mxu0 %vm63_vm2, %v62_v10  ;;  %4223 = vmatpush3.msra.mxu1 %v5384_v9 }
  0x12   :  { %4224 = vmatprep.mubr.msk.f32.mxu1 %vm5242_vm0, %v5241_v1  ;;  %4227 = vmatprep.subr.mxu0 %v5241_v1 }
  0x13   :  { %4228 = vmatpush3.msra.mxu0 %v5320_v0  ;;  %4243 = vmatprep.mubr.msk.f32.mxu0 %vm5242_vm0, %v5241_v1 }
  0x14   :  { %4229 = vmatprep.subr.mxu0 %v5241_v1  ;;  %4246 = vmatprep.subr.mxu1 %v5241_v1 }
  0x15   :  { %4230 = vmatpush3.msra.mxu0 %v5326_v2 }
  0x16   :  { %4231 = vmatprep.subr.mxu0 %v5241_v1 }
  0x17   :  { %4232 = vmatpush3.msra.mxu0 %v5336_v3 }
  0x18   :  { %4233 = vmatprep.subr.mxu0 %v5241_v1 }
  0x19   :  { %4234 = vmatpush3.msra.mxu0 %v5345_v4 }
  0x1a   :  { %4235 = vmatprep.subr.mxu0 %v5241_v1 }
  0x1b   :  { %4236 = vmatpush3.msra.mxu0 %v5354_v5 }
  0x1c   :  { %4237 = vmatprep.subr.mxu0 %v5241_v1 }
  0x1d   :  { %4238 = vmatpush3.msra.mxu0 %v5363_v6 }
  0x1e   :  { %4239 = vmatprep.subr.mxu0 %v5241_v1 }
  0x1f   :  { %4240 = vmatpush3.msra.mxu0 %v5372_v7 }
  0x20   :  { %4241 = vmatprep.subr.mxu0 %v5241_v1 }
  0x21   :  { %4242 = vmatpush3.msra.mxu0 %v5384_v9 }
  0x22   :  { %4265 = vmatprep.subr.mxu0 %v5241_v1 }
  0xd1   :  { %v133_v12 = vpop.f32.mrf.mxu0 }
  0xd2   :  { %v134_v13 = vadd.f32 %v5421_v11, %v133_v12  ;;  %v3746_v12 = vld [vmem:[%s6788_s0 + $0xc] sm:$0xf] }
  0xd3   :  { %v4207_v14 = vpop.f32.mrf.mxu0 }
  0xd4   :  { %4961 = vtanh.f32 %v134_v13  ;;  %v3739_v16 = vmul.f32 -1.442695, %v134_v13 }
  0xd6   :  { %4963 = vpow2.f32 %v3739_v16 }
  0xe1   :  { %v4962_v15 = vpop.eup %4961 }
  0xe2   :  { %146 = vrot.lane.b32.xlu0 %v4962_v15, %s5243_s27 }
  0xe3   :  { %v4964_v17 = vpop.eup %4963 }
  0xe4   :  { %v140_v18 = vadd.f32 1.0, %v4964_v17 }
  0xe6   :  { %4965 = vrcp.f32 %v140_v18 }
  0xf3   :  { %v4966_v19 = vpop.eup %4965 }
  0xf4   :  { %v144_v22 = vmul.f32 0.0, %v4966_v19 }
 0x154   :  { %v147_v20 = vpop.permute.xlu0 %146 }
 0x155   :  { %v149_v21 = vmul.f32 %v4966_v19, %v147_v20 }
 0x157   :  { %151 = vrot.lane.b32.xlu0 %v149_v21, %s5244_s28 }
 0x1c9   :  { %v152_v23 = vpop.permute.xlu0 %151 }
 0x1ca   :  { %v154_v24 = vadd.f32 %v152_v23, %v144_v22 }
 0x1cc   :  { %4967 = vtanh.f32 %v154_v24 }
 0x1d9   :  { %v4968_v25 = vpop.eup %4967 }
 0x1da   :  { %157 = vrot.lane.b32.xlu1 %v4968_v25, %s5243_s27 }
 0x24c   :  { %v158_v26 = vpop.permute.xlu1 %157 }
 0x24d   :  { %v5427_v27 = vmul.f32 %v4966_v19, %v158_v26 }
 0x24f   :  { %169 = vrot.lane.b32.xlu1 %v5427_v27, %s5243_s27 }
 0x2c1   :  { %v170_v29 = vpop.permute.xlu1 %169 }
 0x2c2   :  { %v172_v30 = vsel %vm61_vm1, %v3740_v28, %v170_v29 }
 0x2c3   :  { %4225 = vmatmul.mubr.msk.f32.vlgmr.msra.gmra.mxu1 %vm63_vm2, %v172_v30 }
 0x2c4   :  { %4247 = vmatpush3.msra.mxu1 %v5320_v0  ;;  %4262 = vmatprep.mubr.msk.f32.mxu1 %vm5242_vm0, %v5241_v1 }
 0x2c5   :  { %4248 = vmatprep.subr.mxu1 %v5241_v1 }
 0x2c6   :  { %4249 = vmatpush3.msra.mxu1 %v5326_v2 }
 0x2c7   :  { %4250 = vmatprep.subr.mxu1 %v5241_v1 }
 0x2c8   :  { %4251 = vmatpush3.msra.mxu1 %v5336_v3 }
 0x2c9   :  { %4252 = vmatprep.subr.mxu1 %v5241_v1 }
 0x2ca   :  { %4253 = vmatpush3.msra.mxu1 %v5345_v4 }
 0x2cb   :  { %4254 = vmatprep.subr.mxu1 %v5241_v1 }
 0x2cc   :  { %4255 = vmatpush3.msra.mxu1 %v5354_v5 }
 0x2cd   :  { %4256 = vmatprep.subr.mxu1 %v5241_v1 }
 0x2ce   :  { %4257 = vmatpush3.msra.mxu1 %v5363_v6 }
 0x2cf   :  { %4258 = vmatprep.subr.mxu1 %v5241_v1 }
 0x2d0   :  { %4259 = vmatpush3.msra.mxu1 %v5372_v7 }
 0x2d1   :  { %4260 = vmatprep.subr.mxu1 %v5241_v1 }
 0x2d2   :  { %4261 = vmatpush3.msra.mxu1 %v5384_v9 }
 0x2d3   :  { %4284 = vmatprep.subr.mxu1 %v5241_v1 }
 0x383   :  { %v242_v31 = vpop.f32.mrf.mxu1 }
 0x384   :  { %v243_v32 = vadd.f32 %v5421_v11, %v242_v31 }
 0x385   :  { %v4226_v33 = vpop.f32.mrf.mxu1 }
 0x386   :  { %4969 = vtanh.f32 %v243_v32  ;;  %v3742_v35 = vmul.f32 -1.442695, %v243_v32  ;;  %v3749_v32 = vld [vmem:[%s6788_s0 + $0x10] sm:$0xf] }
 0x388   :  { %4971 = vpow2.f32 %v3742_v35 }
 0x393   :  { %v4970_v34 = vpop.eup %4969 }
 0x394   :  { %255 = vrot.lane.b32.xlu0 %v4970_v34, %s5243_s27 }
 0x395   :  { %v4972_v36 = vpop.eup %4971 }
 0x396   :  { %v249_v37 = vadd.f32 1.0, %v4972_v36 }
 0x398   :  { %4973 = vrcp.f32 %v249_v37 }
 0x3a5   :  { %v4974_v38 = vpop.eup %4973 }
 0x3a6   :  { %v253_v41 = vmul.f32 %v4974_v38, %v154_v24 }
 0x406   :  { %v256_v39 = vpop.permute.xlu0 %255 }
 0x407   :  { %v258_v40 = vmul.f32 %v4974_v38, %v256_v39 }
 0x409   :  { %260 = vrot.lane.b32.xlu1 %v258_v40, %s5244_s28 }
 0x47b   :  { %v261_v42 = vpop.permute.xlu1 %260 }
 0x47c   :  { %v263_v43 = vadd.f32 %v261_v42, %v253_v41 }
 0x47e   :  { %4975 = vtanh.f32 %v263_v43 }
 0x48b   :  { %v4976_v44 = vpop.eup %4975 }
 0x48c   :  { %266 = vrot.lane.b32.xlu0 %v4976_v44, %s5243_s27 }
 0x4fe   :  { %v267_v45 = vpop.permute.xlu0 %266 }
 0x4ff   :  { %v5458_v46 = vmul.f32 %v4974_v38, %v267_v45 }
 0x501   :  { %278 = vrot.lane.b32.xlu1 %v5458_v46, %s5243_s27 }
 0x573   :  { %v279_v48 = vpop.permute.xlu1 %278 }
 0x574   :  { %v281_v49 = vsel %vm61_vm1, %v3743_v47, %v279_v48 }
 0x575   :  { %4244 = vmatmul.mubr.msk.f32.vlgmr.msra.gmra.mxu0 %vm63_vm2, %v281_v49 }
 0x576   :  { %4266 = vmatpush3.msra.mxu0 %v5320_v0  ;;  %4281 = vmatprep.mubr.msk.f32.mxu0 %vm5242_vm0, %v5241_v1 }
 0x577   :  { %4267 = vmatprep.subr.mxu0 %v5241_v1 }
 0x578   :  { %4268 = vmatpush3.msra.mxu0 %v5326_v2 }
 0x579   :  { %4269 = vmatprep.subr.mxu0 %v5241_v1 }
 0x57a   :  { %4270 = vmatpush3.msra.mxu0 %v5336_v3 }
 0x57b   :  { %4271 = vmatprep.subr.mxu0 %v5241_v1 }
 0x57c   :  { %4272 = vmatpush3.msra.mxu0 %v5345_v4 }
 0x57d   :  { %4273 = vmatprep.subr.mxu0 %v5241_v1 }
 0x57e   :  { %4274 = vmatpush3.msra.mxu0 %v5354_v5 }
 0x57f   :  { %4275 = vmatprep.subr.mxu0 %v5241_v1 }
 0x580   :  { %4276 = vmatpush3.msra.mxu0 %v5363_v6 }
 0x581   :  { %4277 = vmatprep.subr.mxu0 %v5241_v1 }
 0x582   :  { %4278 = vmatpush3.msra.mxu0 %v5372_v7 }
 0x583   :  { %4279 = vmatprep.subr.mxu0 %v5241_v1 }
 0x584   :  { %4280 = vmatpush3.msra.mxu0 %v5384_v9 }
 0x585   :  { %4303 = vmatprep.subr.mxu0 %v5241_v1 }
 0x635   :  { %v351_v50 = vpop.f32.mrf.mxu0 }
 0x636   :  { %v352_v51 = vadd.f32 %v5421_v11, %v351_v50 }
 0x637   :  { %v4245_v52 = vpop.f32.mrf.mxu0 }
 0x638   :  { %4977 = vtanh.f32 %v352_v51  ;;  %v3745_v54 = vmul.f32 -1.442695, %v352_v51  ;;  %v3752_v52 = vld [vmem:[%s6788_s0 + $0x14] sm:$0xf] }
 0x63a   :  { %4979 = vpow2.f32 %v3745_v54 }
 0x645   :  { %v4978_v53 = vpop.eup %4977 }
 0x646   :  { %364 = vrot.lane.b32.xlu0 %v4978_v53, %s5243_s27 }
 0x647   :  { %v4980_v55 = vpop.eup %4979 }
 0x648   :  { %v358_v56 = vadd.f32 1.0, %v4980_v55 }
 0x64a   :  { %4981 = vrcp.f32 %v358_v56 }
 0x657   :  { %v4982_v57 = vpop.eup %4981 }
 0x658   :  { %v362_v60 = vmul.f32 %v4982_v57, %v263_v43 }
 0x6b8   :  { %v365_v58 = vpop.permute.xlu0 %364 }
 0x6b9   :  { %v367_v59 = vmul.f32 %v4982_v57, %v365_v58 }
 0x6bb   :  { %369 = vrot.lane.b32.xlu1 %v367_v59, %s5244_s28 }
 0x72d   :  { %v370_v61 = vpop.permute.xlu1 %369 }
 0x72e   :  { %v372_v62 = vadd.f32 %v370_v61, %v362_v60 }
 0x730   :  { %4983 = vtanh.f32 %v372_v62 }
 0x73d   :  { %v4984_v63 = vpop.eup %4983 }
 0x73e   :  { %375 = vrot.lane.b32.xlu0 %v4984_v63, %s5243_s27  ;;  %v3755_v63 = vld [vmem:[%s6788_s0 + $0x18] sm:$0xf] }
 0x7b0   :  { %v376_v8 = vpop.permute.xlu0 %375 }
 0x7b1   :  { %v5489_v10 = vmul.f32 %v4982_v57, %v376_v8 }
 0x7b3   :  { %387 = vrot.lane.b32.xlu1 %v5489_v10, %s5243_s27 }
 0x825   :  { %v388_v13 = vpop.permute.xlu1 %387 }
 0x826   :  { %v390_v14 = vsel %vm61_vm1, %v3746_v12, %v388_v13  ;;  %v5595_v12 = vld [vmem:[%s6791_s3 + $0x38] sm:$0xff] }
 0x827   :  { %4263 = vmatmul.mubr.msk.f32.vlgmr.msra.gmra.mxu1 %vm63_vm2, %v390_v14  ;;  %v5602_v14 = vld [vmem:[%s6791_s3 + $0x30] sm:$0xff] }
 0x828   :  { %4285 = vmatpush3.msra.mxu1 %v5320_v0  ;;  %4300 = vmatprep.mubr.msk.f32.mxu1 %vm5242_vm0, %v5241_v1 }
 0x829   :  { %4286 = vmatprep.subr.mxu1 %v5241_v1 }
 0x82a   :  { %4287 = vmatpush3.msra.mxu1 %v5326_v2 }
 0x82b   :  { %4288 = vmatprep.subr.mxu1 %v5241_v1 }
 0x82c   :  { %4289 = vmatpush3.msra.mxu1 %v5336_v3 }
 0x82d   :  { %4290 = vmatprep.subr.mxu1 %v5241_v1 }
 0x82e   :  { %4291 = vmatpush3.msra.mxu1 %v5345_v4 }
 0x82f   :  { %4292 = vmatprep.subr.mxu1 %v5241_v1 }
 0x830   :  { %4293 = vmatpush3.msra.mxu1 %v5354_v5 }
 0x831   :  { %4294 = vmatprep.subr.mxu1 %v5241_v1 }
 0x832   :  { %4295 = vmatpush3.msra.mxu1 %v5363_v6 }
 0x833   :  { %4296 = vmatprep.subr.mxu1 %v5241_v1 }
 0x834   :  { %4297 = vmatpush3.msra.mxu1 %v5372_v7 }
 0x835   :  { %4298 = vmatprep.subr.mxu1 %v5241_v1 }
 0x836   :  { %4299 = vmatpush3.msra.mxu1 %v5384_v9 }
 0x837   :  { %4322 = vmatprep.subr.mxu1 %v5241_v1 }
 0x8e7   :  { %v460_v15 = vpop.f32.mrf.mxu1 }
 0x8e8   :  { %v461_v16 = vadd.f32 %v5421_v11, %v460_v15  ;;  %v5611_v15 = vld [vmem:[%s6791_s3 + $0x28] sm:$0xff] }
 0x8e9   :  { %v4264_v17 = vpop.f32.mrf.mxu1 }
 0x8ea   :  { %4985 = vtanh.f32 %v461_v16  ;;  %v3748_v19 = vmul.f32 -1.442695, %v461_v16  ;;  %v5618_v16 = vld [vmem:[%s6791_s3 + $0x20] sm:$0xff]  ;;  %v5625_v17 = vld [vmem:[%s6791_s3 + $0x18] sm:$0xff] }
 0x8ec   :  { %4987 = vpow2.f32 %v3748_v19  ;;  %v5639_v19 = vld [vmem:[%s6791_s3 + $0x8] sm:$0xff] }
 0x8f7   :  { %v4986_v18 = vpop.eup %4985 }
 0x8f8   :  { %473 = vrot.lane.b32.xlu0 %v4986_v18, %s5243_s27  ;;  %v5632_v18 = vld [vmem:[%s6791_s3 + $0x10] sm:$0xff] }
 0x8f9   :  { %v4988_v20 = vpop.eup %4987 }
 0x8fa   :  { %v467_v21 = vadd.f32 1.0, %v4988_v20  ;;  %v3762_v20 = vld [vmem:[%s6788_s0 + $0x1c] sm:$0xf] }
 0x8fc   :  { %4989 = vrcp.f32 %v467_v21  ;;  %v5649_v21 = vld [vmem:[%s6791_s3] sm:$0xff] }
 0x909   :  { %v4990_v22 = vpop.eup %4989 }
 0x90a   :  { %v471_v25 = vmul.f32 %v4990_v22, %v372_v62 }
 0x96a   :  { %v474_v23 = vpop.permute.xlu0 %473 }
 0x96b   :  { %v476_v24 = vmul.f32 %v4990_v22, %v474_v23 }
 0x96d   :  { %478 = vrot.lane.b32.xlu1 %v476_v24, %s5244_s28 }
 0x9df   :  { %v479_v26 = vpop.permute.xlu1 %478 }
 0x9e0   :  { %v481_v28 = vadd.f32 %v479_v26, %v471_v25  ;;  %v5679_v26 = vld [vmem:[%s6792_s4] ss:$0 sm:$0xff] }
 0x9e2   :  { %4991 = vtanh.f32 %v481_v28 }
 0x9ef   :  { %v4992_v29 = vpop.eup %4991 }
 0x9f0   :  { %484 = vrot.lane.b32.xlu0 %v4992_v29, %s5243_s27 }
 0xa62   :  { %v485_v30 = vpop.permute.xlu0 %484 }
 0xa63   :  { %v5520_v31 = vmul.f32 %v4990_v22, %v485_v30  ;;  %v946_v22 = vsel %vm61_vm1, %v3762_v20, 0.0 }
 0xa65   :  { %496 = vrot.lane.b32.xlu1 %v5520_v31, %s5243_s27 }
 0xad7   :  { %v497_v33 = vpop.permute.xlu1 %496 }
 0xad8   :  { %v499_v34 = vsel %vm61_vm1, %v3749_v32, %v497_v33 }
 0xad9   :  { %4282 = vmatmul.mubr.msk.f32.vlgmr.msra.gmra.mxu0 %vm63_vm2, %v499_v34 }
 0xada   :  { %4304 = vmatpush3.msra.mxu0 %v5320_v0  ;;  %4319 = vmatprep.mubr.msk.f32.mxu0 %vm5242_vm0, %v5241_v1 }
 0xadb   :  { %4305 = vmatprep.subr.mxu0 %v5241_v1 }
 0xadc   :  { %4306 = vmatpush3.msra.mxu0 %v5326_v2 }
 0xadd   :  { %4307 = vmatprep.subr.mxu0 %v5241_v1 }
 0xade   :  { %4308 = vmatpush3.msra.mxu0 %v5336_v3 }
 0xadf   :  { %4309 = vmatprep.subr.mxu0 %v5241_v1 }
 0xae0   :  { %4310 = vmatpush3.msra.mxu0 %v5345_v4 }
 0xae1   :  { %4311 = vmatprep.subr.mxu0 %v5241_v1 }
 0xae2   :  { %4312 = vmatpush3.msra.mxu0 %v5354_v5 }
 0xae3   :  { %4313 = vmatprep.subr.mxu0 %v5241_v1 }
 0xae4   :  { %4314 = vmatpush3.msra.mxu0 %v5363_v6 }
 0xae5   :  { %4315 = vmatprep.subr.mxu0 %v5241_v1 }
 0xae6   :  { %4316 = vmatpush3.msra.mxu0 %v5372_v7 }
 0xae7   :  { %4317 = vmatprep.subr.mxu0 %v5241_v1 }
 0xae8   :  { %4318 = vmatpush3.msra.mxu0 %v5384_v9 }
 0xae9   :  { %4341 = vmatprep.subr.mxu0 %v5241_v1 }
 0xb99   :  { %v569_v35 = vpop.f32.mrf.mxu0 }
 0xb9a   :  { %v570_v36 = vadd.f32 %v5421_v11, %v569_v35 }
 0xb9b   :  { %v4283_v37 = vpop.f32.mrf.mxu0 }
 0xb9c   :  { %4993 = vtanh.f32 %v570_v36  ;;  %v3751_v39 = vmul.f32 -1.442695, %v570_v36 }
 0xb9e   :  { %4995 = vpow2.f32 %v3751_v39 }
 0xba9   :  { %v4994_v38 = vpop.eup %4993 }
 0xbaa   :  { %582 = vrot.lane.b32.xlu0 %v4994_v38, %s5243_s27 }
 0xbab   :  { %v4996_v40 = vpop.eup %4995 }
 0xbac   :  { %v576_v41 = vadd.f32 1.0, %v4996_v40 }
 0xbae   :  { %4997 = vrcp.f32 %v576_v41 }
 0xbbb   :  { %v4998_v42 = vpop.eup %4997 }
 0xbbc   :  { %v580_v45 = vmul.f32 %v4998_v42, %v481_v28 }
 0xc1c   :  { %v583_v43 = vpop.permute.xlu0 %582 }
 0xc1d   :  { %v585_v44 = vmul.f32 %v4998_v42, %v583_v43 }
 0xc1f   :  { %587 = vrot.lane.b32.xlu1 %v585_v44, %s5244_s28 }
 0xc91   :  { %v588_v47 = vpop.permute.xlu1 %587 }
 0xc92   :  { %v590_v48 = vadd.f32 %v588_v47, %v580_v45 }
 0xc94   :  { %4999 = vtanh.f32 %v590_v48 }
 0xca1   :  { %v5000_v49 = vpop.eup %4999 }
 0xca2   :  { %593 = vrot.lane.b32.xlu0 %v5000_v49, %s5243_s27 }
 0xd14   :  { %v594_v50 = vpop.permute.xlu0 %593 }
 0xd15   :  { %v5551_v51 = vmul.f32 %v4998_v42, %v594_v50 }
 0xd17   :  { %605 = vrot.lane.b32.xlu1 %v5551_v51, %s5243_s27 }
 0xd89   :  { %v606_v53 = vpop.permute.xlu1 %605 }
 0xd8a   :  { %v608_v54 = vsel %vm61_vm1, %v3752_v52, %v606_v53 }
 0xd8b   :  { %4301 = vmatmul.mubr.msk.f32.vlgmr.msra.gmra.mxu1 %vm63_vm2, %v608_v54 }
 0xd8c   :  { %4323 = vmatpush3.msra.mxu1 %v5320_v0  ;;  %4338 = vmatprep.mubr.msk.f32.mxu1 %vm5242_vm0, %v5241_v1 }
 0xd8d   :  { %4324 = vmatprep.subr.mxu1 %v5241_v1 }
 0xd8e   :  { %4325 = vmatpush3.msra.mxu1 %v5326_v2 }
 0xd8f   :  { %4326 = vmatprep.subr.mxu1 %v5241_v1 }
 0xd90   :  { %4327 = vmatpush3.msra.mxu1 %v5336_v3 }
 0xd91   :  { %4328 = vmatprep.subr.mxu1 %v5241_v1 }
 0xd92   :  { %4329 = vmatpush3.msra.mxu1 %v5345_v4 }
 0xd93   :  { %4330 = vmatprep.subr.mxu1 %v5241_v1 }
 0xd94   :  { %4331 = vmatpush3.msra.mxu1 %v5354_v5 }
 0xd95   :  { %4332 = vmatprep.subr.mxu1 %v5241_v1 }
 0xd96   :  { %4333 = vmatpush3.msra.mxu1 %v5363_v6 }
 0xd97   :  { %4334 = vmatprep.subr.mxu1 %v5241_v1 }
 0xd98   :  { %4335 = vmatpush3.msra.mxu1 %v5372_v7 }
 0xd99   :  { %4336 = vmatprep.subr.mxu1 %v5241_v1 }
 0xd9a   :  { %4337 = vmatpush3.msra.mxu1 %v5384_v9 }
 0xd9b   :  { %4360 = vmatprep.subr.mxu1 %v5241_v1 }
 0xe4b   :  { %v678_v0 = vpop.f32.mrf.mxu1 }
 0xe4c   :  { %v679_v2 = vadd.f32 %v5421_v11, %v678_v0 }
 0xe4d   :  { %v4302_v3 = vpop.f32.mrf.mxu1 }
 0xe4e   :  { %5001 = vtanh.f32 %v679_v2  ;;  %v3754_v5 = vmul.f32 -1.442695, %v679_v2 }
 0xe50   :  { %5003 = vpow2.f32 %v3754_v5  ;;  %v3758_v5 = vld [vmem:[%s6788_s0 + $0x1c] sm:$0xf] }
 0xe5b   :  { %v5002_v4 = vpop.eup %5001 }
 0xe5c   :  { %691 = vrot.lane.b32.xlu0 %v5002_v4, %s5243_s27 }
 0xe5d   :  { %v5004_v6 = vpop.eup %5003 }
 0xe5e   :  { %v685_v55 = vadd.f32 1.0, %v5004_v6 }
 0xe60   :  { %5005 = vrcp.f32 %v685_v55 }
 0xe6d   :  { %v5006_v7 = vpop.eup %5005 }
 0xe6e   :  { %v689_v9 = vmul.f32 %v5006_v7, %v590_v48 }
 0xece   :  { %v692_v56 = vpop.permute.xlu0 %691 }
 0xecf   :  { %v694_v57 = vmul.f32 %v5006_v7, %v692_v56 }
 0xed1   :  { %696 = vrot.lane.b32.xlu1 %v694_v57, %s5244_s28 }
 0xf43   :  { %v697_v58 = vpop.permute.xlu1 %696 }
 0xf44   :  { %v5581_v59 = vadd.f32 %v697_v58, %v689_v9 }
 0xf46   :  { %5007 = vtanh.f32 %v5581_v59 }
 0xf53   :  { %v5008_v60 = vpop.eup %5007 }
 0xf54   :  { %702 = vrot.lane.b32.xlu0 %v5008_v60, %s5243_s27 }
 0xfc6   :  { %v703_v61 = vpop.permute.xlu0 %702 }
 0xfc7   :  { %v5585_v62 = vmul.f32 %v5006_v7, %v703_v61  ;;  %v3765_v7 = vld [vmem:[%s6788_s0 + $0x18] sm:$0xf] }
 0xfc9   :  { %714 = vrot.lane.b32.xlu1 %v5585_v62, %s5243_s27 }
0x103b   :  { %v715_v8 = vpop.permute.xlu1 %714 }
0x103c   :  { %v717_v13 = vsel %vm61_vm1, %v3755_v63, %v715_v8 }
0x103d   :  { %4320 = vmatmul.mubr.msk.f32.vlgmr.msra.gmra.mxu0 %vm63_vm2, %v717_v13 }
0x103e   :  { %4342 = vmatpush3.msra.mxu0 %v5595_v12  ;;  %4357 = vmatprep.mubr.msk.f32.mxu0 %vm5242_vm0, %v5241_v1 }
0x103f   :  { %4343 = vmatprep.subr.mxu0 %v5241_v1 }
0x1040   :  { %4344 = vmatpush3.msra.mxu0 %v5602_v14 }
0x1041   :  { %4345 = vmatprep.subr.mxu0 %v5241_v1 }
0x1042   :  { %4346 = vmatpush3.msra.mxu0 %v5611_v15 }
0x1043   :  { %4347 = vmatprep.subr.mxu0 %v5241_v1 }
0x1044   :  { %4348 = vmatpush3.msra.mxu0 %v5618_v16 }
0x1045   :  { %4349 = vmatprep.subr.mxu0 %v5241_v1 }
0x1046   :  { %4350 = vmatpush3.msra.mxu0 %v5625_v17 }
0x1047   :  { %4351 = vmatprep.subr.mxu0 %v5241_v1 }
0x1048   :  { %4352 = vmatpush3.msra.mxu0 %v5632_v18 }
0x1049   :  { %4353 = vmatprep.subr.mxu0 %v5241_v1 }
0x104a   :  { %4354 = vmatpush3.msra.mxu0 %v5639_v19 }
0x104b   :  { %4355 = vmatprep.subr.mxu0 %v5241_v1 }
0x104c   :  { %4356 = vmatpush3.msra.mxu0 %v5649_v21 }
0x104d   :  { %4358 = vmatmul.mubr.msk.f32.vlgmr.msra.gmra.mxu0 %vm63_vm2, %v946_v22  ;;  %4379 = vmatprep.subr.mxu0 %v5241_v1 }
0x104e   :  { %4380 = vmatpush3.msra.mxu0 %v5595_v12  ;;  %4395 = vmatprep.mubr.msk.f32.mxu0 %vm5242_vm0, %v5241_v1 }
0x104f   :  { %4381 = vmatprep.subr.mxu0 %v5241_v1 }
0x1050   :  { %4382 = vmatpush3.msra.mxu0 %v5602_v14 }
0x1051   :  { %4383 = vmatprep.subr.mxu0 %v5241_v1 }
0x1052   :  { %4384 = vmatpush3.msra.mxu0 %v5611_v15 }
0x1053   :  { %4385 = vmatprep.subr.mxu0 %v5241_v1 }
0x1054   :  { %4386 = vmatpush3.msra.mxu0 %v5618_v16 }
0x1055   :  { %4387 = vmatprep.subr.mxu0 %v5241_v1 }
0x1056   :  { %4388 = vmatpush3.msra.mxu0 %v5625_v17 }
0x1057   :  { %4389 = vmatprep.subr.mxu0 %v5241_v1 }
0x1058   :  { %4390 = vmatpush3.msra.mxu0 %v5632_v18 }
0x1059   :  { %4391 = vmatprep.subr.mxu0 %v5241_v1 }
0x105a   :  { %4392 = vmatpush3.msra.mxu0 %v5639_v19 }
0x105b   :  { %4393 = vmatprep.subr.mxu0 %v5241_v1 }
0x105c   :  { %4394 = vmatpush3.msra.mxu0 %v5649_v21 }
0x105d   :  { %4417 = vmatprep.subr.mxu0 %v5241_v1 }
0x10fd   :  { %v787_v23 = vpop.f32.mrf.mxu0 }
0x10fe   :  { %v788_v24 = vadd.f32 %v5421_v11, %v787_v23 }
0x10ff   :  { %v4321_v25 = vpop.f32.mrf.mxu0 }
0x1100   :  { %5009 = vtanh.f32 %v788_v24  ;;  %v3757_v34 = vmul.f32 -1.442695, %v788_v24 }
0x110d   :  { %v5010_v28 = vpop.eup %5009  ;;  %v1016_v29 = vpop.f32.mrf.mxu0 }
0x110e   :  { %v1017_v30 = vadd.f32 %v5679_v26, %v1016_v29  ;;  %800 = vrot.lane.b32.xlu0 %v5010_v28, %s5243_s27 }
0x110f   :  { %v4359_v32 = vpop.f32.mrf.mxu0 }
0x1110   :  { %5011 = vtanh.f32 %v1017_v30  ;;  %v3764_v11 = vmul.f32 -1.442695, %v1017_v30 }
0x1111   :  { %5013 = vpow2.f32 %v3757_v34  ;;  %v3768_v34 = vld [vmem:[%s6788_s0 + $0x14] sm:$0xf] }
0x1112   :  { %5015 = vpow2.f32 %v3764_v11 }
0x111d   :  { %v5012_v33 = vpop.eup %5011 }
0x111e   :  { %1029 = vrot.lane.b32.xlu1 %v5012_v33, %s5243_s27  ;;  %v5014_v35 = vpop.eup %5013 }
0x111f   :  { %v794_v36 = vadd.f32 1.0, %v5014_v35  ;;  %v5016_v37 = vpop.eup %5015 }
0x1120   :  { %v1023_v38 = vadd.f32 1.0, %v5016_v37 }
0x1121   :  { %5017 = vrcp.f32 %v794_v36 }
0x1122   :  { %5019 = vrcp.f32 %v1023_v38 }
0x112e   :  { %v5018_v39 = vpop.eup %5017 }
0x112f   :  { %v5020_v42 = vpop.eup %5019  ;;  %v798_v45 = vmul.f32 %v5018_v39, %v5581_v59 }
0x1130   :  { %v1027_v49 = vmul.f32 0.0, %v5020_v42 }
0x1180   :  { %v801_v40 = vpop.permute.xlu0 %800 }
0x1181   :  { %v803_v41 = vmul.f32 %v5018_v39, %v801_v40 }
0x1183   :  { %805 = vrot.lane.b32.xlu0 %v803_v41, %s5244_s28 }
0x1190   :  { %v1030_v43 = vpop.permute.xlu1 %1029 }
0x1191   :  { %v1032_v44 = vmul.f32 %v5020_v42, %v1030_v43 }
0x1193   :  { %1034 = vrot.lane.b32.xlu1 %v1032_v44, %s5244_s28 }
0x11f5   :  { %v806_v47 = vpop.permute.xlu0 %805 }
0x11f6   :  { %v5687_v48 = vadd.f32 %v806_v47, %v798_v45 }
0x11f8   :  { %5021 = vtanh.f32 %v5687_v48 }
0x1205   :  { %v5022_v50 = vpop.eup %5021  ;;  %v1035_v52 = vpop.permute.xlu1 %1034 }
0x1206   :  { %v5690_v53 = vadd.f32 %v1035_v52, %v1027_v49  ;;  %811 = vrot.lane.b32.xlu0 %v5022_v50, %s5243_s27 }
0x1208   :  { %5023 = vtanh.f32 %v5690_v53 }
0x1215   :  { %v5024_v54 = vpop.eup %5023 }
0x1216   :  { %1040 = vrot.lane.b32.xlu1 %v5024_v54, %s5243_s27 }
0x1278   :  { %v812_v0 = vpop.permute.xlu0 %811 }
0x1279   :  { %v5695_v2 = vmul.f32 %v5018_v39, %v812_v0  ;;  %v3771_v0 = vld [vmem:[%s6788_s0 + $0x10] sm:$0xf] }
0x127b   :  { %823 = vrot.lane.b32.xlu0 %v5695_v2, %s5243_s27 }
0x1288   :  { %v1041_v3 = vpop.permute.xlu1 %1040 }
0x1289   :  { %v5699_v4 = vmul.f32 %v5020_v42, %v1041_v3 }
0x128b   :  { %1051 = vrot.lane.b32.xlu1 %v5699_v4, %s5243_s27 }
0x12ed   :  { %v824_v6 = vpop.permute.xlu0 %823 }
0x12ee   :  { %v826_v55 = vsel %vm61_vm1, %v3758_v5, %v824_v6 }
0x12ef   :  { %4339 = vmatmul.mubr.msk.f32.vlgmr.msra.gmra.mxu1 %vm63_vm2, %v826_v55 }
0x12f0   :  { %4361 = vmatpush3.msra.mxu1 %v5595_v12  ;;  %4376 = vmatprep.mubr.msk.f32.mxu1 %vm5242_vm0, %v5241_v1 }
0x12f1   :  { %4362 = vmatprep.subr.mxu1 %v5241_v1 }
0x12f2   :  { %4363 = vmatpush3.msra.mxu1 %v5602_v14 }
0x12f3   :  { %4364 = vmatprep.subr.mxu1 %v5241_v1 }
0x12f4   :  { %4365 = vmatpush3.msra.mxu1 %v5611_v15 }
0x12f5   :  { %4366 = vmatprep.subr.mxu1 %v5241_v1 }
0x12f6   :  { %4367 = vmatpush3.msra.mxu1 %v5618_v16 }
0x12f7   :  { %4368 = vmatprep.subr.mxu1 %v5241_v1 }
0x12f8   :  { %4369 = vmatpush3.msra.mxu1 %v5625_v17 }
0x12f9   :  { %4370 = vmatprep.subr.mxu1 %v5241_v1 }
0x12fa   :  { %4371 = vmatpush3.msra.mxu1 %v5632_v18 }
0x12fb   :  { %4372 = vmatprep.subr.mxu1 %v5241_v1 }
0x12fc   :  { %4373 = vmatpush3.msra.mxu1 %v5639_v19 }
0x12fd   :  { %4374 = vmatprep.subr.mxu1 %v5241_v1  ;;  %v1052_v56 = vpop.permute.xlu1 %1051 }
0x12fe   :  { %v1054_v57 = vsel %vm61_vm1, %v3765_v7, %v1052_v56  ;;  %4375 = vmatpush3.msra.mxu1 %v5649_v21 }
0x12ff   :  { %4377 = vmatmul.mubr.msk.f32.vlgmr.msra.gmra.mxu1 %vm63_vm2, %v1054_v57  ;;  %4398 = vmatprep.subr.mxu1 %v5241_v1 }
0x1300   :  { %4399 = vmatpush3.msra.mxu1 %v5595_v12  ;;  %4414 = vmatprep.mubr.msk.f32.mxu1 %vm5242_vm0, %v5241_v1 }
0x1301   :  { %4400 = vmatprep.subr.mxu1 %v5241_v1 }
0x1302   :  { %4401 = vmatpush3.msra.mxu1 %v5602_v14 }
0x1303   :  { %4402 = vmatprep.subr.mxu1 %v5241_v1 }
0x1304   :  { %4403 = vmatpush3.msra.mxu1 %v5611_v15 }
0x1305   :  { %4404 = vmatprep.subr.mxu1 %v5241_v1 }
0x1306   :  { %4405 = vmatpush3.msra.mxu1 %v5618_v16 }
0x1307   :  { %4406 = vmatprep.subr.mxu1 %v5241_v1 }
0x1308   :  { %4407 = vmatpush3.msra.mxu1 %v5625_v17 }
0x1309   :  { %4408 = vmatprep.subr.mxu1 %v5241_v1 }
0x130a   :  { %4409 = vmatpush3.msra.mxu1 %v5632_v18 }
0x130b   :  { %4410 = vmatprep.subr.mxu1 %v5241_v1 }
0x130c   :  { %4411 = vmatpush3.msra.mxu1 %v5639_v19 }
0x130d   :  { %4412 = vmatprep.subr.mxu1 %v5241_v1 }
0x130e   :  { %4413 = vmatpush3.msra.mxu1 %v5649_v21 }
0x130f   :  { %4436 = vmatprep.subr.mxu1 %v5241_v1 }
0x13af   :  { %v5749_v9 = vpop.f32.mrf.mxu1 }
0x13b1   :  { %v4340_v58 = vpop.f32.mrf.mxu1 }
0x13bf   :  { %v1124_v59 = vpop.f32.mrf.mxu1 }
0x13c0   :  { %v1125_v60 = vadd.f32 %v5679_v26, %v1124_v59 }
0x13c1   :  { %v4378_v61 = vpop.f32.mrf.mxu1 }
0x13c2   :  { %5025 = vtanh.f32 %v1125_v60  ;;  %v3767_v8 = vmul.f32 -1.442695, %v1125_v60 }
0x13c4   :  { %5027 = vpow2.f32 %v3767_v8 }
0x13cf   :  { %v5026_v63 = vpop.eup %5025 }
0x13d0   :  { %1137 = vrot.lane.b32.xlu0 %v5026_v63, %s5243_s27 }
0x13d1   :  { %v5028_v13 = vpop.eup %5027 }
0x13d2   :  { %v1131_v20 = vadd.f32 1.0, %v5028_v13 }
0x13d4   :  { %5029 = vrcp.f32 %v1131_v20 }
0x13e1   :  { %v5030_v22 = vpop.eup %5029 }
0x13e2   :  { %v1135_v25 = vmul.f32 %v5030_v22, %v5690_v53 }
0x1442   :  { %v1138_v23 = vpop.permute.xlu0 %1137 }
0x1443   :  { %v1140_v24 = vmul.f32 %v5030_v22, %v1138_v23 }
0x1445   :  { %1142 = vrot.lane.b32.xlu1 %v1140_v24, %s5244_s28 }
0x14b7   :  { %v1143_v28 = vpop.permute.xlu1 %1142 }
0x14b8   :  { %v1145_v29 = vadd.f32 %v1143_v28, %v1135_v25  ;;  %v3774_v25 = vld [vmem:[%s6788_s0 + $0xc] sm:$0xf] }
0x14ba   :  { %5031 = vtanh.f32 %v1145_v29 }
0x14c7   :  { %v5032_v30 = vpop.eup %5031 }
0x14c8   :  { %1148 = vrot.lane.b32.xlu0 %v5032_v30, %s5243_s27 }
0x153a   :  { %v1149_v32 = vpop.permute.xlu0 %1148 }
0x153b   :  { %v5756_v33 = vmul.f32 %v5030_v22, %v1149_v32 }
0x153d   :  { %1159 = vrot.lane.b32.xlu1 %v5756_v33, %s5243_s27 }
0x15af   :  { %v1160_v11 = vpop.permute.xlu1 %1159 }
0x15b0   :  { %v1162_v35 = vsel %vm61_vm1, %v3768_v34, %v1160_v11 }
0x15b1   :  { %4396 = vmatmul.mubr.msk.f32.vlgmr.msra.gmra.mxu0 %vm63_vm2, %v1162_v35 }
0x15b2   :  { %4418 = vmatpush3.msra.mxu0 %v5595_v12  ;;  %4433 = vmatprep.mubr.msk.f32.mxu0 %vm5242_vm0, %v5241_v1 }
0x15b3   :  { %4419 = vmatprep.subr.mxu0 %v5241_v1 }
0x15b4   :  { %4420 = vmatpush3.msra.mxu0 %v5602_v14 }
0x15b5   :  { %4421 = vmatprep.subr.mxu0 %v5241_v1 }
0x15b6   :  { %4422 = vmatpush3.msra.mxu0 %v5611_v15 }
0x15b7   :  { %4423 = vmatprep.subr.mxu0 %v5241_v1 }
0x15b8   :  { %4424 = vmatpush3.msra.mxu0 %v5618_v16 }
0x15b9   :  { %4425 = vmatprep.subr.mxu0 %v5241_v1 }
0x15ba   :  { %4426 = vmatpush3.msra.mxu0 %v5625_v17 }
0x15bb   :  { %4427 = vmatprep.subr.mxu0 %v5241_v1 }
0x15bc   :  { %4428 = vmatpush3.msra.mxu0 %v5632_v18 }
0x15bd   :  { %4429 = vmatprep.subr.mxu0 %v5241_v1 }
0x15be   :  { %4430 = vmatpush3.msra.mxu0 %v5639_v19 }
0x15bf   :  { %4431 = vmatprep.subr.mxu0 %v5241_v1 }
0x15c0   :  { %4432 = vmatpush3.msra.mxu0 %v5649_v21 }
0x15c1   :  { %4455 = vmatprep.subr.mxu0 %v5241_v1 }
0x1671   :  { %v1232_v36 = vpop.f32.mrf.mxu0 }
0x1672   :  { %v1233_v37 = vadd.f32 %v5679_v26, %v1232_v36 }
0x1673   :  { %v4397_v38 = vpop.f32.mrf.mxu0 }
0x1674   :  { %5033 = vtanh.f32 %v1233_v37  ;;  %v3770_v40 = vmul.f32 -1.442695, %v1233_v37 }
0x1676   :  { %5035 = vpow2.f32 %v3770_v40 }
0x1681   :  { %v5034_v39 = vpop.eup %5033 }
0x1682   :  { %1245 = vrot.lane.b32.xlu0 %v5034_v39, %s5243_s27 }
0x1683   :  { %v5036_v41 = vpop.eup %5035 }
0x1684   :  { %v1239_v42 = vadd.f32 1.0, %v5036_v41 }
0x1686   :  { %5037 = vrcp.f32 %v1239_v42 }
0x1693   :  { %v5038_v43 = vpop.eup %5037 }
0x1694   :  { %v1243_v47 = vmul.f32 %v5038_v43, %v1145_v29 }
0x16f4   :  { %v1246_v44 = vpop.permute.xlu0 %1245 }
0x16f5   :  { %v1248_v45 = vmul.f32 %v5038_v43, %v1246_v44 }
0x16f7   :  { %1250 = vrot.lane.b32.xlu1 %v1248_v45, %s5244_s28 }
0x1769   :  { %v1251_v49 = vpop.permute.xlu1 %1250 }
0x176a   :  { %v1253_v50 = vadd.f32 %v1251_v49, %v1243_v47  ;;  %v3777_v49 = vld [vmem:[%s6788_s0 + $0x8] sm:$0xf] }
0x176c   :  { %5039 = vtanh.f32 %v1253_v50 }
0x1779   :  { %v5040_v52 = vpop.eup %5039 }
0x177a   :  { %1256 = vrot.lane.b32.xlu0 %v5040_v52, %s5243_s27 }
0x17ec   :  { %v1257_v53 = vpop.permute.xlu0 %1256 }
0x17ed   :  { %v5787_v54 = vmul.f32 %v5038_v43, %v1257_v53 }
0x17ef   :  { %1267 = vrot.lane.b32.xlu1 %v5787_v54, %s5243_s27 }
0x1861   :  { %v1268_v3 = vpop.permute.xlu1 %1267 }
0x1862   :  { %v1270_v5 = vsel %vm61_vm1, %v3771_v0, %v1268_v3 }
0x1863   :  { %4415 = vmatmul.mubr.msk.f32.vlgmr.msra.gmra.mxu1 %vm63_vm2, %v1270_v5 }
0x1864   :  { %4437 = vmatpush3.msra.mxu1 %v5595_v12  ;;  %4452 = vmatprep.mubr.msk.f32.mxu1 %vm5242_vm0, %v5241_v1 }
0x1865   :  { %4438 = vmatprep.subr.mxu1 %v5241_v1 }
0x1866   :  { %4439 = vmatpush3.msra.mxu1 %v5602_v14 }
0x1867   :  { %4440 = vmatprep.subr.mxu1 %v5241_v1 }
0x1868   :  { %4441 = vmatpush3.msra.mxu1 %v5611_v15 }
0x1869   :  { %4442 = vmatprep.subr.mxu1 %v5241_v1 }
0x186a   :  { %4443 = vmatpush3.msra.mxu1 %v5618_v16 }
0x186b   :  { %4444 = vmatprep.subr.mxu1 %v5241_v1 }
0x186c   :  { %4445 = vmatpush3.msra.mxu1 %v5625_v17 }
0x186d   :  { %4446 = vmatprep.subr.mxu1 %v5241_v1 }
0x186e   :  { %4447 = vmatpush3.msra.mxu1 %v5632_v18 }
0x186f   :  { %4448 = vmatprep.subr.mxu1 %v5241_v1 }
0x1870   :  { %4449 = vmatpush3.msra.mxu1 %v5639_v19 }
0x1871   :  { %4450 = vmatprep.subr.mxu1 %v5241_v1 }
0x1872   :  { %4451 = vmatpush3.msra.mxu1 %v5649_v21 }
0x1873   :  { %4474 = vmatprep.subr.mxu1 %v5241_v1 }
0x1923   :  { %v1340_v6 = vpop.f32.mrf.mxu1 }
0x1924   :  { %v1341_v55 = vadd.f32 %v5679_v26, %v1340_v6 }
0x1925   :  { %v4416_v7 = vpop.f32.mrf.mxu1 }
0x1926   :  { %5041 = vtanh.f32 %v1341_v55  ;;  %v3773_v57 = vmul.f32 -1.442695, %v1341_v55 }
0x1928   :  { %5043 = vpow2.f32 %v3773_v57  ;;  %v3780_v57 = vld [vmem:[%s6788_s0 + $0x4] sm:$0xf] }
0x1933   :  { %v5042_v56 = vpop.eup %5041 }
0x1934   :  { %1353 = vrot.lane.b32.xlu0 %v5042_v56, %s5243_s27 }
0x1935   :  { %v5044_v58 = vpop.eup %5043 }
0x1936   :  { %v1347_v59 = vadd.f32 1.0, %v5044_v58 }
0x1938   :  { %5045 = vrcp.f32 %v1347_v59 }
0x1945   :  { %v5046_v60 = vpop.eup %5045 }
0x1946   :  { %v1351_v8 = vmul.f32 %v5046_v60, %v1253_v50 }
0x19a6   :  { %v1354_v61 = vpop.permute.xlu0 %1353 }
0x19a7   :  { %v1356_v63 = vmul.f32 %v5046_v60, %v1354_v61 }
0x19a9   :  { %1358 = vrot.lane.b32.xlu1 %v1356_v63, %s5244_s28 }
0x1a1b   :  { %v1359_v13 = vpop.permute.xlu1 %1358 }
0x1a1c   :  { %v1361_v20 = vadd.f32 %v1359_v13, %v1351_v8 }
0x1a1e   :  { %5047 = vtanh.f32 %v1361_v20 }
0x1a2b   :  { %v5048_v22 = vpop.eup %5047 }
0x1a2c   :  { %1364 = vrot.lane.b32.xlu0 %v5048_v22, %s5243_s27 }
0x1a9e   :  { %v1365_v23 = vpop.permute.xlu0 %1364 }
0x1a9f   :  { %v5818_v24 = vmul.f32 %v5046_v60, %v1365_v23 }
0x1aa1   :  { %1375 = vrot.lane.b32.xlu1 %v5818_v24, %s5243_s27 }
0x1b13   :  { %v1376_v28 = vpop.permute.xlu1 %1375 }
0x1b14   :  { %v1378_v29 = vsel %vm61_vm1, %v3774_v25, %v1376_v28 }
0x1b15   :  { %4434 = vmatmul.mubr.msk.f32.vlgmr.msra.gmra.mxu0 %vm63_vm2, %v1378_v29 }
0x1b16   :  { %4456 = vmatpush3.msra.mxu0 %v5595_v12  ;;  %4471 = vmatprep.mubr.msk.f32.mxu0 %vm5242_vm0, %v5241_v1 }
0x1b17   :  { %4457 = vmatprep.subr.mxu0 %v5241_v1 }
0x1b18   :  { %4458 = vmatpush3.msra.mxu0 %v5602_v14 }
0x1b19   :  { %4459 = vmatprep.subr.mxu0 %v5241_v1 }
0x1b1a   :  { %4460 = vmatpush3.msra.mxu0 %v5611_v15 }
0x1b1b   :  { %4461 = vmatprep.subr.mxu0 %v5241_v1 }
0x1b1c   :  { %4462 = vmatpush3.msra.mxu0 %v5618_v16 }
0x1b1d   :  { %4463 = vmatprep.subr.mxu0 %v5241_v1 }
0x1b1e   :  { %4464 = vmatpush3.msra.mxu0 %v5625_v17 }
0x1b1f   :  { %4465 = vmatprep.subr.mxu0 %v5241_v1 }
0x1b20   :  { %4466 = vmatpush3.msra.mxu0 %v5632_v18 }
0x1b21   :  { %4467 = vmatprep.subr.mxu0 %v5241_v1 }
0x1b22   :  { %4468 = vmatpush3.msra.mxu0 %v5639_v19 }
0x1b23   :  { %4469 = vmatprep.subr.mxu0 %v5241_v1 }
0x1b24   :  { %4470 = vmatpush3.msra.mxu0 %v5649_v21 }
0x1b25   :  { %4493 = vmatprep.subr.mxu0 %v5241_v1 }
0x1bd5   :  { %v1448_v30 = vpop.f32.mrf.mxu0 }
0x1bd6   :  { %v1449_v32 = vadd.f32 %v5679_v26, %v1448_v30 }
0x1bd7   :  { %v4435_v34 = vpop.f32.mrf.mxu0 }
0x1bd8   :  { %5049 = vtanh.f32 %v1449_v32  ;;  %v3776_v35 = vmul.f32 -1.442695, %v1449_v32 }
0x1bda   :  { %5051 = vpow2.f32 %v3776_v35 }
0x1be5   :  { %v5050_v11 = vpop.eup %5049 }
0x1be6   :  { %1461 = vrot.lane.b32.xlu0 %v5050_v11, %s5243_s27 }
0x1be7   :  { %v5052_v36 = vpop.eup %5051 }
0x1be8   :  { %v1455_v37 = vadd.f32 1.0, %v5052_v36  ;;  %v1698_v36 = vld [vmem:[%s6788_s0] sm:$0xf] }
0x1bea   :  { %5053 = vrcp.f32 %v1455_v37 }
0x1bf7   :  { %v5054_v38 = vpop.eup %5053 }
0x1bf8   :  { %v1459_v41 = vmul.f32 %v5054_v38, %v1361_v20 }
0x1c58   :  { %v1462_v39 = vpop.permute.xlu0 %1461 }
0x1c59   :  { %v1464_v40 = vmul.f32 %v5054_v38, %v1462_v39 }
0x1c5b   :  { %1466 = vrot.lane.b32.xlu1 %v1464_v40, %s5244_s28 }
0x1ccd   :  { %v1467_v42 = vpop.permute.xlu1 %1466 }
0x1cce   :  { %v1469_v43 = vadd.f32 %v1467_v42, %v1459_v41 }
0x1cd0   :  { %5055 = vtanh.f32 %v1469_v43 }
0x1cdd   :  { %v5056_v44 = vpop.eup %5055 }
0x1cde   :  { %1472 = vrot.lane.b32.xlu0 %v5056_v44, %s5243_s27 }
0x1d50   :  { %v1473_v45 = vpop.permute.xlu0 %1472 }
0x1d51   :  { %v5849_v47 = vmul.f32 %v5054_v38, %v1473_v45 }
0x1d53   :  { %1483 = vrot.lane.b32.xlu1 %v5849_v47, %s5243_s27 }
0x1dc5   :  { %v1484_v50 = vpop.permute.xlu1 %1483 }
0x1dc6   :  { %v1486_v52 = vsel %vm61_vm1, %v3777_v49, %v1484_v50 }
0x1dc7   :  { %4453 = vmatmul.mubr.msk.f32.vlgmr.msra.gmra.mxu1 %vm63_vm2, %v1486_v52 }
0x1dc8   :  { %4475 = vmatpush3.msra.mxu1 %v5595_v12  ;;  %4490 = vmatprep.mubr.msk.f32.mxu1 %vm5242_vm0, %v5241_v1 }
0x1dc9   :  { %4476 = vmatprep.subr.mxu1 %v5241_v1 }
0x1dca   :  { %4477 = vmatpush3.msra.mxu1 %v5602_v14 }
0x1dcb   :  { %4478 = vmatprep.subr.mxu1 %v5241_v1 }
0x1dcc   :  { %4479 = vmatpush3.msra.mxu1 %v5611_v15 }
0x1dcd   :  { %4480 = vmatprep.subr.mxu1 %v5241_v1 }
0x1dce   :  { %4481 = vmatpush3.msra.mxu1 %v5618_v16 }
0x1dcf   :  { %4482 = vmatprep.subr.mxu1 %v5241_v1 }
0x1dd0   :  { %4483 = vmatpush3.msra.mxu1 %v5625_v17 }
0x1dd1   :  { %4484 = vmatprep.subr.mxu1 %v5241_v1 }
0x1dd2   :  { %4485 = vmatpush3.msra.mxu1 %v5632_v18 }
0x1dd3   :  { %4486 = vmatprep.subr.mxu1 %v5241_v1 }
0x1dd4   :  { %4487 = vmatpush3.msra.mxu1 %v5639_v19 }
0x1dd5   :  { %4488 = vmatprep.subr.mxu1 %v5241_v1 }
0x1dd6   :  { %4489 = vmatpush3.msra.mxu1 %v5649_v21 }
0x1dd7   :  { %4520 = vmatprep.subr.mxu1 %v5241_v1 }
0x1e87   :  { %v1556_v12 = vpop.f32.mrf.mxu1 }
0x1e88   :  { %v1557_v14 = vadd.f32 %v5679_v26, %v1556_v12 }
0x1e89   :  { %v4454_v15 = vpop.f32.mrf.mxu1 }
0x1e8a   :  { %5057 = vtanh.f32 %v1557_v14  ;;  %v3779_v17 = vmul.f32 -1.442695, %v1557_v14 }
0x1e8c   :  { %5059 = vpow2.f32 %v3779_v17  ;;  %v5920_v17 = vld [vmem:[%s6793_s5 + $0x50] sm:$0xff] }
0x1e97   :  { %v5058_v16 = vpop.eup %5057 }
0x1e98   :  { %1569 = vrot.lane.b32.xlu0 %v5058_v16, %s5243_s27  ;;  %v5915_v16 = vld [vmem:[%s6793_s5 + $0x58] sm:$0xff] }
0x1e99   :  { %v5060_v18 = vpop.eup %5059 }
0x1e9a   :  { %v1563_v53 = vadd.f32 1.0, %v5060_v18 }
0x1e9c   :  { %5061 = vrcp.f32 %v1563_v53 }
0x1ea9   :  { %v5062_v19 = vpop.eup %5061 }
0x1eaa   :  { %v1567_v21 = vmul.f32 %v5062_v19, %v1469_v43 }
0x1f0a   :  { %v1570_v0 = vpop.permute.xlu0 %1569 }
0x1f0b   :  { %v1572_v3 = vmul.f32 %v5062_v19, %v1570_v0 }
0x1f0d   :  { %1574 = vrot.lane.b32.xlu1 %v1572_v3, %s5244_s28  ;;  %v5946_v3 = vld [vmem:[%s6793_s5 + $0x38] sm:$0xff] }
0x1f7f   :  { %v1575_v5 = vpop.permute.xlu1 %1574 }
0x1f80   :  { %v1577_v6 = vadd.f32 %v1575_v5, %v1567_v21  ;;  %v5956_v21 = vld [vmem:[%s6793_s5 + $0x30] sm:$0xff]  ;;  %v5965_v5 = vld [vmem:[%s6793_s5 + $0x28] sm:$0xff] }
0x1f82   :  { %5063 = vtanh.f32 %v1577_v6 }
0x1f8f   :  { %v5064_v55 = vpop.eup %5063 }
0x1f90   :  { %1580 = vrot.lane.b32.xlu0 %v5064_v55, %s5243_s27  ;;  %v5983_v55 = vld [vmem:[%s6793_s5 + $0x18] sm:$0xff] }
0x2002   :  { %v1581_v7 = vpop.permute.xlu0 %1580 }
0x2003   :  { %v5880_v56 = vmul.f32 %v5062_v19, %v1581_v7  ;;  %v5937_v19 = vld [vmem:[%s6793_s5 + $0x40] sm:$0xff]  ;;  %v5992_v7 = vld [vmem:[%s6793_s5 + $0x10] sm:$0xff] }
0x2005   :  { %1591 = vrot.lane.b32.xlu1 %v5880_v56, %s5243_s27 }
0x2077   :  { %v1592_v58 = vpop.permute.xlu1 %1591 }
0x2078   :  { %v1594_v59 = vsel %vm61_vm1, %v3780_v57, %v1592_v58  ;;  %v6001_v57 = vld [vmem:[%s6793_s5 + $0x8] sm:$0xff]  ;;  %v6016_v58 = vld [vmem:[%s6793_s5] sm:$0xff] }
0x2079   :  { %4472 = vmatmul.mubr.msk.f32.vlgmr.msra.gmra.mxu0 %vm63_vm2, %v1594_v59 }
0x207a   :  { %4517 = vmatprep.mubr.msk.f32.mxu0 %vm5242_vm0, %v5241_v1  ;;  %4494 = vmatpush3.msra.mxu0 %v5915_v16 }
0x207b   :  { %4495 = vmatprep.subr.mxu0 %v5241_v1 }
0x207c   :  { %4496 = vmatpush3.msra.mxu0 %v5920_v17 }
0x207d   :  { %4497 = vmatprep.subr.mxu0 %v5241_v1 }
0x2139   :  { %v1664_v60 = vpop.f32.mrf.mxu0 }
0x213a   :  { %v1665_v61 = vadd.f32 %v5679_v26, %v1664_v60 }
0x213b   :  { %v4473_v63 = vpop.f32.mrf.mxu0 }
0x213c   :  { %5065 = vtanh.f32 %v1665_v61  ;;  %v3782_v13 = vmul.f32 -1.442695, %v1665_v61 }
0x213e   :  { %5067 = vpow2.f32 %v3782_v13 }
0x2149   :  { %v5066_v8 = vpop.eup %5065 }
0x214a   :  { %1677 = vrot.lane.b32.xlu0 %v5066_v8, %s5243_s27 }
0x214b   :  { %v5068_v20 = vpop.eup %5067 }
0x214c   :  { %v1671_v22 = vadd.f32 1.0, %v5068_v20  ;;  %v6059_v20 = vld [vmem:[%s6794_s6] ss:$0 sm:$0xff] }
0x214e   :  { %5069 = vrcp.f32 %v1671_v22 }
0x215b   :  { %v5070_v23 = vpop.eup %5069 }
0x215c   :  { %v1675_v29 = vmul.f32 %v5070_v23, %v1577_v6  ;;  %v5974_v6 = vld [vmem:[%s6793_s5 + $0x20] sm:$0xff] }
0x21bc   :  { %v1678_v25 = vpop.permute.xlu0 %1677 }
0x21bd   :  { %v1680_v28 = vmul.f32 %v5070_v23, %v1678_v25 }
0x21bf   :  { %1682 = vrot.lane.b32.xlu1 %v1680_v28, %s5244_s28 }
0x2231   :  { %v1683_v30 = vpop.permute.xlu1 %1682 }
0x2232   :  { %v1685_v32 = vadd.f32 %v1683_v30, %v1675_v29 }
0x2234   :  { %5071 = vtanh.f32 %v1685_v32 }
0x2241   :  { %v5072_v34 = vpop.eup %5071 }
0x2242   :  { %1688 = vrot.lane.b32.xlu0 %v5072_v34, %s5243_s27 }
0x22b4   :  { %v1689_v11 = vpop.permute.xlu0 %1688 }
0x22b5   :  { %v5895_v35 = vmul.f32 %v5070_v23, %v1689_v11 }
0x22b7   :  { %1699 = vrot.lane.b32.xlu1 %v5895_v35, %s5243_s27 }
0x2329   :  { %v1700_v37 = vpop.permute.xlu1 %1699 }
0x232a   :  { %v1702_v38 = vsel %vm61_vm1, %v1698_v36, %v1700_v37 }
0x232b   :  { %4491 = vmatmul.mubr.msk.f32.vlgmr.msra.gmra.mxu1 %vm63_vm2, %v1702_v38 }
0x232c   :  { %4544 = vmatprep.mubr.msk.f32.mxu1 %vm5242_vm0, %v5241_v1  ;;  %4521 = vmatpush3.msra.mxu1 %v5915_v16 }
0x232d   :  { %4522 = vmatprep.subr.mxu1 %v5241_v1 }
0x232e   :  { %4523 = vmatpush3.msra.mxu1 %v5920_v17 }
0x232f   :  { %4524 = vmatprep.subr.mxu1 %v5241_v1 }
0x23eb   :  { %v1772_v39 = vpop.f32.mrf.mxu1 }
0x23ec   :  { %v1773_v40 = vadd.f32 %v5679_v26, %v1772_v39 }
0x23ed   :  { %v4492_v41 = vpop.f32.mrf.mxu1 }
0x23ee   :  { %5073 = vtanh.f32 %v1773_v40  ;;  %v3784_v43 = vmul.f32 -1.442695, %v1773_v40 }
0x23f0   :  { %5075 = vpow2.f32 %v3784_v43 }
0x23fb   :  { %v5074_v42 = vpop.eup %5073 }
0x23fc   :  { %1785 = vrot.lane.b32.xlu0 %v5074_v42, %s5243_s27 }
0x23fd   :  { %v5076_v44 = vpop.eup %5075 }
0x23fe   :  { %v1779_v45 = vadd.f32 1.0, %v5076_v44 }
0x2400   :  { %5077 = vrcp.f32 %v1779_v45 }
0x240d   :  { %v5078_v49 = vpop.eup %5077 }
0x240e   :  { %v1783_v12 = vmul.f32 %v5078_v49, %v1685_v32 }
0x246e   :  { %v1786_v50 = vpop.permute.xlu0 %1785 }
0x246f   :  { %v1788_v52 = vmul.f32 %v5078_v49, %v1786_v50 }
0x2471   :  { %1790 = vrot.lane.b32.xlu1 %v1788_v52, %s5244_s28 }
0x24e3   :  { %v1791_v14 = vpop.permute.xlu1 %1790 }
0x24e4   :  { %v1793_v15 = vadd.f32 %v1791_v14, %v1783_v12 }
0x24e6   :  { %5079 = vtanh.f32 %v1793_v15 }
0x24f3   :  { %v5080_v26 = vpop.eup %5079 }
0x24f4   :  { %1796 = vrot.lane.b32.xlu0 %v5080_v26, %s5243_s27 }
0x24f8   :  { %162 = vrot.lane.b32.xlu0 %v5427_v27, %s5244_s28  ;;  %v5928_v27 = vld [vmem:[%s6793_s5 + $0x48] sm:$0xff] }
0x24f9   :  { %4498 = vmatpush3.msra.mxu0 %v5928_v27  ;;  %4525 = vmatpush3.msra.mxu1 %v5928_v27 }
0x24fa   :  { %4499 = vmatprep.subr.mxu0 %v5241_v1  ;;  %4526 = vmatprep.subr.mxu1 %v5241_v1 }
0x24fb   :  { %4500 = vmatpush3.msra.mxu0 %v5937_v19  ;;  %4527 = vmatpush3.msra.mxu1 %v5937_v19 }
0x24fc   :  { %4501 = vmatprep.subr.mxu0 %v5241_v1  ;;  %4528 = vmatprep.subr.mxu1 %v5241_v1 }
0x24fd   :  { %4502 = vmatpush3.msra.mxu0 %v5946_v3  ;;  %4529 = vmatpush3.msra.mxu1 %v5946_v3 }
0x24fe   :  { %4503 = vmatprep.subr.mxu0 %v5241_v1  ;;  %4530 = vmatprep.subr.mxu1 %v5241_v1 }
0x24ff   :  { %4504 = vmatpush3.msra.mxu0 %v5956_v21  ;;  %4531 = vmatpush3.msra.mxu1 %v5956_v21 }
0x2500   :  { %4505 = vmatprep.subr.mxu0 %v5241_v1  ;;  %4532 = vmatprep.subr.mxu1 %v5241_v1 }
0x2501   :  { %4506 = vmatpush3.msra.mxu0 %v5965_v5  ;;  %4533 = vmatpush3.msra.mxu1 %v5965_v5 }
0x2502   :  { %4507 = vmatprep.subr.mxu0 %v5241_v1  ;;  %4534 = vmatprep.subr.mxu1 %v5241_v1 }
0x2503   :  { %4508 = vmatpush3.msra.mxu0 %v5974_v6  ;;  %4535 = vmatpush3.msra.mxu1 %v5974_v6 }
0x2504   :  { %4509 = vmatprep.subr.mxu0 %v5241_v1  ;;  %4536 = vmatprep.subr.mxu1 %v5241_v1 }
0x2505   :  { %4510 = vmatpush3.msra.mxu0 %v5983_v55  ;;  %4537 = vmatpush3.msra.mxu1 %v5983_v55 }
0x2506   :  { %4511 = vmatprep.subr.mxu0 %v5241_v1  ;;  %4538 = vmatprep.subr.mxu1 %v5241_v1 }
0x2507   :  { %4512 = vmatpush3.msra.mxu0 %v5992_v7  ;;  %4539 = vmatpush3.msra.mxu1 %v5992_v7 }
0x2508   :  { %4513 = vmatprep.subr.mxu0 %v5241_v1  ;;  %4540 = vmatprep.subr.mxu1 %v5241_v1 }
0x2509   :  { %4514 = vmatpush3.msra.mxu0 %v6001_v57  ;;  %4541 = vmatpush3.msra.mxu1 %v6001_v57 }
0x250a   :  { %4515 = vmatprep.subr.mxu0 %v5241_v1  ;;  %4542 = vmatprep.subr.mxu1 %v5241_v1 }
0x250b   :  { %4516 = vmatpush3.msra.mxu0 %v6016_v58  ;;  %4543 = vmatpush3.msra.mxu1 %v6016_v58 }
0x250c   :  { %4547 = vmatprep.subr.mxu0 %v5241_v1  ;;  %4574 = vmatprep.subr.mxu1 %v5241_v1 }
0x2566   :  { %v1797_v18 = vpop.permute.xlu0 %1796 }
0x2567   :  { %v1799_v53 = vmul.f32 %v5078_v49, %v1797_v18 }
0x2569   :  { %1801 = vrot.lane.b32.xlu1 %v1799_v53, %s5244_s28 }
0x256a   :  { %v163_v0 = vpop.permute.xlu0 %162 }
0x256b   :  { %166 = vst.msk [vmem:[#allocation2] sm:$0xf] %vm165_vm3, %v163_v0 }
0x2572   :  { %v1824_v63 = vld [vmem:[#allocation2] sm:$0xf] }
0x25db   :  { %v1802_v59 = vpop.permute.xlu1 %1801 }
0x25dc   :  { %1804 = vst.msk [vmem:[#allocation3] sm:$0xf] %vm165_vm3, %v1802_v59 }
0x25e3   :  { %v1825_v60 = vld [vmem:[#allocation3] sm:$0xf] }
0x25e4   :  { %1827 = vrot.lane.b32.xlu1 %v1825_v60, %s5244_s28 }
0x2656   :  { %v1828_v61 = vpop.permute.xlu1 %1827 }
0x2657   :  { %v6025_v8 = vsel %vm61_vm1, %v1824_v63, %v1828_v61 }
0x2658   :  { %v1831_v13 = vsel %vm63_vm2, %v6025_v8, 0.0 }
0x2659   :  { %4518 = vmatmul.mubr.msk.f32.vlgmr.msra.gmra.mxu0 %vm1832_vm4, %v1831_v13 }
0x265a   :  { %4548 = vmatpush3.msra.mxu0 %v5915_v16  ;;  %4571 = vmatprep.mubr.msk.f32.mxu0 %vm5242_vm0, %v5241_v1 }
0x265b   :  { %4549 = vmatprep.subr.mxu0 %v5241_v1 }
0x265c   :  { %4550 = vmatpush3.msra.mxu0 %v5920_v17 }
0x265d   :  { %4551 = vmatprep.subr.mxu0 %v5241_v1 }
0x265e   :  { %4552 = vmatpush3.msra.mxu0 %v5928_v27 }
0x265f   :  { %4553 = vmatprep.subr.mxu0 %v5241_v1 }
0x2660   :  { %4554 = vmatpush3.msra.mxu0 %v5937_v19 }
0x2661   :  { %4555 = vmatprep.subr.mxu0 %v5241_v1 }
0x2662   :  { %4556 = vmatpush3.msra.mxu0 %v5946_v3 }
0x2663   :  { %4557 = vmatprep.subr.mxu0 %v5241_v1 }
0x2664   :  { %4558 = vmatpush3.msra.mxu0 %v5956_v21 }
0x2665   :  { %4559 = vmatprep.subr.mxu0 %v5241_v1 }
0x2666   :  { %4560 = vmatpush3.msra.mxu0 %v5965_v5 }
0x2667   :  { %4561 = vmatprep.subr.mxu0 %v5241_v1 }
0x2668   :  { %4562 = vmatpush3.msra.mxu0 %v5974_v6 }
0x2669   :  { %4563 = vmatprep.subr.mxu0 %v5241_v1 }
0x266a   :  { %4564 = vmatpush3.msra.mxu0 %v5983_v55 }
0x266b   :  { %4565 = vmatprep.subr.mxu0 %v5241_v1 }
0x266c   :  { %4566 = vmatpush3.msra.mxu0 %v5992_v7 }
0x266d   :  { %4567 = vmatprep.subr.mxu0 %v5241_v1 }
0x266e   :  { %4568 = vmatpush3.msra.mxu0 %v6001_v57 }
0x266f   :  { %4569 = vmatprep.subr.mxu0 %v5241_v1 }
0x2670   :  { %4570 = vmatpush3.msra.mxu0 %v6016_v58 }
0x2671   :  { %4601 = vmatprep.subr.mxu0 %v5241_v1 }
0x2719   :  { %v1902_v22 = vpop.f32.mrf.mxu0 }
0x271a   :  { %v1903_v23 = vadd.f32 %v6059_v20, %v1902_v22 }
0x271b   :  { %v4519_v25 = vpop.f32.mrf.mxu0 }
0x271c   :  { %5081 = vtanh.f32 %v1903_v23  ;;  %v3787_v29 = vmul.f32 -1.442695, %v1903_v23 }
0x271e   :  { %5083 = vpow2.f32 %v3787_v29 }
0x2729   :  { %v5082_v28 = vpop.eup %5081 }
0x272a   :  { %1915 = vrot.lane.b32.xlu0 %v5082_v28, %s5243_s27 }
0x272b   :  { %v5084_v30 = vpop.eup %5083 }
0x272c   :  { %v1909_v32 = vadd.f32 1.0, %v5084_v30 }
0x272e   :  { %1693 = vrot.lane.b32.xlu0 %v5895_v35, %s5244_s28  ;;  %5085 = vrcp.f32 %v1909_v32 }
0x2732   :  { %271 = vrot.lane.b32.xlu0 %v5458_v46, %s5244_s28 }
0x273b   :  { %v5086_v34 = vpop.eup %5085 }
0x273c   :  { %v1913_v35 = vmul.f32 0.0, %v5086_v34 }
0x279c   :  { %v1916_v11 = vpop.permute.xlu0 %1915 }
0x279d   :  { %v1918_v36 = vmul.f32 %v5086_v34, %v1916_v11 }
0x279f   :  { %1920 = vrot.lane.b32.xlu1 %v1918_v36, %s5244_s28 }
0x27a0   :  { %v1694_v37 = vpop.permute.xlu0 %1693 }
0x27a1   :  { %1697 = vst.msk [vmem:[#allocation3 + $0x4] sm:$0xf] %vm165_vm3, %v1694_v37 }
0x27a4   :  { %v272_v38 = vpop.permute.xlu0 %271 }
0x27a5   :  { %275 = vst.msk [vmem:[#allocation2 + $0x4] sm:$0xf] %vm165_vm3, %v272_v38 }
0x27a8   :  { %v1932_v41 = vld [vmem:[#allocation3 + $0x4] sm:$0xf] }
0x27ac   :  { %v1931_v45 = vld [vmem:[#allocation2 + $0x4] sm:$0xf] }
0x2811   :  { %v1921_v39 = vpop.permute.xlu1 %1920 }
0x2812   :  { %v1923_v40 = vadd.f32 %v1921_v39, %v1913_v35 }
0x2814   :  { %5087 = vtanh.f32 %v1923_v40 }
0x2821   :  { %v5088_v46 = vpop.eup %5087 }
0x2822   :  { %1926 = vrot.lane.b32.xlu1 %v5088_v46, %s5243_s27 }
0x2826   :  { %1934 = vrot.lane.b32.xlu1 %v1932_v41, %s5244_s28 }
0x2894   :  { %v1927_v42 = vpop.permute.xlu1 %1926 }
0x2895   :  { %v6072_v43 = vmul.f32 %v5086_v34, %v1927_v42 }
0x2897   :  { %1938 = vrot.lane.b32.xlu0 %v6072_v43, %s5245_s30 }
0x2898   :  { %v1935_v44 = vpop.permute.xlu1 %1934 }
0x2899   :  { %v6077_v49 = vsel %vm61_vm1, %v1931_v45, %v1935_v44 }
0x2909   :  { %v1939_v50 = vpop.permute.xlu0 %1938 }
0x290a   :  { %v1942_v52 = vsel %vm63_vm2, %v6077_v49, %v1939_v50 }
0x290b   :  { %4545 = vmatmul.mubr.msk.f32.vlgmr.msra.gmra.mxu1 %vm1832_vm4, %v1942_v52 }
0x290c   :  { %4575 = vmatpush3.msra.mxu1 %v5915_v16  ;;  %4598 = vmatprep.mubr.msk.f32.mxu1 %vm5242_vm0, %v5241_v1 }
0x290d   :  { %4576 = vmatprep.subr.mxu1 %v5241_v1 }
0x290e   :  { %4577 = vmatpush3.msra.mxu1 %v5920_v17 }
0x290f   :  { %4578 = vmatprep.subr.mxu1 %v5241_v1 }
0x2910   :  { %4579 = vmatpush3.msra.mxu1 %v5928_v27 }
0x2911   :  { %4580 = vmatprep.subr.mxu1 %v5241_v1 }
0x2912   :  { %4581 = vmatpush3.msra.mxu1 %v5937_v19 }
0x2913   :  { %4582 = vmatprep.subr.mxu1 %v5241_v1 }
0x2914   :  { %4583 = vmatpush3.msra.mxu1 %v5946_v3 }
0x2915   :  { %4584 = vmatprep.subr.mxu1 %v5241_v1 }
0x2916   :  { %4585 = vmatpush3.msra.mxu1 %v5956_v21 }
0x2917   :  { %4586 = vmatprep.subr.mxu1 %v5241_v1 }
0x2918   :  { %4587 = vmatpush3.msra.mxu1 %v5965_v5 }
0x2919   :  { %4588 = vmatprep.subr.mxu1 %v5241_v1 }
0x291a   :  { %4589 = vmatpush3.msra.mxu1 %v5974_v6 }
0x291b   :  { %4590 = vmatprep.subr.mxu1 %v5241_v1 }
0x291c   :  { %4591 = vmatpush3.msra.mxu1 %v5983_v55 }
0x291d   :  { %4592 = vmatprep.subr.mxu1 %v5241_v1 }
0x291e   :  { %4593 = vmatpush3.msra.mxu1 %v5992_v7 }
0x291f   :  { %4594 = vmatprep.subr.mxu1 %v5241_v1 }
0x2920   :  { %4595 = vmatpush3.msra.mxu1 %v6001_v57 }
0x2921   :  { %4596 = vmatprep.subr.mxu1 %v5241_v1 }
0x2922   :  { %4597 = vmatpush3.msra.mxu1 %v6016_v58 }
0x2923   :  { %4628 = vmatprep.subr.mxu1 %v5241_v1 }
0x29cb   :  { %v2012_v12 = vpop.f32.mrf.mxu1 }
0x29cc   :  { %v2013_v14 = vadd.f32 %v6059_v20, %v2012_v12 }
0x29cd   :  { %v4546_v15 = vpop.f32.mrf.mxu1 }
0x29ce   :  { %5089 = vtanh.f32 %v2013_v14  ;;  %v3789_v18 = vmul.f32 -1.442695, %v2013_v14 }
0x29d0   :  { %5091 = vpow2.f32 %v3789_v18 }
0x29db   :  { %v5090_v26 = vpop.eup %5089 }
0x29dc   :  { %2025 = vrot.lane.b32.xlu1 %v5090_v26, %s5243_s27 }
0x29dd   :  { %v5092_v53 = vpop.eup %5091 }
0x29de   :  { %v2019_v0 = vadd.f32 1.0, %v5092_v53 }
0x29e0   :  { %1585 = vrot.lane.b32.xlu1 %v5880_v56, %s5244_s28  ;;  %5093 = vrcp.f32 %v2019_v0 }
0x29e4   :  { %380 = vrot.lane.b32.xlu1 %v5489_v10, %s5244_s28 }
0x29ed   :  { %v5094_v59 = vpop.eup %5093 }
0x29ee   :  { %v2023_v56 = vmul.f32 %v5094_v59, %v1923_v40 }
0x2a4e   :  { %v2026_v60 = vpop.permute.xlu1 %2025 }
0x2a4f   :  { %v2028_v61 = vmul.f32 %v5094_v59, %v2026_v60 }
0x2a51   :  { %2030 = vrot.lane.b32.xlu0 %v2028_v61, %s5244_s28 }
0x2a52   :  { %v1586_v63 = vpop.permute.xlu1 %1585 }
0x2a53   :  { %1589 = vst.msk [vmem:[#allocation3 + $0x8] sm:$0xf] %vm165_vm3, %v1586_v63 }
0x2a56   :  { %v381_v13 = vpop.permute.xlu1 %380 }
0x2a57   :  { %384 = vst.msk [vmem:[#allocation2 + $0x8] sm:$0xf] %vm165_vm3, %v381_v13 }
0x2a5a   :  { %v2042_v25 = vld [vmem:[#allocation3 + $0x8] sm:$0xf] }
0x2a5e   :  { %v2041_v32 = vld [vmem:[#allocation2 + $0x8] sm:$0xf] }
0x2ac3   :  { %v2031_v22 = vpop.permute.xlu0 %2030 }
0x2ac4   :  { %v2033_v23 = vadd.f32 %v2031_v22, %v2023_v56 }
0x2ac6   :  { %5095 = vtanh.f32 %v2033_v23 }
0x2ad3   :  { %v5096_v10 = vpop.eup %5095 }
0x2ad4   :  { %2036 = vrot.lane.b32.xlu0 %v5096_v10, %s5243_s27 }
0x2ad8   :  { %2044 = vrot.lane.b32.xlu0 %v2042_v25, %s5244_s28 }
0x2b46   :  { %v2037_v28 = vpop.permute.xlu0 %2036 }
0x2b47   :  { %v6119_v29 = vmul.f32 %v5094_v59, %v2037_v28 }
0x2b49   :  { %2048 = vrot.lane.b32.xlu1 %v6119_v29, %s5245_s30  ;;  %v2040_v18 = vadd.f32 %v6119_v29, %v6072_v43 }
0x2b4a   :  { %v2045_v30 = vpop.permute.xlu0 %2044 }
0x2b4b   :  { %v6124_v34 = vsel %vm61_vm1, %v2041_v32, %v2045_v30 }
0x2bbb   :  { %v2049_v11 = vpop.permute.xlu1 %2048 }
0x2bbc   :  { %v2052_v36 = vsel %vm63_vm2, %v6124_v34, %v2049_v11 }
0x2bbd   :  { %4572 = vmatmul.mubr.msk.f32.vlgmr.msra.gmra.mxu0 %vm1832_vm4, %v2052_v36 }
0x2bbe   :  { %4602 = vmatpush3.msra.mxu0 %v5915_v16  ;;  %4625 = vmatprep.mubr.msk.f32.mxu0 %vm5242_vm0, %v5241_v1 }
0x2bbf   :  { %4603 = vmatprep.subr.mxu0 %v5241_v1 }
0x2bc0   :  { %4604 = vmatpush3.msra.mxu0 %v5920_v17 }
0x2bc1   :  { %4605 = vmatprep.subr.mxu0 %v5241_v1 }
0x2bc2   :  { %4606 = vmatpush3.msra.mxu0 %v5928_v27 }
0x2bc3   :  { %4607 = vmatprep.subr.mxu0 %v5241_v1 }
0x2bc4   :  { %4608 = vmatpush3.msra.mxu0 %v5937_v19 }
0x2bc5   :  { %4609 = vmatprep.subr.mxu0 %v5241_v1 }
0x2bc6   :  { %4610 = vmatpush3.msra.mxu0 %v5946_v3 }
0x2bc7   :  { %4611 = vmatprep.subr.mxu0 %v5241_v1 }
0x2bc8   :  { %4612 = vmatpush3.msra.mxu0 %v5956_v21 }
0x2bc9   :  { %4613 = vmatprep.subr.mxu0 %v5241_v1 }
0x2bca   :  { %4614 = vmatpush3.msra.mxu0 %v5965_v5 }
0x2bcb   :  { %4615 = vmatprep.subr.mxu0 %v5241_v1 }
0x2bcc   :  { %4616 = vmatpush3.msra.mxu0 %v5974_v6 }
0x2bcd   :  { %4617 = vmatprep.subr.mxu0 %v5241_v1 }
0x2bce   :  { %4618 = vmatpush3.msra.mxu0 %v5983_v55 }
0x2bcf   :  { %4619 = vmatprep.subr.mxu0 %v5241_v1 }
0x2bd0   :  { %4620 = vmatpush3.msra.mxu0 %v5992_v7 }
0x2bd1   :  { %4621 = vmatprep.subr.mxu0 %v5241_v1 }
0x2bd2   :  { %4622 = vmatpush3.msra.mxu0 %v6001_v57 }
0x2bd3   :  { %4623 = vmatprep.subr.mxu0 %v5241_v1 }
0x2bd4   :  { %4624 = vmatpush3.msra.mxu0 %v6016_v58 }
0x2bd5   :  { %4655 = vmatprep.subr.mxu0 %v5241_v1 }
0x2c7d   :  { %v2122_v37 = vpop.f32.mrf.mxu0 }
0x2c7e   :  { %v2123_v38 = vadd.f32 %v6059_v20, %v2122_v37 }
0x2c7f   :  { %v4573_v35 = vpop.f32.mrf.mxu0 }
0x2c80   :  { %5097 = vtanh.f32 %v2123_v38  ;;  %v3791_v40 = vmul.f32 -1.442695, %v2123_v38 }
0x2c82   :  { %5099 = vpow2.f32 %v3791_v40 }
0x2c8d   :  { %v5098_v39 = vpop.eup %5097 }
0x2c8e   :  { %2135 = vrot.lane.b32.xlu0 %v5098_v39, %s5243_s27 }
0x2c8f   :  { %v5100_v46 = vpop.eup %5099 }
0x2c90   :  { %v2129_v41 = vadd.f32 1.0, %v5100_v46 }
0x2c92   :  { %1477 = vrot.lane.b32.xlu0 %v5849_v47, %s5244_s28  ;;  %5101 = vrcp.f32 %v2129_v41 }
0x2c96   :  { %489 = vrot.lane.b32.xlu0 %v5520_v31, %s5244_s28 }
0x2c9f   :  { %v5102_v42 = vpop.eup %5101 }
0x2ca0   :  { %v2133_v47 = vmul.f32 %v5102_v42, %v2033_v23 }
0x2d00   :  { %v2136_v44 = vpop.permute.xlu0 %2135 }
0x2d01   :  { %v2138_v45 = vmul.f32 %v5102_v42, %v2136_v44 }
0x2d03   :  { %2140 = vrot.lane.b32.xlu1 %v2138_v45, %s5244_s28 }
0x2d04   :  { %v1478_v50 = vpop.permute.xlu0 %1477 }
0x2d05   :  { %1481 = vst.msk [vmem:[#allocation3 + $0xc] sm:$0xf] %vm165_vm3, %v1478_v50 }
0x2d08   :  { %v490_v52 = vpop.permute.xlu0 %489 }
0x2d09   :  { %493 = vst.msk [vmem:[#allocation2 + $0xc] sm:$0xf] %vm165_vm3, %v490_v52 }
0x2d0c   :  { %v2152_v15 = vld [vmem:[#allocation3 + $0xc] sm:$0xf] }
0x2d10   :  { %v2151_v60 = vld [vmem:[#allocation2 + $0xc] sm:$0xf] }
0x2d75   :  { %v2141_v12 = vpop.permute.xlu1 %2140 }
0x2d76   :  { %v6164_v14 = vadd.f32 %v2141_v12, %v2133_v47 }
0x2d78   :  { %5103 = vtanh.f32 %v6164_v14 }
0x2d85   :  { %v5104_v31 = vpop.eup %5103 }
0x2d86   :  { %2146 = vrot.lane.b32.xlu1 %v5104_v31, %s5243_s27 }
0x2d8a   :  { %2154 = vrot.lane.b32.xlu1 %v2152_v15, %s5244_s28 }
0x2df8   :  { %v2147_v26 = vpop.permute.xlu1 %2146 }
0x2df9   :  { %v2149_v53 = vmul.f32 %v5102_v42, %v2147_v26 }
0x2dfb   :  { %v6171_v0 = vadd.f32 %v2149_v53, %v2040_v18  ;;  %2158 = vrot.lane.b32.xlu0 %v2149_v53, %s5245_s30 }
0x2dfc   :  { %v2155_v59 = vpop.permute.xlu1 %2154 }
0x2dfd   :  { %v6175_v61 = vsel %vm61_vm1, %v2151_v60, %v2155_v59 }
0x2e6d   :  { %v2159_v63 = vpop.permute.xlu0 %2158 }
0x2e6e   :  { %v2162_v13 = vsel %vm63_vm2, %v6175_v61, %v2159_v63 }
0x2e6f   :  { %4599 = vmatmul.mubr.msk.f32.vlgmr.msra.gmra.mxu1 %vm1832_vm4, %v2162_v13 }
0x2e70   :  { %4629 = vmatpush3.msra.mxu1 %v5915_v16  ;;  %4652 = vmatprep.mubr.msk.f32.mxu1 %vm5242_vm0, %v5241_v1 }
0x2e71   :  { %4630 = vmatprep.subr.mxu1 %v5241_v1 }
0x2e72   :  { %4631 = vmatpush3.msra.mxu1 %v5920_v17 }
0x2e73   :  { %4632 = vmatprep.subr.mxu1 %v5241_v1 }
0x2e74   :  { %4633 = vmatpush3.msra.mxu1 %v5928_v27 }
0x2e75   :  { %4634 = vmatprep.subr.mxu1 %v5241_v1 }
0x2e76   :  { %4635 = vmatpush3.msra.mxu1 %v5937_v19 }
0x2e77   :  { %4636 = vmatprep.subr.mxu1 %v5241_v1 }
0x2e78   :  { %4637 = vmatpush3.msra.mxu1 %v5946_v3 }
0x2e79   :  { %4638 = vmatprep.subr.mxu1 %v5241_v1 }
0x2e7a   :  { %4639 = vmatpush3.msra.mxu1 %v5956_v21 }
0x2e7b   :  { %4640 = vmatprep.subr.mxu1 %v5241_v1 }
0x2e7c   :  { %4641 = vmatpush3.msra.mxu1 %v5965_v5 }
0x2e7d   :  { %4642 = vmatprep.subr.mxu1 %v5241_v1 }
0x2e7e   :  { %4643 = vmatpush3.msra.mxu1 %v5974_v6 }
0x2e7f   :  { %4644 = vmatprep.subr.mxu1 %v5241_v1 }
0x2e80   :  { %4645 = vmatpush3.msra.mxu1 %v5983_v55 }
0x2e81   :  { %4646 = vmatprep.subr.mxu1 %v5241_v1 }
0x2e82   :  { %4647 = vmatpush3.msra.mxu1 %v5992_v7 }
0x2e83   :  { %4648 = vmatprep.subr.mxu1 %v5241_v1 }
0x2e84   :  { %4649 = vmatpush3.msra.mxu1 %v6001_v57 }
0x2e85   :  { %4650 = vmatprep.subr.mxu1 %v5241_v1 }
0x2e86   :  { %4651 = vmatpush3.msra.mxu1 %v6016_v58 }
0x2e87   :  { %4682 = vmatprep.subr.mxu1 %v5241_v1 }
0x2f2f   :  { %v2232_v43 = vpop.f32.mrf.mxu1 }
0x2f30   :  { %v2233_v56 = vadd.f32 %v6059_v20, %v2232_v43 }
0x2f31   :  { %v4600_v22 = vpop.f32.mrf.mxu1 }
0x2f32   :  { %5105 = vtanh.f32 %v2233_v56  ;;  %v3793_v10 = vmul.f32 -1.442695, %v2233_v56  ;;  %v5217_v56 = vld [vmem:[%s6790_s2] ss:$0 sm:$0xff] }
0x2f33   :  { %v897_v22 = vadd.f32 %v5217_v56, %v5749_v9  ;;  %v6393_v56 = vld [vmem:[%s6795_s7 + $0x28] sm:$0xff] }
0x2f34   :  { %5107 = vpow2.f32 %v3793_v10 }
0x2f3f   :  { %v5106_v23 = vpop.eup %5105 }
0x2f40   :  { %2245 = vrot.lane.b32.xlu1 %v5106_v23, %s5243_s27 }
0x2f41   :  { %v5108_v25 = vpop.eup %5107 }
0x2f42   :  { %v2239_v28 = vadd.f32 1.0, %v5108_v25 }
0x2f44   :  { %1369 = vrot.lane.b32.xlu1 %v5818_v24, %s5244_s28  ;;  %5109 = vrcp.f32 %v2239_v28 }
0x2f48   :  { %598 = vrot.lane.b32.xlu1 %v5551_v51, %s5244_s28 }
0x2f51   :  { %v5110_v29 = vpop.eup %5109 }
0x2f52   :  { %v2243_v24 = vmul.f32 %v5110_v29, %v6164_v14 }
0x2fb2   :  { %v2246_v30 = vpop.permute.xlu1 %2245 }
0x2fb3   :  { %v2248_v32 = vmul.f32 %v5110_v29, %v2246_v30 }
0x2fb5   :  { %2250 = vrot.lane.b32.xlu0 %v2248_v32, %s5244_s28 }
0x2fb6   :  { %v1370_v11 = vpop.permute.xlu1 %1369 }
0x2fb7   :  { %1373 = vst.msk [vmem:[#allocation3 + $0x10] sm:$0xf] %vm165_vm3, %v1370_v11 }
0x2fba   :  { %v599_v36 = vpop.permute.xlu1 %598 }
0x2fbb   :  { %602 = vst.msk [vmem:[#allocation2 + $0x10] sm:$0xf] %vm165_vm3, %v599_v36 }
0x2fbe   :  { %v2262_v35 = vld [vmem:[#allocation3 + $0x10] sm:$0xf] }
0x2fc2   :  { %v2261_v42 = vld [vmem:[#allocation2 + $0x10] sm:$0xf] }
0x3027   :  { %v2251_v37 = vpop.permute.xlu0 %2250 }
0x3028   :  { %v2253_v51 = vadd.f32 %v2251_v37, %v2243_v24 }
0x302a   :  { %5111 = vtanh.f32 %v2253_v51 }
0x3037   :  { %v5112_v38 = vpop.eup %5111 }
0x3038   :  { %2256 = vrot.lane.b32.xlu0 %v5112_v38, %s5243_s27 }
0x303c   :  { %2264 = vrot.lane.b32.xlu0 %v2262_v35, %s5244_s28 }
0x30aa   :  { %v2257_v39 = vpop.permute.xlu0 %2256 }
0x30ab   :  { %v2259_v40 = vmul.f32 %v5110_v29, %v2257_v39  ;;  %v3760_v29 = vmul.f32 -1.442695, %v897_v22 }
0x30ad   :  { %v6219_v46 = vadd.f32 %v2259_v40, %v6171_v0  ;;  %2268 = vrot.lane.b32.xlu1 %v2259_v40, %s5245_s30 }
0x30ae   :  { %v2265_v41 = vpop.permute.xlu0 %2264 }
0x30af   :  { %v6223_v44 = vsel %vm61_vm1, %v2261_v42, %v2265_v41 }
0x311f   :  { %v2269_v45 = vpop.permute.xlu1 %2268 }
0x3120   :  { %v2272_v50 = vsel %vm63_vm2, %v6223_v44, %v2269_v45 }
0x3121   :  { %4626 = vmatmul.mubr.msk.f32.vlgmr.msra.gmra.mxu0 %vm1832_vm4, %v2272_v50 }
0x3122   :  { %4656 = vmatpush3.msra.mxu0 %v5915_v16  ;;  %4679 = vmatprep.mubr.msk.f32.mxu0 %vm5242_vm0, %v5241_v1 }
0x3123   :  { %4657 = vmatprep.subr.mxu0 %v5241_v1 }
0x3124   :  { %4658 = vmatpush3.msra.mxu0 %v5920_v17 }
0x3125   :  { %4659 = vmatprep.subr.mxu0 %v5241_v1 }
0x3126   :  { %4660 = vmatpush3.msra.mxu0 %v5928_v27 }
0x3127   :  { %4661 = vmatprep.subr.mxu0 %v5241_v1 }
0x3128   :  { %4662 = vmatpush3.msra.mxu0 %v5937_v19 }
0x3129   :  { %4663 = vmatprep.subr.mxu0 %v5241_v1 }
0x312a   :  { %4664 = vmatpush3.msra.mxu0 %v5946_v3 }
0x312b   :  { %4665 = vmatprep.subr.mxu0 %v5241_v1 }
0x312c   :  { %4666 = vmatpush3.msra.mxu0 %v5956_v21 }
0x312d   :  { %4667 = vmatprep.subr.mxu0 %v5241_v1 }
0x312e   :  { %4668 = vmatpush3.msra.mxu0 %v5965_v5 }
0x312f   :  { %4669 = vmatprep.subr.mxu0 %v5241_v1 }
0x3130   :  { %4670 = vmatpush3.msra.mxu0 %v5974_v6 }
0x3131   :  { %4671 = vmatprep.subr.mxu0 %v5241_v1 }
0x3132   :  { %4672 = vmatpush3.msra.mxu0 %v5983_v55 }
0x3133   :  { %4673 = vmatprep.subr.mxu0 %v5241_v1 }
0x3134   :  { %4674 = vmatpush3.msra.mxu0 %v5992_v7 }
0x3135   :  { %4675 = vmatprep.subr.mxu0 %v5241_v1 }
0x3136   :  { %4676 = vmatpush3.msra.mxu0 %v6001_v57 }
0x3137   :  { %4677 = vmatprep.subr.mxu0 %v5241_v1 }
0x3138   :  { %4678 = vmatpush3.msra.mxu0 %v6016_v58 }
0x3139   :  { %4709 = vmatprep.subr.mxu0 %v5241_v1 }
0x31e1   :  { %v2342_v52 = vpop.f32.mrf.mxu0 }
0x31e2   :  { %v2343_v47 = vadd.f32 %v6059_v20, %v2342_v52 }
0x31e3   :  { %v4627_v12 = vpop.f32.mrf.mxu0 }
0x31e4   :  { %5113 = vtanh.f32 %v2343_v47  ;;  %v3795_v31 = vmul.f32 -1.442695, %v2343_v47 }
0x31e6   :  { %5115 = vpow2.f32 %v3795_v31 }
0x31f1   :  { %v5114_v14 = vpop.eup %5113 }
0x31f2   :  { %2355 = vrot.lane.b32.xlu0 %v5114_v14, %s5243_s27 }
0x31f3   :  { %v5116_v15 = vpop.eup %5115 }
0x31f4   :  { %v2349_v26 = vadd.f32 1.0, %v5116_v15 }
0x31f6   :  { %1261 = vrot.lane.b32.xlu0 %v5787_v54, %s5244_s28  ;;  %5117 = vrcp.f32 %v2349_v26 }
0x31fa   :  { %707 = vrot.lane.b32.xlu0 %v5585_v62, %s5244_s28 }
0x3203   :  { %v5118_v18 = vpop.eup %5117 }
0x3204   :  { %v2353_v54 = vmul.f32 %v5118_v18, %v2253_v51 }
0x3264   :  { %v2356_v53 = vpop.permute.xlu0 %2355 }
0x3265   :  { %v2358_v0 = vmul.f32 %v5118_v18, %v2356_v53 }
0x3267   :  { %2360 = vrot.lane.b32.xlu1 %v2358_v0, %s5244_s28 }
0x3268   :  { %v1262_v59 = vpop.permute.xlu0 %1261 }
0x3269   :  { %1265 = vst.msk [vmem:[#allocation3 + $0x14] sm:$0xf] %vm165_vm3, %v1262_v59  ;;  %v6348_v59 = vld [vmem:[%s6795_s7 + $0x58] sm:$0xff] }
0x326c   :  { %v708_v60 = vpop.permute.xlu0 %707 }
0x326d   :  { %711 = vst.msk [vmem:[#allocation2 + $0x14] sm:$0xf] %vm165_vm3, %v708_v60 }
0x3270   :  { %v2372_v43 = vld [vmem:[#allocation3 + $0x14] sm:$0xf] }
0x3274   :  { %v2371_v36 = vld [vmem:[#allocation2 + $0x14] sm:$0xf] }
0x32d9   :  { %v2361_v63 = vpop.permute.xlu1 %2360 }
0x32da   :  { %v6263_v13 = vadd.f32 %v2361_v63, %v2353_v54  ;;  %v6356_v54 = vld [vmem:[%s6795_s7 + $0x50] sm:$0xff]  ;;  %v6365_v63 = vld [vmem:[%s6795_s7 + $0x48] sm:$0xff] }
0x32dc   :  { %5119 = vtanh.f32 %v6263_v13 }
0x32dd   :  { %5121 = vtanh.f32 %v897_v22  ;;  %v6400_v22 = vld [vmem:[%s6795_s7 + $0x20] sm:$0xff] }
0x32de   :  { %5123 = vpow2.f32 %v3760_v29 }
0x32e9   :  { %v5120_v62 = vpop.eup %5119 }
0x32ea   :  { %2366 = vrot.lane.b32.xlu1 %v5120_v62, %s5243_s27  ;;  %v5122_v28 = vpop.eup %5121  ;;  %v6379_v62 = vld [vmem:[%s6795_s7 + $0x38] sm:$0xff] }
0x32eb   :  { %v5124_v30 = vpop.eup %5123 }
0x32ec   :  { %v903_v32 = vadd.f32 1.0, %v5124_v30 }
0x32ee   :  { %2374 = vrot.lane.b32.xlu1 %v2372_v43, %s5244_s28  ;;  %5125 = vrcp.f32 %v903_v32  ;;  %v6386_v43 = vld [vmem:[%s6795_s7 + $0x30] sm:$0xff]  ;;  %v6431_v32 = vld [vmem:[%s6795_s7] sm:$0xff] }
0x32fb   :  { %v6286_v51 = vpop.eup %5125 }
0x335c   :  { %v2367_v23 = vpop.permute.xlu1 %2366 }
0x335d   :  { %v2369_v10 = vmul.f32 %v5118_v18, %v2367_v23  ;;  %v6407_v23 = vld [vmem:[%s6795_s7 + $0x18] sm:$0xff] }
0x335f   :  { %v6273_v25 = vadd.f32 %v2369_v10, %v6219_v46  ;;  %2378 = vrot.lane.b32.xlu0 %v2369_v10, %s5245_s30  ;;  %v6414_v10 = vld [vmem:[%s6795_s7 + $0x10] sm:$0xff] }
0x3360   :  { %v2375_v11 = vpop.permute.xlu1 %2374 }
0x3361   :  { %v6278_v9 = vsel %vm61_vm1, %v2371_v36, %v2375_v11 }
0x3363   :  { %909 = vrot.lane.b32.xlu0 %v5122_v28, %s5243_s27  ;;  %v6421_v28 = vld [vmem:[%s6795_s7 + $0x8] sm:$0xff] }
0x33d1   :  { %v2379_v24 = vpop.permute.xlu0 %2378 }
0x33d2   :  { %v2382_v37 = vsel %vm63_vm2, %v6278_v9, %v2379_v24 }
0x33d3   :  { %4653 = vmatmul.mubr.msk.f32.vlgmr.msra.gmra.mxu1 %vm1832_vm4, %v2382_v37 }
0x33d4   :  { %4683 = vmatpush3.msra.mxu1 %v5915_v16  ;;  %4706 = vmatprep.mubr.msk.f32.mxu1 %vm5242_vm0, %v5241_v1 }
0x33d5   :  { %v910_v38 = vpop.permute.xlu0 %909  ;;  %4684 = vmatprep.subr.mxu1 %v5241_v1 }
0x33d6   :  { %v912_v35 = vmul.f32 %v6286_v51, %v910_v38  ;;  %4685 = vmatpush3.msra.mxu1 %v5920_v17  ;;  %v6471_v38 = vld [vmem:[%s6796_s8] ss:$0 sm:$0xff] }
0x33d7   :  { %4686 = vmatprep.subr.mxu1 %v5241_v1 }
0x33d8   :  { %914 = vrot.lane.b32.xlu0 %v912_v35, %s5244_s28  ;;  %4687 = vmatpush3.msra.mxu1 %v5928_v27 }
0x33d9   :  { %4688 = vmatprep.subr.mxu1 %v5241_v1 }
0x33da   :  { %4689 = vmatpush3.msra.mxu1 %v5937_v19 }
0x33db   :  { %4690 = vmatprep.subr.mxu1 %v5241_v1 }
0x33dc   :  { %4691 = vmatpush3.msra.mxu1 %v5946_v3 }
0x33dd   :  { %4692 = vmatprep.subr.mxu1 %v5241_v1 }
0x33de   :  { %4693 = vmatpush3.msra.mxu1 %v5956_v21 }
0x33df   :  { %4694 = vmatprep.subr.mxu1 %v5241_v1 }
0x33e0   :  { %4695 = vmatpush3.msra.mxu1 %v5965_v5 }
0x33e1   :  { %4696 = vmatprep.subr.mxu1 %v5241_v1 }
0x33e2   :  { %4697 = vmatpush3.msra.mxu1 %v5974_v6 }
0x33e3   :  { %4698 = vmatprep.subr.mxu1 %v5241_v1 }
0x33e4   :  { %4699 = vmatpush3.msra.mxu1 %v5983_v55  ;;  %v907_v55 = vmul.f32 %v6286_v51, %v5687_v48 }
0x33e5   :  { %4700 = vmatprep.subr.mxu1 %v5241_v1 }
0x33e6   :  { %4701 = vmatpush3.msra.mxu1 %v5992_v7 }
0x33e7   :  { %4702 = vmatprep.subr.mxu1 %v5241_v1 }
0x33e8   :  { %4703 = vmatpush3.msra.mxu1 %v6001_v57 }
0x33e9   :  { %4704 = vmatprep.subr.mxu1 %v5241_v1 }
0x33ea   :  { %4705 = vmatpush3.msra.mxu1 %v6016_v58 }
0x33eb   :  { %4736 = vmatprep.subr.mxu1 %v5241_v1 }
0x344a   :  { %v915_v6 = vpop.permute.xlu0 %914 }
0x344b   :  { %v917_v7 = vadd.f32 %v915_v6, %v907_v55 }
0x3493   :  { %v2452_v16 = vpop.f32.mrf.mxu1 }
0x3494   :  { %v2453_v17 = vadd.f32 %v6059_v20, %v2452_v16 }
0x3495   :  { %v4654_v27 = vpop.f32.mrf.mxu1 }
0x3496   :  { %5127 = vtanh.f32 %v2453_v17  ;;  %v3797_v3 = vmul.f32 -1.442695, %v2453_v17 }
0x3498   :  { %5129 = vpow2.f32 %v3797_v3 }
0x34a3   :  { %v5128_v19 = vpop.eup %5127 }
0x34a4   :  { %2465 = vrot.lane.b32.xlu1 %v5128_v19, %s5243_s27 }
0x34a5   :  { %v5130_v21 = vpop.eup %5129 }
0x34a6   :  { %v2459_v5 = vadd.f32 1.0, %v5130_v21 }
0x34a8   :  { %5131 = vrcp.f32 %v2459_v5 }
0x34a9   :  { %5133 = vtanh.f32 %v917_v7 }
0x34b5   :  { %v5132_v57 = vpop.eup %5131 }
0x34b6   :  { %v5134_v40 = vpop.eup %5133  ;;  %v2463_v46 = vmul.f32 %v5132_v57, %v6263_v13  ;;  %v6372_v13 = vld [vmem:[%s6795_s7 + $0x40] sm:$0xff] }
0x3516   :  { %v2466_v58 = vpop.permute.xlu1 %2465 }
0x3517   :  { %v2468_v39 = vmul.f32 %v5132_v57, %v2466_v58 }
0x3519   :  { %2470 = vrot.lane.b32.xlu1 %v2468_v39, %s5244_s28 }
0x351d   :  { %1153 = vrot.lane.b32.xlu1 %v5756_v33, %s5244_s28 }
0x3521   :  { %920 = vrot.lane.b32.xlu1 %v5134_v40, %s5243_s27 }
0x3525   :  { %816 = vrot.lane.b32.xlu1 %v5695_v2, %s5244_s28 }
0x358b   :  { %v2471_v41 = vpop.permute.xlu1 %2470 }
0x358c   :  { %v6324_v48 = vadd.f32 %v2471_v41, %v2463_v46 }
0x358e   :  { %5135 = vtanh.f32 %v6324_v48 }
0x358f   :  { %v1154_v42 = vpop.permute.xlu1 %1153 }
0x3590   :  { %1157 = vst.msk [vmem:[#allocation3 + $0x18] sm:$0xf] %vm165_vm3, %v1154_v42 }
0x3593   :  { %v921_v45 = vpop.permute.xlu1 %920 }
0x3594   :  { %v923_v52 = vmul.f32 %v6286_v51, %v921_v45 }
0x3597   :  { %v817_v50 = vpop.permute.xlu1 %816  ;;  %v2482_v2 = vld [vmem:[#allocation3 + $0x18] sm:$0xf] }
0x3598   :  { %820 = vst.msk [vmem:[#allocation2 + $0x18] sm:$0xf] %vm165_vm3, %v817_v50 }
0x359b   :  { %v5136_v33 = vpop.eup %5135 }
0x359c   :  { %2476 = vrot.lane.b32.xlu0 %v5136_v33, %s5243_s27 }
0x359f   :  { %v2481_v18 = vld [vmem:[#allocation2 + $0x18] sm:$0xf] }
0x35a0   :  { %1045 = vrot.lane.b32.xlu0 %v5699_v4, %s5244_s28 }
0x35a4   :  { %2484 = vrot.lane.b32.xlu0 %v2482_v2, %s5244_s28 }
0x35a8   :  { %925 = vrot.lane.b32.xlu0 %v923_v52, %s5244_s28 }
0x360e   :  { %v2477_v47 = vpop.permute.xlu0 %2476 }
0x360f   :  { %v2479_v12 = vmul.f32 %v5132_v57, %v2477_v47 }
0x3611   :  { %v6336_v14 = vadd.f32 %v2479_v12, %v6273_v25  ;;  %2488 = vrot.lane.b32.xlu1 %v2479_v12, %s5245_s30 }
0x3612   :  { %v1046_v31 = vpop.permute.xlu0 %1045 }
0x3613   :  { %1049 = vst.msk [vmem:[#allocation3 + $0x1c] sm:$0xf] %vm165_vm3, %v1046_v31 }
0x3616   :  { %v2485_v15 = vpop.permute.xlu0 %2484 }
0x3617   :  { %v6343_v53 = vsel %vm61_vm1, %v2481_v18, %v2485_v15 }
0x361a   :  { %v926_v26 = vpop.permute.xlu0 %925  ;;  %v2592_v4 = vld [vmem:[#allocation3 + $0x1c] sm:$0xf] }
0x361b   :  { %929 = vst.msk [vmem:[#allocation2 + $0x1c] sm:$0xf] %vm165_vm3, %v926_v26  ;;  %2594 = vrot.lane.b32.xlu1 %v2592_v4, %s5244_s28 }
0x3622   :  { %v2591_v29 = vld [vmem:[#allocation2 + $0x1c] sm:$0xf] }
0x3683   :  { %v2489_v0 = vpop.permute.xlu1 %2488 }
0x3684   :  { %v2492_v60 = vsel %vm63_vm2, %v6343_v53, %v2489_v0 }
0x3685   :  { %4680 = vmatmul.mubr.msk.f32.vlgmr.msra.gmra.mxu0 %vm1832_vm4, %v2492_v60 }
0x3686   :  { %4710 = vmatpush3.msra.mxu0 %v6348_v59  ;;  %4733 = vmatprep.mubr.msk.f32.mxu0 %vm5242_vm0, %v5241_v1 }
0x3687   :  { %4711 = vmatprep.subr.mxu0 %v5241_v1 }
0x3688   :  { %4712 = vmatpush3.msra.mxu0 %v6356_v54 }
0x3689   :  { %4713 = vmatprep.subr.mxu0 %v5241_v1 }
0x368a   :  { %4714 = vmatpush3.msra.mxu0 %v6365_v63 }
0x368b   :  { %4715 = vmatprep.subr.mxu0 %v5241_v1 }
0x368c   :  { %4716 = vmatpush3.msra.mxu0 %v6372_v13 }
0x368d   :  { %4717 = vmatprep.subr.mxu0 %v5241_v1  ;;  %v2595_v25 = vpop.permute.xlu1 %2594 }
0x368e   :  { %4718 = vmatpush3.msra.mxu0 %v6379_v62  ;;  %v6425_v30 = vsel %vm61_vm1, %v2591_v29, %v2595_v25 }
0x368f   :  { %4719 = vmatprep.subr.mxu0 %v5241_v1  ;;  %v2720_v11 = vsel %vm63_vm2, %v6425_v30, 0.0 }
0x3690   :  { %4720 = vmatpush3.msra.mxu0 %v6386_v43 }
0x3691   :  { %4721 = vmatprep.subr.mxu0 %v5241_v1 }
0x3692   :  { %4722 = vmatpush3.msra.mxu0 %v6393_v56 }
0x3693   :  { %4723 = vmatprep.subr.mxu0 %v5241_v1 }
0x3694   :  { %4724 = vmatpush3.msra.mxu0 %v6400_v22 }
0x3695   :  { %4725 = vmatprep.subr.mxu0 %v5241_v1 }
0x3696   :  { %4726 = vmatpush3.msra.mxu0 %v6407_v23 }
0x3697   :  { %4727 = vmatprep.subr.mxu0 %v5241_v1 }
0x3698   :  { %4728 = vmatpush3.msra.mxu0 %v6414_v10 }
0x3699   :  { %4729 = vmatprep.subr.mxu0 %v5241_v1 }
0x369a   :  { %4730 = vmatpush3.msra.mxu0 %v6421_v28 }
0x369b   :  { %4731 = vmatprep.subr.mxu0 %v5241_v1 }
0x369c   :  { %4732 = vmatpush3.msra.mxu0 %v6431_v32 }
0x369d   :  { %4734 = vmatmul.mubr.msk.f32.vlgmr.msra.gmra.mxu0 %vm1832_vm4, %v2720_v11  ;;  %4763 = vmatprep.subr.mxu0 %v5241_v1 }
0x369e   :  { %4764 = vmatpush3.msra.mxu0 %v6348_v59  ;;  %4787 = vmatprep.mubr.msk.f32.mxu0 %vm5242_vm0, %v5241_v1 }
0x369f   :  { %4765 = vmatprep.subr.mxu0 %v5241_v1 }
0x36a0   :  { %4766 = vmatpush3.msra.mxu0 %v6356_v54 }
0x36a1   :  { %4767 = vmatprep.subr.mxu0 %v5241_v1 }
0x36a2   :  { %4768 = vmatpush3.msra.mxu0 %v6365_v63 }
0x36a3   :  { %4769 = vmatprep.subr.mxu0 %v5241_v1 }
0x36a4   :  { %4770 = vmatpush3.msra.mxu0 %v6372_v13 }
0x36a5   :  { %4771 = vmatprep.subr.mxu0 %v5241_v1 }
0x36a6   :  { %4772 = vmatpush3.msra.mxu0 %v6379_v62 }
0x36a7   :  { %4773 = vmatprep.subr.mxu0 %v5241_v1 }
0x36a8   :  { %4774 = vmatpush3.msra.mxu0 %v6386_v43 }
0x36a9   :  { %4775 = vmatprep.subr.mxu0 %v5241_v1 }
0x36aa   :  { %4776 = vmatpush3.msra.mxu0 %v6393_v56 }
0x36ab   :  { %4777 = vmatprep.subr.mxu0 %v5241_v1 }
0x36ac   :  { %4778 = vmatpush3.msra.mxu0 %v6400_v22 }
0x36ad   :  { %4779 = vmatprep.subr.mxu0 %v5241_v1 }
0x36ae   :  { %4780 = vmatpush3.msra.mxu0 %v6407_v23 }
0x36af   :  { %4781 = vmatprep.subr.mxu0 %v5241_v1 }
0x36b0   :  { %4782 = vmatpush3.msra.mxu0 %v6414_v10 }
0x36b1   :  { %4783 = vmatprep.subr.mxu0 %v5241_v1 }
0x36b2   :  { %4784 = vmatpush3.msra.mxu0 %v6421_v28 }
0x36b3   :  { %4785 = vmatprep.subr.mxu0 %v5241_v1 }
0x36b4   :  { %4786 = vmatpush3.msra.mxu0 %v6431_v32 }
0x36b5   :  { %4817 = vmatprep.subr.mxu0 %v5241_v1 }
0x3745   :  { %v2562_v36 = vpop.f32.mrf.mxu0 }
0x3746   :  { %v2563_v24 = vadd.f32 %v6059_v20, %v2562_v36 }
0x3747   :  { %v4681_v37 = vpop.f32.mrf.mxu0 }
0x3748   :  { %5137 = vtanh.f32 %v2563_v24  ;;  %v3799_v19 = vmul.f32 -1.442695, %v2563_v24 }
0x3755   :  { %v5138_v51 = vpop.eup %5137 }
0x3756   :  { %2575 = vrot.lane.b32.xlu0 %v5138_v51, %s5243_s27 }
0x375d   :  { %v2790_v35 = vpop.f32.mrf.mxu0 }
0x375e   :  { %v2791_v16 = vadd.f32 %v6471_v38, %v2790_v35 }
0x375f   :  { %v4735_v17 = vpop.f32.mrf.mxu0 }
0x3760   :  { %5139 = vtanh.f32 %v2791_v16  ;;  %v3804_v21 = vmul.f32 -1.442695, %v2791_v16 }
0x3761   :  { %5141 = vpow2.f32 %v3799_v19 }
0x376d   :  { %v5140_v27 = vpop.eup %5139 }
0x376e   :  { %2803 = vrot.lane.b32.xlu1 %v5140_v27, %s5243_s27  ;;  %v5142_v20 = vpop.eup %5141 }
0x376f   :  { %v2569_v3 = vadd.f32 1.0, %v5142_v20 }
0x3771   :  { %5143 = vrcp.f32 %v2569_v3 }
0x3772   :  { %5145 = vpow2.f32 %v3804_v21 }
0x377e   :  { %v5144_v5 = vpop.eup %5143 }
0x377f   :  { %v5146_v7 = vpop.eup %5145  ;;  %v2573_v46 = vmul.f32 %v5144_v5, %v6324_v48 }
0x3780   :  { %v2797_v57 = vadd.f32 1.0, %v5146_v7 }
0x3782   :  { %5147 = vrcp.f32 %v2797_v57 }
0x378f   :  { %v5148_v58 = vpop.eup %5147 }
0x3790   :  { %v2801_v50 = vmul.f32 0.0, %v5148_v58 }
0x37c8   :  { %v2576_v6 = vpop.permute.xlu0 %2575 }
0x37c9   :  { %v2578_v55 = vmul.f32 %v5144_v5, %v2576_v6 }
0x37cb   :  { %2580 = vrot.lane.b32.xlu0 %v2578_v55, %s5244_s28 }
0x37e0   :  { %v2804_v39 = vpop.permute.xlu1 %2803 }
0x37e1   :  { %v2806_v40 = vmul.f32 %v5148_v58, %v2804_v39 }
0x37e3   :  { %2808 = vrot.lane.b32.xlu1 %v2806_v40, %s5244_s28 }
0x383d   :  { %v2581_v41 = vpop.permute.xlu0 %2580 }
0x383e   :  { %v6478_v42 = vadd.f32 %v2581_v41, %v2573_v46 }
0x3840   :  { %5149 = vtanh.f32 %v6478_v42 }
0x384d   :  { %v5150_v45 = vpop.eup %5149 }
0x384e   :  { %2586 = vrot.lane.b32.xlu0 %v5150_v45, %s5243_s27 }
0x3855   :  { %v2809_v33 = vpop.permute.xlu1 %2808 }
0x3856   :  { %v6482_v2 = vadd.f32 %v2809_v33, %v2801_v50 }
0x3858   :  { %5151 = vtanh.f32 %v6482_v2 }
0x3865   :  { %v5152_v52 = vpop.eup %5151 }
0x3866   :  { %2814 = vrot.lane.b32.xlu1 %v5152_v52, %s5243_s27 }
0x38c0   :  { %v2587_v47 = vpop.permute.xlu0 %2586 }
0x38c1   :  { %v2589_v12 = vmul.f32 %v5144_v5, %v2587_v47 }
0x38c3   :  { %v6487_v48 = vadd.f32 %v2589_v12, %v6336_v14  ;;  %2598 = vrot.lane.b32.xlu0 %v2589_v12, %s5245_s30 }
0x38d8   :  { %v2815_v31 = vpop.permute.xlu1 %2814 }
0x38d9   :  { %v6490_v15 = vmul.f32 %v5148_v58, %v2815_v31 }
0x38db   :  { %2820 = vrot.lane.b32.xlu1 %v6490_v15, %s5245_s30 }
0x3935   :  { %v2599_v26 = vpop.permute.xlu0 %2598 }
0x3936   :  { %v2602_v4 = vsel %vm63_vm2, %v6425_v30, %v2599_v26 }
0x3937   :  { %4707 = vmatmul.mubr.msk.f32.vlgmr.msra.gmra.mxu1 %vm1832_vm4, %v2602_v4 }
0x3938   :  { %4737 = vmatpush3.msra.mxu1 %v6348_v59  ;;  %4760 = vmatprep.mubr.msk.f32.mxu1 %vm5242_vm0, %v5241_v1 }
0x3939   :  { %4738 = vmatprep.subr.mxu1 %v5241_v1 }
0x393a   :  { %4739 = vmatpush3.msra.mxu1 %v6356_v54 }
0x393b   :  { %4740 = vmatprep.subr.mxu1 %v5241_v1 }
0x393c   :  { %4741 = vmatpush3.msra.mxu1 %v6365_v63 }
0x393d   :  { %4742 = vmatprep.subr.mxu1 %v5241_v1 }
0x393e   :  { %4743 = vmatpush3.msra.mxu1 %v6372_v13 }
0x393f   :  { %4744 = vmatprep.subr.mxu1 %v5241_v1 }
0x3940   :  { %4745 = vmatpush3.msra.mxu1 %v6379_v62 }
0x3941   :  { %4746 = vmatprep.subr.mxu1 %v5241_v1 }
0x3942   :  { %4747 = vmatpush3.msra.mxu1 %v6386_v43 }
0x3943   :  { %4748 = vmatprep.subr.mxu1 %v5241_v1 }
0x3944   :  { %4749 = vmatpush3.msra.mxu1 %v6393_v56 }
0x3945   :  { %4750 = vmatprep.subr.mxu1 %v5241_v1 }
0x3946   :  { %4751 = vmatpush3.msra.mxu1 %v6400_v22 }
0x3947   :  { %4752 = vmatprep.subr.mxu1 %v5241_v1 }
0x3948   :  { %4753 = vmatpush3.msra.mxu1 %v6407_v23 }
0x3949   :  { %4754 = vmatprep.subr.mxu1 %v5241_v1 }
0x394a   :  { %4755 = vmatpush3.msra.mxu1 %v6414_v10 }
0x394b   :  { %4756 = vmatprep.subr.mxu1 %v5241_v1 }
0x394c   :  { %4757 = vmatpush3.msra.mxu1 %v6421_v28 }
0x394d   :  { %4758 = vmatprep.subr.mxu1 %v5241_v1  ;;  %v2821_v14 = vpop.permute.xlu1 %2820 }
0x394e   :  { %v2823_v18 = vsel %vm63_vm2, %v6343_v53, %v2821_v14  ;;  %4759 = vmatpush3.msra.mxu1 %v6431_v32 }
0x394f   :  { %4761 = vmatmul.mubr.msk.f32.vlgmr.msra.gmra.mxu1 %vm1832_vm4, %v2823_v18  ;;  %4790 = vmatprep.subr.mxu1 %v5241_v1 }
0x3950   :  { %4791 = vmatpush3.msra.mxu1 %v6348_v59  ;;  %4814 = vmatprep.mubr.msk.f32.mxu1 %vm5242_vm0, %v5241_v1 }
0x3951   :  { %4792 = vmatprep.subr.mxu1 %v5241_v1 }
0x3952   :  { %4793 = vmatpush3.msra.mxu1 %v6356_v54 }
0x3953   :  { %4794 = vmatprep.subr.mxu1 %v5241_v1 }
0x3954   :  { %4795 = vmatpush3.msra.mxu1 %v6365_v63 }
0x3955   :  { %4796 = vmatprep.subr.mxu1 %v5241_v1 }
0x3956   :  { %4797 = vmatpush3.msra.mxu1 %v6372_v13 }
0x3957   :  { %4798 = vmatprep.subr.mxu1 %v5241_v1 }
0x3958   :  { %4799 = vmatpush3.msra.mxu1 %v6379_v62 }
0x3959   :  { %4800 = vmatprep.subr.mxu1 %v5241_v1 }
0x395a   :  { %4801 = vmatpush3.msra.mxu1 %v6386_v43 }
0x395b   :  { %4802 = vmatprep.subr.mxu1 %v5241_v1 }
0x395c   :  { %4803 = vmatpush3.msra.mxu1 %v6393_v56 }
0x395d   :  { %4804 = vmatprep.subr.mxu1 %v5241_v1 }
0x395e   :  { %4805 = vmatpush3.msra.mxu1 %v6400_v22 }
0x395f   :  { %4806 = vmatprep.subr.mxu1 %v5241_v1 }
0x3960   :  { %4807 = vmatpush3.msra.mxu1 %v6407_v23 }
0x3961   :  { %4808 = vmatprep.subr.mxu1 %v5241_v1 }
0x3962   :  { %4809 = vmatpush3.msra.mxu1 %v6414_v10 }
0x3963   :  { %4810 = vmatprep.subr.mxu1 %v5241_v1 }
0x3964   :  { %4811 = vmatpush3.msra.mxu1 %v6421_v28 }
0x3965   :  { %4812 = vmatprep.subr.mxu1 %v5241_v1 }
0x3966   :  { %4813 = vmatpush3.msra.mxu1 %v6431_v32 }
0x3967   :  { %4844 = vmatprep.subr.mxu1 %v5241_v1 }
0x39f7   :  { %v6552_v53 = vpop.f32.mrf.mxu1 }
0x39f9   :  { %v4708_v0 = vpop.f32.mrf.mxu1 }
0x3a0f   :  { %v2893_v60 = vpop.f32.mrf.mxu1 }
0x3a10   :  { %v2894_v25 = vadd.f32 %v6471_v38, %v2893_v60 }
0x3a11   :  { %v4762_v29 = vpop.f32.mrf.mxu1 }
0x3a12   :  { %5153 = vtanh.f32 %v2894_v25  ;;  %v3806_v11 = vmul.f32 -1.442695, %v2894_v25 }
0x3a14   :  { %5155 = vpow2.f32 %v3806_v11 }
0x3a1f   :  { %v5154_v30 = vpop.eup %5153 }
0x3a20   :  { %2906 = vrot.lane.b32.xlu0 %v5154_v30, %s5243_s27 }
0x3a21   :  { %v5156_v36 = vpop.eup %5155 }
0x3a22   :  { %v2900_v24 = vadd.f32 1.0, %v5156_v36 }
0x3a24   :  { %5157 = vrcp.f32 %v2900_v24 }
0x3a31   :  { %v5158_v37 = vpop.eup %5157 }
0x3a32   :  { %v2904_v16 = vmul.f32 %v5158_v37, %v6482_v2 }
0x3a92   :  { %v2907_v51 = vpop.permute.xlu0 %2906 }
0x3a93   :  { %v2909_v35 = vmul.f32 %v5158_v37, %v2907_v51 }
0x3a95   :  { %2911 = vrot.lane.b32.xlu1 %v2909_v35, %s5244_s28 }
0x3b07   :  { %v2912_v17 = vpop.permute.xlu1 %2911 }
0x3b08   :  { %v2914_v27 = vadd.f32 %v2912_v17, %v2904_v16 }
0x3b0a   :  { %5159 = vtanh.f32 %v2914_v27 }
0x3b17   :  { %v5160_v19 = vpop.eup %5159 }
0x3b18   :  { %2917 = vrot.lane.b32.xlu0 %v5160_v19, %s5243_s27 }
0x3b8a   :  { %v2918_v20 = vpop.permute.xlu0 %2917 }
0x3b8b   :  { %v2920_v3 = vmul.f32 %v5158_v37, %v2918_v20 }
0x3b8d   :  { %2923 = vrot.lane.b32.xlu1 %v2920_v3, %s5245_s30  ;;  %v2921_v47 = vadd.f32 %v2920_v3, %v6490_v15 }
0x3bff   :  { %v2924_v21 = vpop.permute.xlu1 %2923 }
0x3c00   :  { %v2926_v5 = vsel %vm63_vm2, %v6278_v9, %v2924_v21 }
0x3c01   :  { %4788 = vmatmul.mubr.msk.f32.vlgmr.msra.gmra.mxu0 %vm1832_vm4, %v2926_v5 }
0x3c02   :  { %4818 = vmatpush3.msra.mxu0 %v6348_v59  ;;  %4841 = vmatprep.mubr.msk.f32.mxu0 %vm5242_vm0, %v5241_v1 }
0x3c03   :  { %4819 = vmatprep.subr.mxu0 %v5241_v1 }
0x3c04   :  { %4820 = vmatpush3.msra.mxu0 %v6356_v54 }
0x3c05   :  { %4821 = vmatprep.subr.mxu0 %v5241_v1 }
0x3c06   :  { %4822 = vmatpush3.msra.mxu0 %v6365_v63 }
0x3c07   :  { %4823 = vmatprep.subr.mxu0 %v5241_v1 }
0x3c08   :  { %4824 = vmatpush3.msra.mxu0 %v6372_v13 }
0x3c09   :  { %4825 = vmatprep.subr.mxu0 %v5241_v1 }
0x3c0a   :  { %4826 = vmatpush3.msra.mxu0 %v6379_v62 }
0x3c0b   :  { %4827 = vmatprep.subr.mxu0 %v5241_v1 }
0x3c0c   :  { %4828 = vmatpush3.msra.mxu0 %v6386_v43 }
0x3c0d   :  { %4829 = vmatprep.subr.mxu0 %v5241_v1 }
0x3c0e   :  { %4830 = vmatpush3.msra.mxu0 %v6393_v56 }
0x3c0f   :  { %4831 = vmatprep.subr.mxu0 %v5241_v1 }
0x3c10   :  { %4832 = vmatpush3.msra.mxu0 %v6400_v22 }
0x3c11   :  { %4833 = vmatprep.subr.mxu0 %v5241_v1 }
0x3c12   :  { %4834 = vmatpush3.msra.mxu0 %v6407_v23 }
0x3c13   :  { %4835 = vmatprep.subr.mxu0 %v5241_v1 }
0x3c14   :  { %4836 = vmatpush3.msra.mxu0 %v6414_v10 }
0x3c15   :  { %4837 = vmatprep.subr.mxu0 %v5241_v1 }
0x3c16   :  { %4838 = vmatpush3.msra.mxu0 %v6421_v28 }
0x3c17   :  { %4839 = vmatprep.subr.mxu0 %v5241_v1 }
0x3c18   :  { %4840 = vmatpush3.msra.mxu0 %v6431_v32 }
0x3c19   :  { %4871 = vmatprep.subr.mxu0 %v5241_v1 }
0x3cc1   :  { %v2996_v9 = vpop.f32.mrf.mxu0 }
0x3cc2   :  { %v2997_v6 = vadd.f32 %v6471_v38, %v2996_v9 }
0x3cc3   :  { %v4789_v55 = vpop.f32.mrf.mxu0 }
0x3cc4   :  { %5161 = vtanh.f32 %v2997_v6  ;;  %v3808_v57 = vmul.f32 -1.442695, %v2997_v6 }
0x3cc6   :  { %5163 = vpow2.f32 %v3808_v57 }
0x3cd1   :  { %v5162_v7 = vpop.eup %5161 }
0x3cd2   :  { %3009 = vrot.lane.b32.xlu0 %v5162_v7, %s5243_s27 }
0x3cd3   :  { %v5164_v58 = vpop.eup %5163 }
0x3cd4   :  { %v3003_v39 = vadd.f32 1.0, %v5164_v58 }
0x3cd6   :  { %5165 = vrcp.f32 %v3003_v39 }
0x3ce3   :  { %v5166_v40 = vpop.eup %5165 }
0x3ce4   :  { %v3007_v45 = vmul.f32 %v5166_v40, %v2914_v27 }
0x3d44   :  { %v3010_v46 = vpop.permute.xlu0 %3009 }
0x3d45   :  { %v3012_v41 = vmul.f32 %v5166_v40, %v3010_v46 }
0x3d47   :  { %3014 = vrot.lane.b32.xlu1 %v3012_v41, %s5244_s28 }
0x3db9   :  { %v3015_v50 = vpop.permute.xlu1 %3014 }
0x3dba   :  { %v3017_v33 = vadd.f32 %v3015_v50, %v3007_v45 }
0x3dbc   :  { %5167 = vtanh.f32 %v3017_v33 }
0x3dc9   :  { %v5168_v2 = vpop.eup %5167 }
0x3dca   :  { %3020 = vrot.lane.b32.xlu0 %v5168_v2, %s5243_s27 }
0x3e3c   :  { %v3021_v52 = vpop.permute.xlu0 %3020 }
0x3e3d   :  { %v3023_v12 = vmul.f32 %v5166_v40, %v3021_v52 }
0x3e3f   :  { %v3024_v31 = vadd.f32 %v3023_v12, %v2921_v47  ;;  %3026 = vrot.lane.b32.xlu1 %v3023_v12, %s5245_s30 }
0x3eb1   :  { %v3027_v26 = vpop.permute.xlu1 %3026 }
0x3eb2   :  { %v3029_v4 = vsel %vm63_vm2, %v6223_v44, %v3027_v26 }
0x3eb3   :  { %4815 = vmatmul.mubr.msk.f32.vlgmr.msra.gmra.mxu1 %vm1832_vm4, %v3029_v4 }
0x3eb4   :  { %4845 = vmatpush3.msra.mxu1 %v6348_v59  ;;  %4868 = vmatprep.mubr.msk.f32.mxu1 %vm5242_vm0, %v5241_v1 }
0x3eb5   :  { %4846 = vmatprep.subr.mxu1 %v5241_v1 }
0x3eb6   :  { %4847 = vmatpush3.msra.mxu1 %v6356_v54 }
0x3eb7   :  { %4848 = vmatprep.subr.mxu1 %v5241_v1 }
0x3eb8   :  { %4849 = vmatpush3.msra.mxu1 %v6365_v63 }
0x3eb9   :  { %4850 = vmatprep.subr.mxu1 %v5241_v1 }
0x3eba   :  { %4851 = vmatpush3.msra.mxu1 %v6372_v13 }
0x3ebb   :  { %4852 = vmatprep.subr.mxu1 %v5241_v1 }
0x3ebc   :  { %4853 = vmatpush3.msra.mxu1 %v6379_v62 }
0x3ebd   :  { %4854 = vmatprep.subr.mxu1 %v5241_v1 }
0x3ebe   :  { %4855 = vmatpush3.msra.mxu1 %v6386_v43 }
0x3ebf   :  { %4856 = vmatprep.subr.mxu1 %v5241_v1 }
0x3ec0   :  { %4857 = vmatpush3.msra.mxu1 %v6393_v56 }
0x3ec1   :  { %4858 = vmatprep.subr.mxu1 %v5241_v1 }
0x3ec2   :  { %4859 = vmatpush3.msra.mxu1 %v6400_v22 }
0x3ec3   :  { %4860 = vmatprep.subr.mxu1 %v5241_v1 }
0x3ec4   :  { %4861 = vmatpush3.msra.mxu1 %v6407_v23 }
0x3ec5   :  { %4862 = vmatprep.subr.mxu1 %v5241_v1 }
0x3ec6   :  { %4863 = vmatpush3.msra.mxu1 %v6414_v10 }
0x3ec7   :  { %4864 = vmatprep.subr.mxu1 %v5241_v1 }
0x3ec8   :  { %4865 = vmatpush3.msra.mxu1 %v6421_v28 }
0x3ec9   :  { %4866 = vmatprep.subr.mxu1 %v5241_v1 }
0x3eca   :  { %4867 = vmatpush3.msra.mxu1 %v6431_v32 }
0x3ecb   :  { %4898 = vmatprep.subr.mxu1 %v5241_v1 }
0x3f73   :  { %v3099_v44 = vpop.f32.mrf.mxu1 }
0x3f74   :  { %v3100_v15 = vadd.f32 %v6471_v38, %v3099_v44 }
0x3f75   :  { %v4816_v14 = vpop.f32.mrf.mxu1 }
0x3f76   :  { %5169 = vtanh.f32 %v3100_v15  ;;  %v3810_v0 = vmul.f32 -1.442695, %v3100_v15 }
0x3f78   :  { %5171 = vpow2.f32 %v3810_v0 }
0x3f83   :  { %v5170_v18 = vpop.eup %5169 }
0x3f84   :  { %3112 = vrot.lane.b32.xlu0 %v5170_v18, %s5243_s27 }
0x3f85   :  { %v5172_v60 = vpop.eup %5171 }
0x3f86   :  { %v3106_v25 = vadd.f32 1.0, %v5172_v60 }
0x3f88   :  { %5173 = vrcp.f32 %v3106_v25 }
0x3f95   :  { %v5174_v29 = vpop.eup %5173 }
0x3f96   :  { %v3110_v36 = vmul.f32 %v5174_v29, %v3017_v33 }
0x3ff6   :  { %v3113_v30 = vpop.permute.xlu0 %3112 }
0x3ff7   :  { %v3115_v11 = vmul.f32 %v5174_v29, %v3113_v30 }
0x3ff9   :  { %3117 = vrot.lane.b32.xlu1 %v3115_v11, %s5244_s28 }
0x406b   :  { %v3118_v24 = vpop.permute.xlu1 %3117 }
0x406c   :  { %v3120_v37 = vadd.f32 %v3118_v24, %v3110_v36 }
0x406e   :  { %5175 = vtanh.f32 %v3120_v37 }
0x407b   :  { %v5176_v51 = vpop.eup %5175 }
0x407c   :  { %3123 = vrot.lane.b32.xlu0 %v5176_v51, %s5243_s27 }
0x40ee   :  { %v3124_v35 = vpop.permute.xlu0 %3123 }
0x40ef   :  { %v3126_v16 = vmul.f32 %v5174_v29, %v3124_v35 }
0x40f1   :  { %v3127_v17 = vadd.f32 %v3126_v16, %v3024_v31  ;;  %3129 = vrot.lane.b32.xlu1 %v3126_v16, %s5245_s30 }
0x4163   :  { %v3130_v27 = vpop.permute.xlu1 %3129 }
0x4164   :  { %v3132_v19 = vsel %vm63_vm2, %v6175_v61, %v3130_v27 }
0x4165   :  { %4842 = vmatmul.mubr.msk.f32.vlgmr.msra.gmra.mxu0 %vm1832_vm4, %v3132_v19 }
0x4166   :  { %4872 = vmatpush3.msra.mxu0 %v6348_v59  ;;  %4895 = vmatprep.mubr.msk.f32.mxu0 %vm5242_vm0, %v5241_v1 }
0x4167   :  { %4873 = vmatprep.subr.mxu0 %v5241_v1 }
0x4168   :  { %4874 = vmatpush3.msra.mxu0 %v6356_v54 }
0x4169   :  { %4875 = vmatprep.subr.mxu0 %v5241_v1 }
0x416a   :  { %4876 = vmatpush3.msra.mxu0 %v6365_v63 }
0x416b   :  { %4877 = vmatprep.subr.mxu0 %v5241_v1 }
0x416c   :  { %4878 = vmatpush3.msra.mxu0 %v6372_v13 }
0x416d   :  { %4879 = vmatprep.subr.mxu0 %v5241_v1 }
0x416e   :  { %4880 = vmatpush3.msra.mxu0 %v6379_v62 }
0x416f   :  { %4881 = vmatprep.subr.mxu0 %v5241_v1 }
0x4170   :  { %4882 = vmatpush3.msra.mxu0 %v6386_v43 }
0x4171   :  { %4883 = vmatprep.subr.mxu0 %v5241_v1 }
0x4172   :  { %4884 = vmatpush3.msra.mxu0 %v6393_v56 }
0x4173   :  { %4885 = vmatprep.subr.mxu0 %v5241_v1 }
0x4174   :  { %4886 = vmatpush3.msra.mxu0 %v6400_v22 }
0x4175   :  { %4887 = vmatprep.subr.mxu0 %v5241_v1 }
0x4176   :  { %4888 = vmatpush3.msra.mxu0 %v6407_v23 }
0x4177   :  { %4889 = vmatprep.subr.mxu0 %v5241_v1 }
0x4178   :  { %4890 = vmatpush3.msra.mxu0 %v6414_v10 }
0x4179   :  { %4891 = vmatprep.subr.mxu0 %v5241_v1 }
0x417a   :  { %4892 = vmatpush3.msra.mxu0 %v6421_v28 }
0x417b   :  { %4893 = vmatprep.subr.mxu0 %v5241_v1 }
0x417c   :  { %4894 = vmatpush3.msra.mxu0 %v6431_v32 }
0x417d   :  { %4925 = vmatprep.subr.mxu0 %v5241_v1 }
0x4225   :  { %v3202_v61 = vpop.f32.mrf.mxu0 }
0x4226   :  { %v3203_v20 = vadd.f32 %v6471_v38, %v3202_v61 }
0x4227   :  { %v4843_v3 = vpop.f32.mrf.mxu0 }
0x4228   :  { %5177 = vtanh.f32 %v3203_v20  ;;  %v3812_v5 = vmul.f32 -1.442695, %v3203_v20 }
0x422a   :  { %5179 = vpow2.f32 %v3812_v5 }
0x4235   :  { %v5178_v21 = vpop.eup %5177 }
0x4236   :  { %3215 = vrot.lane.b32.xlu0 %v5178_v21, %s5243_s27 }
0x4237   :  { %v5180_v9 = vpop.eup %5179 }
0x4238   :  { %v3209_v6 = vadd.f32 1.0, %v5180_v9 }
0x423a   :  { %5181 = vrcp.f32 %v3209_v6 }
0x4247   :  { %v5182_v55 = vpop.eup %5181 }
0x4248   :  { %v3213_v58 = vmul.f32 %v5182_v55, %v3120_v37  ;;  %v5218_v37 = vld [vmem:[%s6794_s6] ss:$0 sm:$0xff] }
0x4249   :  { %v2673_v51 = vadd.f32 %v5218_v37, %v6552_v53 }
0x42a8   :  { %v3216_v7 = vpop.permute.xlu0 %3215 }
0x42a9   :  { %v3218_v57 = vmul.f32 %v5182_v55, %v3216_v7 }
0x42ab   :  { %3220 = vrot.lane.b32.xlu1 %v3218_v57, %s5244_s28 }
0x431d   :  { %v3221_v39 = vpop.permute.xlu1 %3220 }
0x431e   :  { %v3223_v40 = vadd.f32 %v3221_v39, %v3213_v58 }
0x4320   :  { %5183 = vtanh.f32 %v3223_v40 }
0x432d   :  { %v5184_v46 = vpop.eup %5183 }
0x432e   :  { %3226 = vrot.lane.b32.xlu0 %v5184_v46, %s5243_s27 }
0x43a0   :  { %v3227_v41 = vpop.permute.xlu0 %3226 }
0x43a1   :  { %v3229_v45 = vmul.f32 %v5182_v55, %v3227_v41 }
0x43a3   :  { %v3230_v50 = vadd.f32 %v3229_v45, %v3127_v17  ;;  %3232 = vrot.lane.b32.xlu1 %v3229_v45, %s5245_s30  ;;  %v3801_v17 = vmul.f32 -1.442695, %v2673_v51 }
0x4415   :  { %v3233_v33 = vpop.permute.xlu1 %3232 }
0x4416   :  { %v3235_v2 = vsel %vm63_vm2, %v6124_v34, %v3233_v33 }
0x4417   :  { %4869 = vmatmul.mubr.msk.f32.vlgmr.msra.gmra.mxu1 %vm1832_vm4, %v3235_v2 }
0x4418   :  { %4899 = vmatpush3.msra.mxu1 %v6348_v59  ;;  %4922 = vmatprep.mubr.msk.f32.mxu1 %vm5242_vm0, %v5241_v1 }
0x4419   :  { %4900 = vmatprep.subr.mxu1 %v5241_v1 }
0x441a   :  { %4901 = vmatpush3.msra.mxu1 %v6356_v54 }
0x441b   :  { %4902 = vmatprep.subr.mxu1 %v5241_v1 }
0x441c   :  { %4903 = vmatpush3.msra.mxu1 %v6365_v63 }
0x441d   :  { %4904 = vmatprep.subr.mxu1 %v5241_v1 }
0x441e   :  { %4905 = vmatpush3.msra.mxu1 %v6372_v13 }
0x441f   :  { %4906 = vmatprep.subr.mxu1 %v5241_v1 }
0x4420   :  { %4907 = vmatpush3.msra.mxu1 %v6379_v62 }
0x4421   :  { %4908 = vmatprep.subr.mxu1 %v5241_v1 }
0x4422   :  { %4909 = vmatpush3.msra.mxu1 %v6386_v43 }
0x4423   :  { %4910 = vmatprep.subr.mxu1 %v5241_v1 }
0x4424   :  { %4911 = vmatpush3.msra.mxu1 %v6393_v56 }
0x4425   :  { %4912 = vmatprep.subr.mxu1 %v5241_v1 }
0x4426   :  { %4913 = vmatpush3.msra.mxu1 %v6400_v22 }
0x4427   :  { %4914 = vmatprep.subr.mxu1 %v5241_v1 }
0x4428   :  { %4915 = vmatpush3.msra.mxu1 %v6407_v23 }
0x4429   :  { %4916 = vmatprep.subr.mxu1 %v5241_v1 }
0x442a   :  { %4917 = vmatpush3.msra.mxu1 %v6414_v10 }
0x442b   :  { %4918 = vmatprep.subr.mxu1 %v5241_v1 }
0x442c   :  { %4919 = vmatpush3.msra.mxu1 %v6421_v28 }
0x442d   :  { %4920 = vmatprep.subr.mxu1 %v5241_v1 }
0x442e   :  { %4921 = vmatpush3.msra.mxu1 %v6431_v32 }
0x442f   :  { %4944 = vmatprep.subr.mxu1 %v5241_v1 }
0x44d7   :  { %v3305_v34 = vpop.f32.mrf.mxu1 }
0x44d8   :  { %v3306_v59 = vadd.f32 %v6471_v38, %v3305_v34 }
0x44d9   :  { %v4870_v54 = vpop.f32.mrf.mxu1 }
0x44da   :  { %5185 = vtanh.f32 %v3306_v59  ;;  %v3814_v13 = vmul.f32 -1.442695, %v3306_v59 }
0x44dc   :  { %5187 = vpow2.f32 %v3814_v13 }
0x44e7   :  { %v5186_v63 = vpop.eup %5185 }
0x44e8   :  { %3318 = vrot.lane.b32.xlu0 %v5186_v63, %s5243_s27 }
0x44e9   :  { %v5188_v62 = vpop.eup %5187 }
0x44ea   :  { %v3312_v43 = vadd.f32 1.0, %v5188_v62  ;;  %v3555_v62 = vld [vmem:[%s6797_s9 + $0x30] sm:$0xff] }
0x44ec   :  { %5189 = vrcp.f32 %v3312_v43  ;;  %v3554_v43 = vld [vmem:[%s6797_s9 + $0x28] sm:$0xff] }
0x44f9   :  { %v5190_v56 = vpop.eup %5189 }
0x44fa   :  { %v3316_v10 = vmul.f32 %v5190_v56, %v3223_v40 }
0x455a   :  { %v3319_v22 = vpop.permute.xlu0 %3318 }
0x455b   :  { %v3321_v23 = vmul.f32 %v5190_v56, %v3319_v22  ;;  %v3552_v22 = vld [vmem:[%s6797_s9 + $0x18] sm:$0xff] }
0x455d   :  { %3323 = vrot.lane.b32.xlu1 %v3321_v23, %s5244_s28 }
0x45cf   :  { %v3324_v28 = vpop.permute.xlu1 %3323 }
0x45d0   :  { %v3326_v32 = vadd.f32 %v3324_v28, %v3316_v10  ;;  %v3551_v10 = vld [vmem:[%s6797_s9 + $0x10] sm:$0xff]  ;;  %v3550_v28 = vld [vmem:[%s6797_s9 + $0x8] sm:$0xff] }
0x45d2   :  { %5191 = vtanh.f32 %v3326_v32 }
0x45df   :  { %v5192_v52 = vpop.eup %5191 }
0x45e0   :  { %3329 = vrot.lane.b32.xlu0 %v5192_v52, %s5243_s27  ;;  %v3640_v52 = vld [vmem:[%s6799_s11 + $0x18] sm:$0xff] }
0x4652   :  { %v3330_v47 = vpop.permute.xlu0 %3329 }
0x4653   :  { %v3332_v12 = vmul.f32 %v5190_v56, %v3330_v47  ;;  %v3553_v56 = vld [vmem:[%s6797_s9 + $0x20] sm:$0xff]  ;;  %v3639_v47 = vld [vmem:[%s6799_s11 + $0x10] sm:$0xff] }
0x4655   :  { %v3333_v31 = vadd.f32 %v3332_v12, %v3230_v50  ;;  %3335 = vrot.lane.b32.xlu1 %v3332_v12, %s5245_s30 }
0x46c7   :  { %v3336_v26 = vpop.permute.xlu1 %3335 }
0x46c8   :  { %v3338_v4 = vsel %vm63_vm2, %v6077_v49, %v3336_v26 }
0x46c9   :  { %4896 = vmatmul.mubr.msk.f32.vlgmr.msra.gmra.mxu0 %vm1832_vm4, %v3338_v4 }
0x46ca   :  { %4941 = vmatprep.mubr.msk.f32.mxu0 %vm5242_vm0, %v5241_v1 }
0x4789   :  { %v3408_v44 = vpop.f32.mrf.mxu0 }
0x478a   :  { %v3409_v15 = vadd.f32 %v6471_v38, %v3408_v44 }
0x478b   :  { %v4897_v14 = vpop.f32.mrf.mxu0 }
0x478c   :  { %5193 = vtanh.f32 %v3409_v15  ;;  %v3816_v0 = vmul.f32 -1.442695, %v3409_v15  ;;  %v3638_v14 = vld [vmem:[%s6799_s11 + $0x8] sm:$0xff] }
0x478e   :  { %5195 = vpow2.f32 %v3816_v0  ;;  %v3819_v0 = vld [vmem:[%s6798_s10] ss:$0 sm:$0xff] }
0x4799   :  { %v5194_v18 = vpop.eup %5193 }
0x479a   :  { %3421 = vrot.lane.b32.xlu0 %v5194_v18, %s5243_s27  ;;  %v3637_v18 = vld [vmem:[%s6799_s11] sm:$0xff] }
0x479b   :  { %v5196_v60 = vpop.eup %5195 }
0x479c   :  { %v3415_v25 = vadd.f32 1.0, %v5196_v60 }
0x479e   :  { %5197 = vrcp.f32 %v3415_v25 }
0x47ab   :  { %v5198_v29 = vpop.eup %5197 }
0x47ac   :  { %v3419_v11 = vmul.f32 %v5198_v29, %v3326_v32  ;;  %v3549_v32 = vld [vmem:[%s6797_s9] sm:$0xff] }
0x480c   :  { %v3422_v49 = vpop.permute.xlu0 %3421 }
0x480d   :  { %v3424_v30 = vmul.f32 %v5198_v29, %v3422_v49  ;;  %v3821_v49 = vld [vmem:[%s6800_s12] ss:$0 sm:$0xff] }
0x480f   :  { %3426 = vrot.lane.b32.xlu1 %v3424_v30, %s5244_s28 }
0x4881   :  { %v3427_v36 = vpop.permute.xlu1 %3426 }
0x4882   :  { %v3429_v24 = vadd.f32 %v3427_v36, %v3419_v11 }
0x4884   :  { %5199 = vtanh.f32 %v3429_v24 }
0x4885   :  { %5201 = vtanh.f32 %v2673_v51 }
0x4886   :  { %5203 = vpow2.f32 %v3801_v17 }
0x4891   :  { %v5200_v35 = vpop.eup %5199 }
0x4892   :  { %3432 = vrot.lane.b32.xlu0 %v5200_v35, %s5243_s27  ;;  %v5202_v16 = vpop.eup %5201 }
0x4893   :  { %v5204_v27 = vpop.eup %5203 }
0x4894   :  { %v2679_v19 = vadd.f32 1.0, %v5204_v27 }
0x4896   :  { %2685 = vrot.lane.b32.xlu0 %v5202_v16, %s5243_s27  ;;  %5205 = vrcp.f32 %v2679_v19 }
0x48a3   :  { %v5206_v53 = vpop.eup %5205 }
0x48a4   :  { %v2683_v55 = vmul.f32 %v5206_v53, %v6478_v42 }
0x4904   :  { %v3433_v61 = vpop.permute.xlu0 %3432 }
0x4905   :  { %v3435_v20 = vmul.f32 %v5198_v29, %v3433_v61 }
0x4907   :  { %v6711_v3 = vadd.f32 %v3435_v20, %v3333_v31  ;;  %3438 = vrot.lane.b32.xlu1 %v3435_v20, %s5245_s30  ;;  %s5246_s30 = smov [#allocation4]  }
0x4908   :  { %v2686_v21 = vpop.permute.xlu0 %2685  ;;  %s3729_s21 = sshll.u32 %s5246_s30, 4  ;;  %s3730_s21 = int_to_ptr.vmem [resolvable:$true] %s3729_s21 }
0x4909   :  { %v2688_v5 = vmul.f32 %v5206_v53, %v2686_v21  ;;  %s5219_s11 = scalar_lea.vmem %s3730_s21, 64  ;;  %p5224_p1 = scmp.lt.s32.totalorder %s3730_s21, %s3730_s21 }
0x490a   :  { %p5220_p0 = scmp.ne.s32.totalorder %s3730_s21, %s5219_s11  ;;  %p5225_p2 = scmp.lt.s32.totalorder %s5219_s11, %s5219_s11 }
0x490b   :  { %2690 = vrot.lane.b32.xlu0 %v2688_v5, %s5244_s28 }
0x490c   :  { %p5226_p3 = por %p5225_p2, %p5224_p1 }
0x490e   :  { %p5227_p4 = pnand %p5226_p3, %p5220_p0 }
0x4979   :  { %v3439_v9 = vpop.permute.xlu1 %3438 }
0x497a   :  { %v3441_v6 = vsel %vm63_vm2, %v6025_v8, %v3439_v9 }
0x497b   :  { %4923 = vmatmul.mubr.msk.f32.vlgmr.msra.gmra.mxu1 %vm1832_vm4, %v3441_v6 }
0x497c   :  { %4952 = vmatprep.mubr.msk.f32.mxu1 %vm5242_vm0, %v5241_v1  ;;  %4945 = vmatpush3.msra.mxu1 %v3640_v52 }
0x497d   :  { %v2691_v7 = vpop.permute.xlu0 %2690  ;;  %4946 = vmatprep.subr.mxu1 %v5241_v1 }
0x497e   :  { %v2693_v57 = vadd.f32 %v2691_v7, %v2683_v55  ;;  %4947 = vmatpush3.msra.mxu1 %v3639_v47 }
0x497f   :  { %4948 = vmatprep.subr.mxu1 %v5241_v1 }
0x4980   :  { %5207 = vtanh.f32 %v2693_v57  ;;  %4949 = vmatpush3.msra.mxu1 %v3638_v14 }
0x4981   :  { %4950 = vmatprep.subr.mxu1 %v5241_v1 }
0x4982   :  { %4951 = vmatpush3.msra.mxu1 %v3637_v18 }
0x498d   :  { %v5208_v58 = vpop.eup %5207 }
0x498e   :  { %2696 = vrot.lane.b32.xlu0 %v5208_v58, %s5243_s27 }
0x4a00   :  { %v2697_v39 = vpop.permute.xlu0 %2696 }
0x4a01   :  { %v2699_v40 = vmul.f32 %v5206_v53, %v2697_v39 }
0x4a03   :  { %v2700_v46 = vadd.f32 %v2699_v40, %v6487_v48 }
0x4a05   :  { %3541 = vrot.lane.b32.xlu0 %v2700_v46, %s5244_s28 }
0x4a3b   :  { %v3511_v8 = vpop.f32.mrf.mxu1 }
0x4a3c   :  { %v3512_v41 = vadd.f32 %v6471_v38, %v3511_v8  ;;  %v3556_v38 = vld [vmem:[%s6797_s9 + $0x38] sm:$0xff] }
0x4a3d   :  { %v4924_v45 = vpop.f32.mrf.mxu1  ;;  %4926 = vmatpush3.msra.mxu0 %v3556_v38 }
0x4a3e   :  { %5209 = vtanh.f32 %v3512_v41  ;;  %v3818_v50 = vmul.f32 -1.442695, %v3512_v41  ;;  %4927 = vmatprep.subr.mxu0 %v5241_v1 }
0x4a3f   :  { %4928 = vmatpush3.msra.mxu0 %v3555_v62 }
0x4a40   :  { %5211 = vpow2.f32 %v3818_v50  ;;  %4929 = vmatprep.subr.mxu0 %v5241_v1 }
0x4a41   :  { %4930 = vmatpush3.msra.mxu0 %v3554_v43 }
0x4a42   :  { %4931 = vmatprep.subr.mxu0 %v5241_v1 }
0x4a43   :  { %4932 = vmatpush3.msra.mxu0 %v3553_v56 }
0x4a44   :  { %4933 = vmatprep.subr.mxu0 %v5241_v1 }
0x4a45   :  { %4934 = vmatpush3.msra.mxu0 %v3552_v22 }
0x4a46   :  { %4935 = vmatprep.subr.mxu0 %v5241_v1 }
0x4a47   :  { %4936 = vmatpush3.msra.mxu0 %v3551_v10 }
0x4a48   :  { %4937 = vmatprep.subr.mxu0 %v5241_v1 }
0x4a49   :  { %4938 = vmatpush3.msra.mxu0 %v3550_v28 }
0x4a4a   :  { %4939 = vmatprep.subr.mxu0 %v5241_v1 }
0x4a4b   :  { %v5210_v42 = vpop.eup %5209  ;;  %4940 = vmatpush3.msra.mxu0 %v3549_v32 }
0x4a4c   :  { %3524 = vrot.lane.b32.xlu1 %v5210_v42, %s5243_s27 }
0x4a4d   :  { %v5212_v33 = vpop.eup %5211 }
0x4a4e   :  { %v3518_v2 = vadd.f32 1.0, %v5212_v33 }
0x4a50   :  { %5213 = vrcp.f32 %v3518_v2 }
0x4a5d   :  { %v5214_v34 = vpop.eup %5213 }
0x4a5e   :  { %v3522_v48 = vmul.f32 %v5214_v34, %v3429_v24 }
0x4a77   :  { %v3542_v4 = vpop.permute.xlu0 %3541 }
0x4abe   :  { %v3525_v59 = vpop.permute.xlu1 %3524 }
0x4abf   :  { %v3527_v54 = vmul.f32 %v5214_v34, %v3525_v59 }
0x4ac1   :  { %3529 = vrot.lane.b32.xlu1 %v3527_v54, %s5244_s28 }
0x4b33   :  { %v3530_v63 = vpop.permute.xlu1 %3529 }
0x4b34   :  { %v3532_v13 = vadd.f32 %v3530_v63, %v3522_v48 }
0x4b36   :  { %5215 = vtanh.f32 %v3532_v13 }
0x4b43   :  { %v5216_v23 = vpop.eup %5215 }
0x4b44   :  { %3535 = vrot.lane.b32.xlu1 %v5216_v23, %s5243_s27 }
0x4bb6   :  { %v3536_v12 = vpop.permute.xlu1 %3535 }
0x4bb7   :  { %v3538_v31 = vmul.f32 %v5214_v34, %v3536_v12 }
0x4bb9   :  { %v3539_v26 = vadd.f32 %v3538_v31, %v6711_v3 }
0x4bbb   :  { %3545 = vrot.lane.b32.xlu1 %v3539_v26, %s5243_s27 }
0x4c2d   :  { %v3546_v44 = vpop.permute.xlu1 %3545 }
0x4c2e   :  { %v3548_v15 = vsel %vm61_vm1, %v3542_v4, %v3546_v44 }
0x4c2f   :  { %4942 = vmatmul.mubr.msk.f32.vlgmr.msra.gmra.mxu0 %vm63_vm2, %v3548_v15 }
0x4cef   :  { %v3633_v60 = vpop.f32.mrf.mxu0 }
0x4cf0   :  { %v3634_v25 = vadd.f32 %v3819_v0, %v3633_v60 }
0x4cf1   :  { %v4943_v29 = vpop.f32.mrf.mxu0 }
0x4cf2   :  { %4953 = vmatmul.mubr.msk.f32.vlgmr.msra.gmra.mxu1 %vm61_vm1, %v3634_v25 }
0x4db2   :  { %v3717_v1 = vpop.f32.mrf.mxu1 }
0x4db3   :  { %v3718_v30 = vadd.f32 %v3821_v49, %v3717_v1 }
0x4db4   :  { %v4954_v11 = vpop.f32.mrf.mxu1 }
0x4db5   :  { %3722 = vst.msk [vmem:[#allocation4] sm:$0xf] %vm3721_vm5, %v3718_v30 }
0x4db6   :  { %5230 = shalt.err (!%p5227_p4)
}
0x4db7   :  { %3732 = dma.vmem_to_hbm [thread:$0]  %s3730_s21, 64, %s6801_s13, [#allocation5]  }
0x4db8   :  { %5239 = dma.done.wait [#allocation5], 64  }
0x4db9   :  { %5240 = vsyncadd [#allocation5], 4294967232 }
0x4dba   :  { %3736 = vsyncpa [#allocation5], 1 }

</bundles_post_ra>
